<compile_context>
chip_gen: v5e
topology: v5e:2x2
jax: 0.10.0
libtpu: 0.0.40
codegen_flags: <defaults>
</compile_context>

<pallas_src>
import functools

import jax
import jax.numpy as jnp
import numpy as np
from jax import lax
from jax.experimental import pallas as pl
from jax.experimental.pallas import tpu as pltpu

LANE = 128


def _conv_bn_relu_kernel(xm_ref, xh_ref, w_ref, scale_ref, bias_ref, o_ref,
                         xall_ref, yc_ref, *,
                         R, WP, Wout, KH, KW, dilation, Cout, nchw_store):
    """One (batch, row-tile) step: sum of per-tap MXU contractions + BN + ReLU.

    xm_ref:    (R*WP, Cin)        bf16  main slab (R output rows, flattened spatial)
    xh_ref:    (RhF, Cin)         bf16  halo rows (start of the next row tile)
    w_ref:     (KH*KW, Cin, Cp)   bf16  per-tap weights, Cout padded to 128 lanes
    scale_ref: (1, Cp)            f32   folded BN scale = gamma / sqrt(var + eps)
    bias_ref:  (1, Cp)            f32   folded BN bias  = beta - mean * scale
    o_ref:     (Cout, R*Wout) [NCHW mode]  or  (R*Wout, Cp) [NHWC mode]
    xall_ref:  (R*WP + RhF, Cin)  bf16  VMEM scratch: main ++ halo
    yc_ref:    (R*Wout, Cp)       f32   VMEM scratch: compacted valid columns
    """
    rwp = R * WP
    rhf = xh_ref.shape[0]

    # Assemble the contiguous flattened-spatial slab (main rows then halo rows).
    xall_ref[0:rwp, :] = xm_ref[...]
    xall_ref[rwp:rwp + rhf, :] = xh_ref[...]

    # One MXU contraction per conv tap; the tap shift is a cheap static sublane
    # offset into the slab -- no im2col is ever materialized in HBM.
    acc = None
    for kh in range(KH):
        for kw in range(KW):
            ofs = kh * dilation * WP + kw * dilation
            xs = xall_ref[ofs:ofs + rwp, :]                         # (rwp, Cin) bf16
            part = jnp.dot(xs, w_ref[kh * KW + kw],
                           preferred_element_type=jnp.float32)      # (rwp, Cp) f32
            acc = part if acc is None else acc + part

    # Folded BatchNorm (eval mode) + ReLU, f32 epilogue.
    y = jnp.maximum(acc * scale_ref[...] + bias_ref[...], 0.0)

    if nchw_store:
        # Compact the valid output columns, transpose on the (idle) XLU and store an
        # NCHW tile directly -> no post-kernel transpose pass over the output.
        for r in range(R):
            yc_ref[r * Wout:(r + 1) * Wout, :] = y[r * WP:r * WP + Wout, :]
        yt = jnp.transpose(yc_ref[...])                 # (Cp, R*Wout) f32
        o_ref[...] = yt[:Cout, :].astype(o_ref.dtype)   # bf16 store
    else:
        # Lane-dense NHWC tile (Cp = multiple of 128 lanes); wrapper transposes.
        for r in range(R):
            o_ref[r * Wout:(r + 1) * Wout, :] = (
                y[r * WP:r * WP + Wout, :].astype(o_ref.dtype))


def _pick_tiles(Hout, Wout, WP, halo_flat, target_rows, max_rows=2048):
    """Choose (R, RhF, T, nchw_store).

    R   : output rows per tile (tile M = R*WP flattened rows, ~target_rows).
    RhF : halo block rows (flattened), a multiple of 8 dividing R*WP, >= halo_flat.
    T   : number of row tiles (ceil(Hout / R)).
    nchw_store: True if the kernel can store NCHW tiles directly.
    """
    def halo_block(rwp):
        need = max(halo_flat, 1)
        for cand in range(8, rwp + 1, 8):
            if rwp % cand == 0 and cand >= need:
                return cand
        return None

    cands = []
    for R in range(1, Hout + 1):
        rwp = R * WP
        if rwp % 8 or (R * Wout) % 8 or rwp > max_rows:
            continue
        rhf = halo_block(rwp)
        if rhf is None:
            continue
        T = -(-Hout // R)
        nchw_ok = (T == 1) or ((R * Wout) % LANE == 0)
        cands.append((R, rhf, T, nchw_ok))

    if not cands:
        # Guaranteed-feasible fallback: R a multiple of 8 (rows padded if needed).
        R = 8
        while halo_block(R * WP) is None:
            R += 8
        rhf = halo_block(R * WP)
        T = -(-Hout // R)
        cands.append((R, rhf, T, (T == 1) or ((R * Wout) % LANE == 0)))

    def score(c):
        R, _, T, nchw_ok = c
        rwp = R * WP
        return (nchw_ok, T * R == Hout, rwp % 16 == 0, -abs(rwp - target_rows))

    return max(cands, key=score)


def basic_conv2d(x_nchw, weight_oihw, gamma, beta, running_mean, running_var, *,
                 stride=1, padding=0, dilation=1, groups=1, eps=1e-5,
                 target_rows=512, out_dtype=jnp.bfloat16):
    """Forward pass of BasicConv2d (conv bias=False, BN eval mode, ReLU).

    x_nchw:      (N, Cin, H, W)      float32 (PyTorch layout)
    weight_oihw: (Cout, Cin, KH, KW) float32
    returns:     (N, Cout, Hout, Wout), dtype = out_dtype (bf16 by default;
                 pass out_dtype=jnp.float32 to match the PyTorch dtype exactly).
    """
    N, Cin, H, W = x_nchw.shape
    Cout, _, KH, KW = weight_oihw.shape

    # Fold BatchNorm (eval) into per-channel scale / bias (f32).
    scale = (gamma / jnp.sqrt(running_var + eps)).astype(jnp.float32)
    bias = beta.astype(jnp.float32) - running_mean.astype(jnp.float32) * scale

    if stride != 1 or groups != 1:
        # TODO(synk): stride>1 / grouped conv not implemented in the Pallas fast path.
        y = lax.conv_general_dilated(
            x_nchw, weight_oihw, window_strides=(stride, stride),
            padding=[(padding, padding), (padding, padding)],
            rhs_dilation=(dilation, dilation),
            dimension_numbers=("NCHW", "OIHW", "NCHW"),
            feature_group_count=groups)
        y = y * scale.reshape(1, -1, 1, 1) + bias.reshape(1, -1, 1, 1)
        return jnp.maximum(y, 0.0).astype(out_dtype)

    HP, WP = H + 2 * padding, W + 2 * padding
    Hout = HP - dilation * (KH - 1)
    Wout = WP - dilation * (KW - 1)
    assert Hout > 0 and Wout > 0

    Cout_pad = -(-Cout // LANE) * LANE
    halo_flat = (KH - 1) * dilation * WP + (KW - 1) * dilation

    R, RhF, T, nchw_store = _pick_tiles(Hout, Wout, WP, halo_flat, target_rows)
    rwp = R * WP
    Hout_pad = T * R
    Lp = Hout_pad * WP + RhF            # flattened rows the kernel may touch
    HP2 = -(-Lp // WP)                  # padded image rows required
    extra_rows = max(HP2 - HP, 0)       # extra zero rows at the bottom

    # ---- wrapper prep (one pass over the input; no im2col copy) --------------
    x_nhwc = jnp.transpose(x_nchw, (0, 2, 3, 1))
    x_sp = jnp.pad(x_nhwc, ((0, 0), (padding, padding + extra_rows),
                            (padding, padding), (0, 0)))
    x_flat = x_sp.reshape(N, HP2 * WP, Cin).astype(jnp.bfloat16)

    # Weight: one (Cin, Cout_pad) slab per tap, bf16.
    w_col = jnp.transpose(weight_oihw, (2, 3, 1, 0)).reshape(KH * KW, Cin, Cout)
    if Cout_pad != Cout:
        w_col = jnp.pad(w_col, ((0, 0), (0, 0), (0, Cout_pad - Cout)))
    w_col = w_col.astype(jnp.bfloat16)

    scale_p = jnp.pad(scale, (0, Cout_pad - Cout),
                      constant_values=1.0).reshape(1, Cout_pad)
    bias_p = jnp.pad(bias, (0, Cout_pad - Cout)).reshape(1, Cout_pad)

    halo_blk_stride = rwp // RhF

    kernel = functools.partial(
        _conv_bn_relu_kernel, R=R, WP=WP, Wout=Wout, KH=KH, KW=KW,
        dilation=dilation, Cout=Cout, nchw_store=nchw_store)

    if nchw_store:
        out_shape = jax.ShapeDtypeStruct((N, Cout, Hout_pad * Wout), out_dtype)
        out_spec = pl.BlockSpec((pl.Squeezed(), Cout, R * Wout),
                                lambda n, t: (n, 0, t))
        out_elems = N * Hout_pad * Wout * Cout
    else:
        out_shape = jax.ShapeDtypeStruct((N, Hout_pad * Wout, Cout_pad), out_dtype)
        out_spec = pl.BlockSpec((pl.Squeezed(), R * Wout, Cout_pad),
                                lambda n, t: (n, t, 0))
        out_elems = N * Hout_pad * Wout * Cout_pad

    flops = 2 * N * Hout * Wout * KH * KW * Cin * Cout
    bytes_accessed = (int(x_flat.size) * 2 + int(w_col.size) * 2 +
                      out_elems * int(np.dtype(out_dtype).itemsize))

    out = pl.pallas_call(
        kernel,
        out_shape=out_shape,
        grid_spec=pltpu.PrefetchScalarGridSpec(
            num_scalar_prefetch=0,
            grid=(N, T),
            in_specs=[
                # main slab: R output rows worth of flattened padded input
                pl.BlockSpec((pl.Squeezed(), rwp, Cin), lambda n, t: (n, t, 0)),
                # halo: first RhF flattened rows of the next row tile
                pl.BlockSpec((pl.Squeezed(), RhF, Cin),
                             lambda n, t: (n, (t + 1) * halo_blk_stride, 0)),
                # resident operands (constant index maps -> fetched once)
                pl.BlockSpec((KH * KW, Cin, Cout_pad), lambda n, t: (0, 0, 0)),
                pl.BlockSpec((1, Cout_pad), lambda n, t: (0, 0)),
                pl.BlockSpec((1, Cout_pad), lambda n, t: (0, 0)),
            ],
            out_specs=out_spec,
            scratch_shapes=[
                pltpu.VMEM((rwp + RhF, Cin), jnp.bfloat16),     # main ++ halo slab
                pltpu.VMEM((R * Wout, Cout_pad), jnp.float32),  # compacted tile
            ],
        ),
        compiler_params=pltpu.CompilerParams(
            dimension_semantics=("parallel", "parallel")),
        cost_estimate=pl.CostEstimate(
            flops=flops, transcendentals=0, bytes_accessed=bytes_accessed),
    )(x_flat, x_flat, w_col, scale_p, bias_p)

    # ---- finalize layout (free reshape in the aligned case) ------------------
    if nchw_store:
        out = out.reshape(N, Cout, Hout_pad, Wout)
        if Hout_pad != Hout:
            out = out[:, :, :Hout, :]
        return out
    out = out[:, :Hout * Wout, :Cout].reshape(N, Hout, Wout, Cout)
    return jnp.transpose(out, (0, 3, 1, 2))


def _reference(x_nchw, weight_oihw, gamma, beta, running_mean, running_var, *,
               stride=1, padding=0, dilation=1, eps=1e-5):
    y = lax.conv_general_dilated(
        x_nchw, weight_oihw,
        window_strides=(stride, stride),
        padding=[(padding, padding), (padding, padding)],
        rhs_dilation=(dilation, dilation),
        dimension_numbers=("NCHW", "OIHW", "NCHW"),
        precision=lax.Precision.HIGHEST)
    s = (gamma / jnp.sqrt(running_var + eps)).reshape(1, -1, 1, 1)
    b = (beta - running_mean * gamma / jnp.sqrt(running_var + eps)).reshape(1, -1, 1, 1)
    return jnp.maximum(y * s + b, 0.0)


if __name__ == "__main__":
    key = jax.random.PRNGKey(0)
    k_x, k_w, k_g, k_b, k_m, k_v = jax.random.split(key, 6)

    # BasicConv2d(in_planes=4, out_planes=8, kernel_size=3, padding=1)
    N, Cin, H, W = 2, 4, 16, 16
    Cout, KH, KW = 8, 3, 3
    padding = 1

    x = jax.random.normal(k_x, (N, Cin, H, W), jnp.float32)
    weight = jax.random.normal(k_w, (Cout, Cin, KH, KW), jnp.float32) * 0.1
    gamma = 1.0 + 0.1 * jax.random.normal(k_g, (Cout,), jnp.float32)
    beta = 0.1 * jax.random.normal(k_b, (Cout,), jnp.float32)
    running_mean = 0.1 * jax.random.normal(k_m, (Cout,), jnp.float32)
    running_var = jnp.abs(jax.random.normal(k_v, (Cout,), jnp.float32)) + 0.5

    fwd = jax.jit(functools.partial(basic_conv2d, stride=1, padding=padding))
    out = fwd(x, weight, gamma, beta, running_mean, running_var)
    out = jax.block_until_ready(out)

    # Reference on the same bf16-quantized activations/weights the kernel consumes.
    x_q = x.astype(jnp.bfloat16).astype(jnp.float32)
    w_q = weight.astype(jnp.bfloat16).astype(jnp.float32)
    ref = _reference(x_q, w_q, gamma, beta, running_mean, running_var,
                     stride=1, padding=padding)
    np.testing.assert_allclose(np.asarray(out.astype(jnp.float32)),
                               np.asarray(ref), atol=2e-2, rtol=2e-2)

    print("KERNEL_OK")
</pallas_src>

<mosaic_0001>
module attributes {stable_mosaic.version = 11 : i64} {
  func.func @_conv_bn_relu_kernel(%arg0: i32, %arg1: i32, %arg2: memref<1x288x4xbf16, #tpu.memory_space<vmem>>, %arg3: memref<1x48x4xbf16, #tpu.memory_space<vmem>>, %arg4: memref<9x4x128xbf16, #tpu.memory_space<vmem>>, %arg5: memref<1x128xf32, #tpu.memory_space<vmem>>, %arg6: memref<1x128xf32, #tpu.memory_space<vmem>>, %arg7: memref<1x8x256xbf16, #tpu.memory_space<vmem>>, %arg8: memref<336x4xbf16, #tpu.memory_space<vmem>>, %arg9: memref<256x128xf32, #tpu.memory_space<vmem>>) attributes {dimension_semantics = [#tpu.dimension_semantics<parallel>, #tpu.dimension_semantics<parallel>], iteration_bounds = array<i64: 2, 1>, scalar_prefetch = 0 : i64, scratch_operands = 2 : i64, tpu.core_type = #tpu.core_type<tc>, window_params = [{transform_indices = @transform_0, window_bounds = array<i64: 1, 288, 4>}, {transform_indices = @transform_1, window_bounds = array<i64: 1, 48, 4>}, {pipeline_mode = #tpu.pipeline_mode<synchronous>, transform_indices = @transform_2, window_bounds = array<i64: 9, 4, 128>}, {pipeline_mode = #tpu.pipeline_mode<synchronous>, transform_indices = @transform_3, window_bounds = array<i64: 1, 128>}, {pipeline_mode = #tpu.pipeline_mode<synchronous>, transform_indices = @transform_4, window_bounds = array<i64: 1, 128>}, {transform_indices = @transform_5, window_bounds = array<i64: 1, 8, 256>}]} {
    %c0 = arith.constant 0 : index
    %c0_0 = arith.constant 0 : index
    %c0_1 = arith.constant 0 : index
    %0 = vector.load %arg2[%c0, %c0_0, %c0_1] : memref<1x288x4xbf16, #tpu.memory_space<vmem>>, vector<1x288x4xbf16>
    %1 = vector.shape_cast %0 : vector<1x288x4xbf16> to vector<288x4xbf16>
    %c0_2 = arith.constant 0 : index
    %c0_3 = arith.constant 0 : index
    %2 = vector.load %arg8[%c0_2, %c0_3] : memref<336x4xbf16, #tpu.memory_space<vmem>>, vector<288x4xbf16>
    tpu.vector_store %arg8[%c0_2, %c0_3], %1 {strides = array<i32>} : memref<336x4xbf16, #tpu.memory_space<vmem>>, vector<288x4xbf16>,
    %c0_4 = arith.constant 0 : index
    %c0_5 = arith.constant 0 : index
    %c0_6 = arith.constant 0 : index
    %3 = vector.load %arg3[%c0_4, %c0_5, %c0_6] : memref<1x48x4xbf16, #tpu.memory_space<vmem>>, vector<1x48x4xbf16>
    %4 = vector.shape_cast %3 : vector<1x48x4xbf16> to vector<48x4xbf16>
    %c288 = arith.constant 288 : index
    %c0_7 = arith.constant 0 : index
    %5 = vector.load %arg8[%c288, %c0_7] : memref<336x4xbf16, #tpu.memory_space<vmem>>, vector<48x4xbf16>
    tpu.vector_store %arg8[%c288, %c0_7], %4 {strides = array<i32>} : memref<336x4xbf16, #tpu.memory_space<vmem>>, vector<48x4xbf16>,
    %c0_8 = arith.constant 0 : index
    %c0_9 = arith.constant 0 : index
    %6 = vector.load %arg8[%c0_8, %c0_9] : memref<336x4xbf16, #tpu.memory_space<vmem>>, vector<288x4xbf16>
    %c0_10 = arith.constant 0 : index
    %c0_11 = arith.constant 0 : index
    %c0_12 = arith.constant 0 : index
    %7 = vector.load %arg4[%c0_10, %c0_11, %c0_12] : memref<9x4x128xbf16, #tpu.memory_space<vmem>>, vector<1x4x128xbf16>
    %8 = vector.shape_cast %7 : vector<1x4x128xbf16> to vector<4x128xbf16>
    %cst = arith.constant dense<0.000000e+00> : vector<288x128xf32>
    %9 = tpu.matmul %6, %8, %cst {dimension_numbers = #tpu.dot_dimension_numbers<[1], [0], [0], [1], [0, 0, 1, 1], [], []>} : vector<288x4xbf16>, vector<4x128xbf16>, vector<288x128xf32> -> vector<288x128xf32>
    %c1 = arith.constant 1 : index
    %c0_13 = arith.constant 0 : index
    %10 = vector.load %arg8[%c1, %c0_13] : memref<336x4xbf16, #tpu.memory_space<vmem>>, vector<288x4xbf16>
    %c1_14 = arith.constant 1 : index
    %c0_15 = arith.constant 0 : index
    %c0_16 = arith.constant 0 : index
    %11 = vector.load %arg4[%c1_14, %c0_15, %c0_16] : memref<9x4x128xbf16, #tpu.memory_space<vmem>>, vector<1x4x128xbf16>
    %12 = vector.shape_cast %11 : vector<1x4x128xbf16> to vector<4x128xbf16>
    %cst_17 = arith.constant dense<0.000000e+00> : vector<288x128xf32>
    %13 = tpu.matmul %10, %12, %cst_17 {dimension_numbers = #tpu.dot_dimension_numbers<[1], [0], [0], [1], [0, 0, 1, 1], [], []>} : vector<288x4xbf16>, vector<4x128xbf16>, vector<288x128xf32> -> vector<288x128xf32>
    %14 = arith.addf %9, %13 : vector<288x128xf32>
    %c2 = arith.constant 2 : index
    %c0_18 = arith.constant 0 : index
    %15 = vector.load %arg8[%c2, %c0_18] : memref<336x4xbf16, #tpu.memory_space<vmem>>, vector<288x4xbf16>
    %c2_19 = arith.constant 2 : index
    %c0_20 = arith.constant 0 : index
    %c0_21 = arith.constant 0 : index
    %16 = vector.load %arg4[%c2_19, %c0_20, %c0_21] : memref<9x4x128xbf16, #tpu.memory_space<vmem>>, vector<1x4x128xbf16>
    %17 = vector.shape_cast %16 : vector<1x4x128xbf16> to vector<4x128xbf16>
    %cst_22 = arith.constant dense<0.000000e+00> : vector<288x128xf32>
    %18 = tpu.matmul %15, %17, %cst_22 {dimension_numbers = #tpu.dot_dimension_numbers<[1], [0], [0], [1], [0, 0, 1, 1], [], []>} : vector<288x4xbf16>, vector<4x128xbf16>, vector<288x128xf32> -> vector<288x128xf32>
    %19 = arith.addf %14, %18 : vector<288x128xf32>
    %c18 = arith.constant 18 : index
    %c0_23 = arith.constant 0 : index
    %20 = vector.load %arg8[%c18, %c0_23] : memref<336x4xbf16, #tpu.memory_space<vmem>>, vector<288x4xbf16>
    %c3 = arith.constant 3 : index
    %c0_24 = arith.constant 0 : index
    %c0_25 = arith.constant 0 : index
    %21 = vector.load %arg4[%c3, %c0_24, %c0_25] : memref<9x4x128xbf16, #tpu.memory_space<vmem>>, vector<1x4x128xbf16>
    %22 = vector.shape_cast %21 : vector<1x4x128xbf16> to vector<4x128xbf16>
    %cst_26 = arith.constant dense<0.000000e+00> : vector<288x128xf32>
    %23 = tpu.matmul %20, %22, %cst_26 {dimension_numbers = #tpu.dot_dimension_numbers<[1], [0], [0], [1], [0, 0, 1, 1], [], []>} : vector<288x4xbf16>, vector<4x128xbf16>, vector<288x128xf32> -> vector<288x128xf32>
    %24 = arith.addf %19, %23 : vector<288x128xf32>
    %c19 = arith.constant 19 : index
    %c0_27 = arith.constant 0 : index
    %25 = vector.load %arg8[%c19, %c0_27] : memref<336x4xbf16, #tpu.memory_space<vmem>>, vector<288x4xbf16>
    %c4 = arith.constant 4 : index
    %c0_28 = arith.constant 0 : index
    %c0_29 = arith.constant 0 : index
    %26 = vector.load %arg4[%c4, %c0_28, %c0_29] : memref<9x4x128xbf16, #tpu.memory_space<vmem>>, vector<1x4x128xbf16>
    %27 = vector.shape_cast %26 : vector<1x4x128xbf16> to vector<4x128xbf16>
    %cst_30 = arith.constant dense<0.000000e+00> : vector<288x128xf32>
    %28 = tpu.matmul %25, %27, %cst_30 {dimension_numbers = #tpu.dot_dimension_numbers<[1], [0], [0], [1], [0, 0, 1, 1], [], []>} : vector<288x4xbf16>, vector<4x128xbf16>, vector<288x128xf32> -> vector<288x128xf32>
    %29 = arith.addf %24, %28 : vector<288x128xf32>
    %c20 = arith.constant 20 : index
    %c0_31 = arith.constant 0 : index
    %30 = vector.load %arg8[%c20, %c0_31] : memref<336x4xbf16, #tpu.memory_space<vmem>>, vector<288x4xbf16>
    %c5 = arith.constant 5 : index
    %c0_32 = arith.constant 0 : index
    %c0_33 = arith.constant 0 : index
    %31 = vector.load %arg4[%c5, %c0_32, %c0_33] : memref<9x4x128xbf16, #tpu.memory_space<vmem>>, vector<1x4x128xbf16>
    %32 = vector.shape_cast %31 : vector<1x4x128xbf16> to vector<4x128xbf16>
    %cst_34 = arith.constant dense<0.000000e+00> : vector<288x128xf32>
    %33 = tpu.matmul %30, %32, %cst_34 {dimension_numbers = #tpu.dot_dimension_numbers<[1], [0], [0], [1], [0, 0, 1, 1], [], []>} : vector<288x4xbf16>, vector<4x128xbf16>, vector<288x128xf32> -> vector<288x128xf32>
    %34 = arith.addf %29, %33 : vector<288x128xf32>
    %c36 = arith.constant 36 : index
    %c0_35 = arith.constant 0 : index
    %35 = vector.load %arg8[%c36, %c0_35] : memref<336x4xbf16, #tpu.memory_space<vmem>>, vector<288x4xbf16>
    %c6 = arith.constant 6 : index
    %c0_36 = arith.constant 0 : index
    %c0_37 = arith.constant 0 : index
    %36 = vector.load %arg4[%c6, %c0_36, %c0_37] : memref<9x4x128xbf16, #tpu.memory_space<vmem>>, vector<1x4x128xbf16>
    %37 = vector.shape_cast %36 : vector<1x4x128xbf16> to vector<4x128xbf16>
    %cst_38 = arith.constant dense<0.000000e+00> : vector<288x128xf32>
    %38 = tpu.matmul %35, %37, %cst_38 {dimension_numbers = #tpu.dot_dimension_numbers<[1], [0], [0], [1], [0, 0, 1, 1], [], []>} : vector<288x4xbf16>, vector<4x128xbf16>, vector<288x128xf32> -> vector<288x128xf32>
    %39 = arith.addf %34, %38 : vector<288x128xf32>
    %c37 = arith.constant 37 : index
    %c0_39 = arith.constant 0 : index
    %40 = vector.load %arg8[%c37, %c0_39] : memref<336x4xbf16, #tpu.memory_space<vmem>>, vector<288x4xbf16>
    %c7 = arith.constant 7 : index
    %c0_40 = arith.constant 0 : index
    %c0_41 = arith.constant 0 : index
    %41 = vector.load %arg4[%c7, %c0_40, %c0_41] : memref<9x4x128xbf16, #tpu.memory_space<vmem>>, vector<1x4x128xbf16>
    %42 = vector.shape_cast %41 : vector<1x4x128xbf16> to vector<4x128xbf16>
    %cst_42 = arith.constant dense<0.000000e+00> : vector<288x128xf32>
    %43 = tpu.matmul %40, %42, %cst_42 {dimension_numbers = #tpu.dot_dimension_numbers<[1], [0], [0], [1], [0, 0, 1, 1], [], []>} : vector<288x4xbf16>, vector<4x128xbf16>, vector<288x128xf32> -> vector<288x128xf32>
    %44 = arith.addf %39, %43 : vector<288x128xf32>
    %c38 = arith.constant 38 : index
    %c0_43 = arith.constant 0 : index
    %45 = vector.load %arg8[%c38, %c0_43] : memref<336x4xbf16, #tpu.memory_space<vmem>>, vector<288x4xbf16>
    %c8 = arith.constant 8 : index
    %c0_44 = arith.constant 0 : index
    %c0_45 = arith.constant 0 : index
    %46 = vector.load %arg4[%c8, %c0_44, %c0_45] : memref<9x4x128xbf16, #tpu.memory_space<vmem>>, vector<1x4x128xbf16>
    %47 = vector.shape_cast %46 : vector<1x4x128xbf16> to vector<4x128xbf16>
    %cst_46 = arith.constant dense<0.000000e+00> : vector<288x128xf32>
    %48 = tpu.matmul %45, %47, %cst_46 {dimension_numbers = #tpu.dot_dimension_numbers<[1], [0], [0], [1], [0, 0, 1, 1], [], []>} : vector<288x4xbf16>, vector<4x128xbf16>, vector<288x128xf32> -> vector<288x128xf32>
    %49 = arith.addf %44, %48 : vector<288x128xf32>
    %c0_47 = arith.constant 0 : index
    %c0_48 = arith.constant 0 : index
    %50 = vector.load %arg5[%c0_47, %c0_48] : memref<1x128xf32, #tpu.memory_space<vmem>>, vector<1x128xf32>
    %51 = vector.broadcast %50 : vector<1x128xf32> to vector<288x128xf32>
    %52 = arith.mulf %49, %51 : vector<288x128xf32>
    %c0_49 = arith.constant 0 : index
    %c0_50 = arith.constant 0 : index
    %53 = vector.load %arg6[%c0_49, %c0_50] : memref<1x128xf32, #tpu.memory_space<vmem>>, vector<1x128xf32>
    %54 = vector.broadcast %53 : vector<1x128xf32> to vector<288x128xf32>
    %55 = arith.addf %52, %54 : vector<288x128xf32>
    %cst_51 = arith.constant 0.000000e+00 : f32
    %56 = vector.broadcast %cst_51 : f32 to vector<288x128xf32>
    %57 = arith.maximumf %55, %56 : vector<288x128xf32>
    %58 = vector.extract_strided_slice %57 {offsets = [0, 0], sizes = [16, 128], strides = [1, 1]} : vector<288x128xf32> to vector<16x128xf32>
    %c0_52 = arith.constant 0 : index
    %c0_53 = arith.constant 0 : index
    %59 = vector.load %arg9[%c0_52, %c0_53] : memref<256x128xf32, #tpu.memory_space<vmem>>, vector<16x128xf32>
    tpu.vector_store %arg9[%c0_52, %c0_53], %58 {strides = array<i32>} : memref<256x128xf32, #tpu.memory_space<vmem>>, vector<16x128xf32>,
    %60 = vector.extract_strided_slice %57 {offsets = [18, 0], sizes = [16, 128], strides = [1, 1]} : vector<288x128xf32> to vector<16x128xf32>
    %c16 = arith.constant 16 : index
    %c0_54 = arith.constant 0 : index
    %61 = vector.load %arg9[%c16, %c0_54] : memref<256x128xf32, #tpu.memory_space<vmem>>, vector<16x128xf32>
    tpu.vector_store %arg9[%c16, %c0_54], %60 {strides = array<i32>} : memref<256x128xf32, #tpu.memory_space<vmem>>, vector<16x128xf32>,
    %62 = vector.extract_strided_slice %57 {offsets = [36, 0], sizes = [16, 128], strides = [1, 1]} : vector<288x128xf32> to vector<16x128xf32>
    %c32 = arith.constant 32 : index
    %c0_55 = arith.constant 0 : index
    %63 = vector.load %arg9[%c32, %c0_55] : memref<256x128xf32, #tpu.memory_space<vmem>>, vector<16x128xf32>
    tpu.vector_store %arg9[%c32, %c0_55], %62 {strides = array<i32>} : memref<256x128xf32, #tpu.memory_space<vmem>>, vector<16x128xf32>,
    %64 = vector.extract_strided_slice %57 {offsets = [54, 0], sizes = [16, 128], strides = [1, 1]} : vector<288x128xf32> to vector<16x128xf32>
    %c48 = arith.constant 48 : index
    %c0_56 = arith.constant 0 : index
    %65 = vector.load %arg9[%c48, %c0_56] : memref<256x128xf32, #tpu.memory_space<vmem>>, vector<16x128xf32>
    tpu.vector_store %arg9[%c48, %c0_56], %64 {strides = array<i32>} : memref<256x128xf32, #tpu.memory_space<vmem>>, vector<16x128xf32>,
    %66 = vector.extract_strided_slice %57 {offsets = [72, 0], sizes = [16, 128], strides = [1, 1]} : vector<288x128xf32> to vector<16x128xf32>
    %c64 = arith.constant 64 : index
    %c0_57 = arith.constant 0 : index
    %67 = vector.load %arg9[%c64, %c0_57] : memref<256x128xf32, #tpu.memory_space<vmem>>, vector<16x128xf32>
    tpu.vector_store %arg9[%c64, %c0_57], %66 {strides = array<i32>} : memref<256x128xf32, #tpu.memory_space<vmem>>, vector<16x128xf32>,
    %68 = vector.extract_strided_slice %57 {offsets = [90, 0], sizes = [16, 128], strides = [1, 1]} : vector<288x128xf32> to vector<16x128xf32>
    %c80 = arith.constant 80 : index
    %c0_58 = arith.constant 0 : index
    %69 = vector.load %arg9[%c80, %c0_58] : memref<256x128xf32, #tpu.memory_space<vmem>>, vector<16x128xf32>
    tpu.vector_store %arg9[%c80, %c0_58], %68 {strides = array<i32>} : memref<256x128xf32, #tpu.memory_space<vmem>>, vector<16x128xf32>,
    %70 = vector.extract_strided_slice %57 {offsets = [108, 0], sizes = [16, 128], strides = [1, 1]} : vector<288x128xf32> to vector<16x128xf32>
    %c96 = arith.constant 96 : index
    %c0_59 = arith.constant 0 : index
    %71 = vector.load %arg9[%c96, %c0_59] : memref<256x128xf32, #tpu.memory_space<vmem>>, vector<16x128xf32>
    tpu.vector_store %arg9[%c96, %c0_59], %70 {strides = array<i32>} : memref<256x128xf32, #tpu.memory_space<vmem>>, vector<16x128xf32>,
    %72 = vector.extract_strided_slice %57 {offsets = [126, 0], sizes = [16, 128], strides = [1, 1]} : vector<288x128xf32> to vector<16x128xf32>
    %c112 = arith.constant 112 : index
    %c0_60 = arith.constant 0 : index
    %73 = vector.load %arg9[%c112, %c0_60] : memref<256x128xf32, #tpu.memory_space<vmem>>, vector<16x128xf32>
    tpu.vector_store %arg9[%c112, %c0_60], %72 {strides = array<i32>} : memref<256x128xf32, #tpu.memory_space<vmem>>, vector<16x128xf32>,
    %74 = vector.extract_strided_slice %57 {offsets = [144, 0], sizes = [16, 128], strides = [1, 1]} : vector<288x128xf32> to vector<16x128xf32>
    %c128 = arith.constant 128 : index
    %c0_61 = arith.constant 0 : index
    %75 = vector.load %arg9[%c128, %c0_61] : memref<256x128xf32, #tpu.memory_space<vmem>>, vector<16x128xf32>
    tpu.vector_store %arg9[%c128, %c0_61], %74 {strides = array<i32>} : memref<256x128xf32, #tpu.memory_space<vmem>>, vector<16x128xf32>,
    %76 = vector.extract_strided_slice %57 {offsets = [162, 0], sizes = [16, 128], strides = [1, 1]} : vector<288x128xf32> to vector<16x128xf32>
    %c144 = arith.constant 144 : index
    %c0_62 = arith.constant 0 : index
    %77 = vector.load %arg9[%c144, %c0_62] : memref<256x128xf32, #tpu.memory_space<vmem>>, vector<16x128xf32>
    tpu.vector_store %arg9[%c144, %c0_62], %76 {strides = array<i32>} : memref<256x128xf32, #tpu.memory_space<vmem>>, vector<16x128xf32>,
    %78 = vector.extract_strided_slice %57 {offsets = [180, 0], sizes = [16, 128], strides = [1, 1]} : vector<288x128xf32> to vector<16x128xf32>
    %c160 = arith.constant 160 : index
    %c0_63 = arith.constant 0 : index
    %79 = vector.load %arg9[%c160, %c0_63] : memref<256x128xf32, #tpu.memory_space<vmem>>, vector<16x128xf32>
    tpu.vector_store %arg9[%c160, %c0_63], %78 {strides = array<i32>} : memref<256x128xf32, #tpu.memory_space<vmem>>, vector<16x128xf32>,
    %80 = vector.extract_strided_slice %57 {offsets = [198, 0], sizes = [16, 128], strides = [1, 1]} : vector<288x128xf32> to vector<16x128xf32>
    %c176 = arith.constant 176 : index
    %c0_64 = arith.constant 0 : index
    %81 = vector.load %arg9[%c176, %c0_64] : memref<256x128xf32, #tpu.memory_space<vmem>>, vector<16x128xf32>
    tpu.vector_store %arg9[%c176, %c0_64], %80 {strides = array<i32>} : memref<256x128xf32, #tpu.memory_space<vmem>>, vector<16x128xf32>,
    %82 = vector.extract_strided_slice %57 {offsets = [216, 0], sizes = [16, 128], strides = [1, 1]} : vector<288x128xf32> to vector<16x128xf32>
    %c192 = arith.constant 192 : index
    %c0_65 = arith.constant 0 : index
    %83 = vector.load %arg9[%c192, %c0_65] : memref<256x128xf32, #tpu.memory_space<vmem>>, vector<16x128xf32>
    tpu.vector_store %arg9[%c192, %c0_65], %82 {strides = array<i32>} : memref<256x128xf32, #tpu.memory_space<vmem>>, vector<16x128xf32>,
    %84 = vector.extract_strided_slice %57 {offsets = [234, 0], sizes = [16, 128], strides = [1, 1]} : vector<288x128xf32> to vector<16x128xf32>
    %c208 = arith.constant 208 : index
    %c0_66 = arith.constant 0 : index
    %85 = vector.load %arg9[%c208, %c0_66] : memref<256x128xf32, #tpu.memory_space<vmem>>, vector<16x128xf32>
    tpu.vector_store %arg9[%c208, %c0_66], %84 {strides = array<i32>} : memref<256x128xf32, #tpu.memory_space<vmem>>, vector<16x128xf32>,
    %86 = vector.extract_strided_slice %57 {offsets = [252, 0], sizes = [16, 128], strides = [1, 1]} : vector<288x128xf32> to vector<16x128xf32>
    %c224 = arith.constant 224 : index
    %c0_67 = arith.constant 0 : index
    %87 = vector.load %arg9[%c224, %c0_67] : memref<256x128xf32, #tpu.memory_space<vmem>>, vector<16x128xf32>
    tpu.vector_store %arg9[%c224, %c0_67], %86 {strides = array<i32>} : memref<256x128xf32, #tpu.memory_space<vmem>>, vector<16x128xf32>,
    %88 = vector.extract_strided_slice %57 {offsets = [270, 0], sizes = [16, 128], strides = [1, 1]} : vector<288x128xf32> to vector<16x128xf32>
    %c240 = arith.constant 240 : index
    %c0_68 = arith.constant 0 : index
    %89 = vector.load %arg9[%c240, %c0_68] : memref<256x128xf32, #tpu.memory_space<vmem>>, vector<16x128xf32>
    tpu.vector_store %arg9[%c240, %c0_68], %88 {strides = array<i32>} : memref<256x128xf32, #tpu.memory_space<vmem>>, vector<16x128xf32>,
    %c0_69 = arith.constant 0 : index
    %c0_70 = arith.constant 0 : index
    %90 = vector.load %arg9[%c0_69, %c0_70] : memref<256x128xf32, #tpu.memory_space<vmem>>, vector<256x128xf32>
    %91 = tpu.transpose %90, [1, 0] : vector<256x128xf32> -> vector<128x256xf32>
    %92 = vector.extract_strided_slice %91 {offsets = [0, 0], sizes = [8, 256], strides = [1, 1]} : vector<128x256xf32> to vector<8x256xf32>
    %93 = arith.truncf %92 : vector<8x256xf32> to vector<8x256xbf16>
    %c0_71 = arith.constant 0 : index
    %c0_72 = arith.constant 0 : index
    %c0_73 = arith.constant 0 : index
    %94 = vector.load %arg7[%c0_71, %c0_72, %c0_73] : memref<1x8x256xbf16, #tpu.memory_space<vmem>>, vector<1x8x256xbf16>
    %95 = vector.shape_cast %94 : vector<1x8x256xbf16> to vector<8x256xbf16>
    %96 = vector.shape_cast %93 : vector<8x256xbf16> to vector<1x8x256xbf16>
    tpu.vector_store %arg7[%c0_71, %c0_72, %c0_73], %96 {strides = array<i32>} : memref<1x8x256xbf16, #tpu.memory_space<vmem>>, vector<1x8x256xbf16>,
    return
  }
  func.func @transform_0(%arg0: i32, %arg1: i32) -> (i32, i32, i32) {
    %c0_i32 = arith.constant 0 : i32
    %c0_i32_0 = arith.constant 0 : i32
    return %arg0, %arg1, %c0_i32 : i32, i32, i32
  }
  func.func @transform_1(%arg0: i32, %arg1: i32) -> (i32, i32, i32) {
    %c1_i32 = arith.constant 1 : i32
    %0 = arith.addi %arg1, %c1_i32 : i32
    %c6_i32 = arith.constant 6 : i32
    %1 = arith.muli %0, %c6_i32 : i32
    %c0_i32 = arith.constant 0 : i32
    %c0_i32_0 = arith.constant 0 : i32
    return %arg0, %1, %c0_i32 : i32, i32, i32
  }
  func.func @transform_2(%arg0: i32, %arg1: i32) -> (i32, i32, i32) {
    %c0_i32 = arith.constant 0 : i32
    %c0_i32_0 = arith.constant 0 : i32
    %c0_i32_1 = arith.constant 0 : i32
    %c0_i32_2 = arith.constant 0 : i32
    return %c0_i32, %c0_i32_0, %c0_i32_1 : i32, i32, i32
  }
  func.func @transform_3(%arg0: i32, %arg1: i32) -> (i32, i32) {
    %c0_i32 = arith.constant 0 : i32
    %c0_i32_0 = arith.constant 0 : i32
    %c0_i32_1 = arith.constant 0 : i32
    return %c0_i32, %c0_i32_0 : i32, i32
  }
  func.func @transform_4(%arg0: i32, %arg1: i32) -> (i32, i32) {
    %c0_i32 = arith.constant 0 : i32
    %c0_i32_0 = arith.constant 0 : i32
    %c0_i32_1 = arith.constant 0 : i32
    return %c0_i32, %c0_i32_0 : i32, i32
  }
  func.func @transform_5(%arg0: i32, %arg1: i32) -> (i32, i32, i32) {
    %c0_i32 = arith.constant 0 : i32
    %c0_i32_0 = arith.constant 0 : i32
    return %arg0, %c0_i32, %arg1 : i32, i32, i32
  }
}

</mosaic_0001>

<bundles_post_ra>
// kernel: basic_conv2d.1
= control target key start
LH: loop header
LB: loop body
LE: loop exit
PB: predicated region body
PF: predicated region fallthrough
CT: control target
= control target key end

     0   :  { %s4140_s18 = smov 0   ;;  %s4142_s19 = smov 0   ;;  %s5181_s0 = inlined_call_operand.vmem [shape: bf16[2,342,4], index: 0, kind: input, shape index: {}, may-alias: {0,1}]   ;;  %s5182_s1 = inlined_call_operand.vmem [shape: bf16[2,342,4], index: 1, kind: input, shape index: {}, may-alias: {0,1}]   ;;  %s5183_s2 = inlined_call_operand.vmem [shape: bf16[9,4,128], index: 2, kind: input, shape index: {}]   ;;  %s5184_s3 = inlined_call_operand.vmem [shape: f32[1,128], index: 3, kind: input, shape index: {}]   ;;  %s5185_s4 = inlined_call_operand.vmem [shape: f32[1,128], index: 4, kind: input, shape index: {}]   ;;  %s5186_s5 = inlined_call_operand.vmem [shape: bf16[2,8,256], index: 5, kind: output, shape index: {}]  }
   0x1   :  { %s4144_s20 = smov 0  }
   0x2 LB: > { %s27_s21 = sadd.s32 1, %s4104_s19  ;;  %p3553_p0 = scmp.ge.s32.totalorder %s4108_s20, 1  ;;  %s4108_s20 = sphi %s4144_s20, %s15_s20   ;;  %s4104_s19 = sphi %s4142_s19, %s5215_s19   ;;  %s4100_s18 = sphi %s4140_s18, %s5214_s18  }
   0x3   : > { %p29_p1 = scmp.ge.s32.totalorder %s27_s21, 2  ;;  %p249_p2 = scmp.lt.s32.totalorder %s4108_s20, 3 }
   0x5   : > { %s5217_s21 = smov (%p29_p1, %s27_s21), 0  ;;  %p250_p3 = pnand %p3553_p0, %p249_p2 }
   0x7   : > { %253 = sbr.rel (%p250_p3) target bundleno = 891 (0x37b), region = 40 }
   0xc   : > { %v3558_v0 = vld [vmem:[%s5183_s2 + $0x2] sm:$0x3]  ;;  %vm777_vm0 = vcmask 1041408   ;;  %p309_p4 = scmp.lt.s32.totalorder %s4100_s18, 1  ;;  %v3663_v2 = vld [vmem:[%s5183_s2 + $0x4] sm:$0x3] }
   0xd   : > { %v779_v1 = vsel %vm777_vm0, %v3558_v0, 0  ;;  %v1117_v3 = vsel %vm777_vm0, %v3663_v2, 0  ;;  %v476_v4 = vld [vmem:[%s5183_s2] sm:$0x3]  ;;  %v3769_v5 = vld [vmem:[%s5183_s2 + $0x8] sm:$0x3] }
   0xe   : > { %3995 = vmatpush.bf16.msra.mxu1 %v779_v1  ;;  %3996 = vmatpush.bf16.msra.mxu2 %v779_v1  ;;  %s5219_s18 = smov (!%p309_p4, %s4100_s18), 1  ;;  %v917_v6 = vsel %vm777_vm0, %v476_v4, 0  ;;  %v1847_v7 = vsel %vm777_vm0, %v3769_v5, 0  ;;  %vm391_vm1 = vcmask 27648   ;;  %vm573_vm2 = vsmask.f32 7424 }
   0xf   : > { %788 = vmatpush.bf16.msra.mxu0 %v779_v1  ;;  %s3998_s30 = smul.u32 172, %s5219_s18  ;;  %3997 = vmatpush.bf16.msra.mxu3 %v779_v1  ;;  %vm722_vm3 = vcmask 31744   ;;  %vm1024_vm4 = vcmask 1046528   ;;  %vm1621_vm5 = vsmask.f32 6400  ;;  %vm1990_vm7 = vcmask 1045504  }
  0x10   : > { %vm2587_vm6 = vsmask.f32 5376  ;;  %vm2956_vm8 = vcmask 1044480   ;;  %s3936_s10 = sshll.u32 %s5219_s18, 3 }
  0x11   : > { %s4182_s8 = scalar_lea.vmem %s5181_s0, %s3998_s30  ;;  %s3935_s11 = sadd.s32 144, %s3998_s30 }
  0x12   : > { %1126 = vmatpush.bf16.msrb.mxu2 %v1117_v3  ;;  %926 = vmatpush.bf16.msrb.mxu1 %v917_v6  ;;  %v365_v8 = vld [vmem:[%s4182_s8 + $0x28] sm:$0xf]  ;;  %v366_v9 = vld [vmem:[%s4182_s8 + $0x2c] sm:$0xf]  ;;  %v367_v10 = vld [vmem:[%s4182_s8 + $0x30] sm:$0xf]  ;;  %s4313_s14 = scalar_lea.vmem %s5182_s1, %s3935_s11  ;;  %s352_s13 = scalar_lea.vmem %s5186_s5, %s3936_s10 }
  0x13   : > { %1856 = vmatpush.bf16.msrb.mxu0 %v1847_v7  ;;  %v368_v11 = vld [vmem:[%s4182_s8 + $0x34] sm:$0xf]  ;;  %402 = vst.msk [vmem:[#allocation2 + $0x28] sm:$0xf] %vm391_vm1, %v365_v8  ;;  %v375_v12 = vld [vmem:[%s4182_s8 + $0x50] sm:$0xf] }
  0x14   : > { %403 = vst.msk [vmem:[#allocation2 + $0x2c] sm:$0xf] %vm391_vm1, %v366_v9  ;;  %v376_v13 = vld [vmem:[%s4182_s8 + $0x54] sm:$0xf]  ;;  %v377_v14 = vld [vmem:[%s4182_s8 + $0x58] sm:$0xf] }
  0x15   : > { %404 = vst.msk [vmem:[#allocation2 + $0x30] sm:$0xf] %vm391_vm1, %v367_v10  ;;  %v378_v15 = vld [vmem:[%s4182_s8 + $0x5c] sm:$0xf]  ;;  %v355_v16 = vld [vmem:[%s4182_s8] sm:$0xf] }
  0x16   : > { %405 = vst.msk [vmem:[#allocation2 + $0x34] sm:$0xf] %vm391_vm1, %v368_v11  ;;  %v356_v17 = vld [vmem:[%s4182_s8 + $0x4] sm:$0xf]  ;;  %v357_v18 = vld [vmem:[%s4182_s8 + $0x8] sm:$0xf] }
  0x17   : > { %412 = vst.msk [vmem:[#allocation2 + $0x50] sm:$0xf] %vm391_vm1, %v375_v12  ;;  %v358_v19 = vld [vmem:[%s4182_s8 + $0xc] sm:$0xf]  ;;  %v369_v21 = vld [vmem:[%s4182_s8 + $0x38] sm:$0xf] }
  0x18   : > { %413 = vst.msk [vmem:[#allocation2 + $0x54] sm:$0xf] %vm391_vm1, %v376_v13  ;;  %v370_v22 = vld [vmem:[%s4182_s8 + $0x3c] sm:$0xf]  ;;  %v379_v23 = vld [vmem:[%s4182_s8 + $0x60] sm:$0xf] }
  0x19   : > { %414 = vst.msk [vmem:[#allocation2 + $0x58] sm:$0xf] %vm391_vm1, %v377_v14  ;;  %v380_v27 = vld [vmem:[%s4182_s8 + $0x64] sm:$0xf]  ;;  %v359_v28 = vld [vmem:[%s4182_s8 + $0x10] sm:$0xf] }
  0x1a   : > { %415 = vst.msk [vmem:[#allocation2 + $0x5c] sm:$0xf] %vm391_vm1, %v378_v15  ;;  %v360_v32 = vld [vmem:[%s4182_s8 + $0x14] sm:$0xf]  ;;  %v385_v33 = vld [vmem:[%s4182_s8 + $0x78] sm:$0xf] }
  0x1b   : > { %v4204_v20 = vld [vmem:[#allocation2 + $0x28] sm:$0xff]  ;;  %392 = vst.msk [vmem:[#allocation2] sm:$0xf] %vm391_vm1, %v355_v16  ;;  %v386_v39 = vld [vmem:[%s4182_s8 + $0x7c] sm:$0xf] }
  0x1c   : > { %393 = vst.msk [vmem:[#allocation2 + $0x4] sm:$0xf] %vm391_vm1, %v356_v17  ;;  %v614_v25 = vshll.u32 %v4204_v20, 16  ;;  %v618_v26 = vshrl.u32 %v4204_v20, 16  ;;  %v387_v40 = vld [vmem:[%s4182_s8 + $0x80] sm:$0xf] }
  0x1d   : > { %v4211_v24 = vld [vmem:[#allocation2 + $0x30] sm:$0xff]  ;;  %394 = vst.msk [vmem:[#allocation2 + $0x8] sm:$0xf] %vm391_vm1, %v357_v18  ;;  %v388_v47 = vld [vmem:[%s4182_s8 + $0x84] sm:$0xf] }
  0x1e   : > { %395 = vst.msk [vmem:[#allocation2 + $0xc] sm:$0xf] %vm391_vm1, %v358_v19  ;;  %v4219_v29 = vrot.slane %v614_v25, 1  ;;  %v622_v30 = vshll.u32 %v4211_v24, 16  ;;  %v371_v51 = vld [vmem:[%s4182_s8 + $0x40] sm:$0xf] }
  0x1f   : > { %v4222_v31 = vld [vmem:[#allocation2 + $0x50] sm:$0xff]  ;;  %406 = vst.msk [vmem:[#allocation2 + $0x38] sm:$0xf] %vm391_vm1, %v369_v21  ;;  %v372_v53 = vld [vmem:[%s4182_s8 + $0x44] sm:$0xf]  ;;  %v626_v57 = vshrl.u32 %v4211_v24, 16 }
  0x20   : > { %407 = vst.msk [vmem:[#allocation2 + $0x3c] sm:$0xf] %vm391_vm1, %v370_v22  ;;  %v620_v34 = vor.u32 %v618_v26, %v4219_v29  ;;  %v624_v35 = vrot.slane %v622_v30, 1  ;;  %v654_v37 = vshll.u32 %v4222_v31, 16  ;;  %v658_v38 = vshrl.u32 %v4222_v31, 16 }
  0x21   : > { %v4229_v36 = vld [vmem:[#allocation2 + $0x58] sm:$0xff]  ;;  %416 = vst.msk [vmem:[#allocation2 + $0x60] sm:$0xf] %vm391_vm1, %v379_v23  ;;  %v381_v59 = vld [vmem:[%s4182_s8 + $0x68] sm:$0xf] }
  0x22   : > { %417 = vst.msk [vmem:[#allocation2 + $0x64] sm:$0xf] %vm391_vm1, %v380_v27  ;;  %v625_v41 = vsel %vm573_vm2, %v620_v34, %v624_v35  ;;  %v4238_v42 = vrot.slane %v654_v37, 1  ;;  %v662_v43 = vshll.u32 %v4229_v36, 16  ;;  %v382_v60 = vld [vmem:[%s4182_s8 + $0x6c] sm:$0xf]  ;;  %v628_v5 = vor.u32 %v626_v57, %v624_v35 }
  0x23   : > { %v4241_v44 = vld [vmem:[#allocation2] sm:$0xff]   ;;  %396 = vst.msk [vmem:[#allocation2 + $0x10] sm:$0xf] %vm391_vm1, %v359_v28  ;;  %3632 = vmatmul.msk.bf16.vlgmr.msra.gmra.mxu1 %vm722_vm3, %v625_v41  ;;  %v361_v0 = vld [vmem:[%s4182_s8 + $0x18] sm:$0xf]  ;;  %v666_v7 = vshrl.u32 %v4229_v36, 16 }
  0x24   : > { %v575_v45 = vshrl.u32 %v4241_v44, 16  ;;  %v577_v46 = vshll.u32 %v4241_v44, 16  ;;  %397 = vst.msk [vmem:[#allocation2 + $0x14] sm:$0xf] %vm391_vm1, %v360_v32  ;;  %v660_v48 = vor.u32 %v658_v38, %v4238_v42  ;;  %v664_v49 = vrot.slane %v662_v43, 1 }
  0x25   : > { %v4250_v50 = vld [vmem:[#allocation2 + $0x8] sm:$0xff]  ;;  %422 = vst.msk [vmem:[#allocation2 + $0x78] sm:$0xf] %vm391_vm1, %v385_v33  ;;  %v362_v1 = vld [vmem:[%s4182_s8 + $0x1c] sm:$0xf] }
  0x26   : > { %v579_v52 = vrot.slane %v577_v46, 1  ;;  %423 = vst.msk [vmem:[#allocation2 + $0x7c] sm:$0xf] %vm391_vm1, %v386_v39  ;;  %v665_v54 = vsel %vm573_vm2, %v660_v48, %v664_v49  ;;  %v582_v55 = vshll.u32 %v4250_v50, 16  ;;  %v389_v3 = vld [vmem:[%s4182_s8 + $0x88] sm:$0xf]  ;;  %v668_v19 = vor.u32 %v666_v7, %v664_v49 }
  0x27   : > { %v4258_v56 = vld [vmem:[#allocation2 + $0x38] sm:$0xff]  ;;  %424 = vst.msk [vmem:[#allocation2 + $0x80] sm:$0xf] %vm391_vm1, %v387_v40  ;;  %3637 = vmatmul.msk.bf16.vlgmr.msra.gmra.mxu2 %vm722_vm3, %v665_v54  ;;  %v390_v4 = vld [vmem:[%s4182_s8 + $0x8c] sm:$0xf]  ;;  %v586_v14 = vshrl.u32 %v4250_v50, 16 }
  0x28   : > { %v580_v58 = vor.u32 %v579_v52, %v575_v45  ;;  %425 = vst.msk [vmem:[#allocation2 + $0x84] sm:$0xf] %vm391_vm1, %v388_v47  ;;  %v584_v61 = vrot.slane %v582_v55, 1  ;;  %v630_v62 = vshll.u32 %v4258_v56, 16  ;;  %v3682_v8 = vld [vmem:[%s5183_s2 + $0x6] sm:$0x3] }
  0x29   : > { %v4267_v63 = vld [vmem:[#allocation2 + $0x60] sm:$0xff]  ;;  %408 = vst.msk [vmem:[#allocation2 + $0x40] sm:$0xf] %vm391_vm1, %v371_v51  ;;  %v1478_v12 = vsel %vm777_vm0, %v3682_v8, 0  ;;  %v373_v13 = vld [vmem:[%s4182_s8 + $0x48] sm:$0xf] }
  0x2a   : > { %409 = vst.msk [vmem:[#allocation2 + $0x44] sm:$0xf] %vm391_vm1, %v372_v53  ;;  %v585_v2 = vsel %vm573_vm2, %v580_v58, %v584_v61  ;;  %v632_v6 = vrot.slane %v630_v62, 1  ;;  %v670_v9 = vshll.u32 %v4267_v63, 16  ;;  %1487 = vmatpush.bf16.msrb.mxu3 %v1478_v12  ;;  %v374_v21 = vld [vmem:[%s4182_s8 + $0x4c] sm:$0xf]  ;;  %v588_v37 = vor.u32 %v586_v14, %v584_v61 }
  0x2b   : > { %418 = vst.msk [vmem:[#allocation2 + $0x68] sm:$0xf] %vm391_vm1, %v381_v59  ;;  %3627 = vmatmul.msk.bf16.vlgmr.msra.gmra.mxu0 %vm722_vm3, %v585_v2  ;;  %v4284_v10 = vld [vmem:[#allocation2 + $0x10] sm:$0xff]  ;;  %v363_v33 = vld [vmem:[%s4182_s8 + $0x20] sm:$0xf]  ;;  %v634_v46 = vshrl.u32 %v4258_v56, 16 }
  0x2c   : > { %419 = vst.msk [vmem:[#allocation2 + $0x6c] sm:$0xf] %vm391_vm1, %v382_v60  ;;  %v633_v18 = vsel %vm573_vm2, %v628_v5, %v632_v6  ;;  %v383_v22 = vld [vmem:[%s4182_s8 + $0x70] sm:$0xf]  ;;  %v672_v23 = vrot.slane %v670_v9, 1  ;;  %v590_v25 = vshll.u32 %v4284_v10, 16 }
  0x2d   : > { %v4286_v11 = vld [vmem:[#allocation2 + $0x78] sm:$0xff]  ;;  %398 = vst.msk [vmem:[#allocation2 + $0x18] sm:$0xf] %vm391_vm1, %v361_v0  ;;  %v384_v28 = vld [vmem:[%s4182_s8 + $0x74] sm:$0xf]  ;;  %v636_v52 = vor.u32 %v634_v46, %v632_v6  ;;  %v674_v54 = vshrl.u32 %v4267_v63, 16 }
  0x2e   : > { %399 = vst.msk [vmem:[#allocation2 + $0x1c] sm:$0xf] %vm391_vm1, %v362_v1  ;;  %v694_v16 = vshll.u32 %v4286_v11, 16  ;;  %v698_v17 = vshrl.u32 %v4286_v11, 16  ;;  %v364_v34 = vld [vmem:[%s4182_s8 + $0x24] sm:$0xf]  ;;  %v673_v35 = vsel %vm573_vm2, %v668_v19, %v672_v23 }
  0x2f   : > { %v3952_v15 = vld [vmem:[#allocation2 + $0x80] sm:$0xff]  ;;  %426 = vst.msk [vmem:[#allocation2 + $0x88] sm:$0xf] %vm391_vm1, %v389_v3  ;;  %v592_v38 = vrot.slane %v590_v25, 1  ;;  %v594_v61 = vshrl.u32 %v4284_v10, 16  ;;  %v676_v1 = vor.u32 %v674_v54, %v672_v23 }
  0x30   : > { %427 = vst.msk [vmem:[#allocation2 + $0x8c] sm:$0xf] %vm391_vm1, %v390_v4  ;;  %v4303_v26 = vrot.slane %v694_v16, 1  ;;  %v702_v27 = vshll.u32 %v3952_v15, 16  ;;  %v428_v41 = vld [vmem:[%s4313_s14] sm:$0xf] }
  0x31   : > { %410 = vst.msk [vmem:[#allocation2 + $0x48] sm:$0xf] %vm391_vm1, %v373_v13  ;;  %v4321_v40 = vld [vmem:[#allocation2 + $0x40] sm:$0xff]  ;;  %v593_v45 = vsel %vm573_vm2, %v588_v37, %v592_v38  ;;  %v706_v49 = vshrl.u32 %v3952_v15, 16  ;;  %v596_v8 = vor.u32 %v594_v61, %v592_v38  ;;  %v3788_v61 = vld [vmem:[%s5183_s2 + $0xa] sm:$0x3] }
  0x32   : > { %411 = vst.msk [vmem:[#allocation2 + $0x4c] sm:$0xf] %vm391_vm1, %v374_v21  ;;  %v700_v30 = vor.u32 %v698_v17, %v4303_v26  ;;  %v704_v32 = vrot.slane %v702_v27, 1  ;;  %v638_v47 = vshll.u32 %v4321_v40, 16  ;;  %v642_v17 = vshrl.u32 %v4321_v40, 16 }
  0x33   : > { %420 = vst.msk [vmem:[#allocation2 + $0x70] sm:$0xf] %vm391_vm1, %v383_v22  ;;  %3633 = vmatmul.msk.bf16.gmra.mxu1 %vm722_vm3, %v633_v18  ;;  %v4332_v48 = vld [vmem:[#allocation2 + $0x68] sm:$0xff] }
  0x34   : > { %421 = vst.msk [vmem:[#allocation2 + $0x74] sm:$0xf] %vm391_vm1, %v384_v28  ;;  %v705_v39 = vsel %vm573_vm2, %v700_v30, %v704_v32  ;;  %v640_v53 = vrot.slane %v638_v47, 1  ;;  %v678_v55 = vshll.u32 %v4332_v48, 16  ;;  %v708_v58 = vor.u32 %v706_v49, %v704_v32 }
  0x35   : > { %400 = vst.msk [vmem:[#allocation2 + $0x20] sm:$0xf] %vm391_vm1, %v363_v33  ;;  %3642 = vmatmul.msk.bf16.vlgmr.msra.gmra.mxu3 %vm722_vm3, %v705_v39  ;;  %v4337_v57 = vld [vmem:[#allocation2 + $0x18] sm:$0xff]  ;;  %v682_v30 = vshrl.u32 %v4332_v48, 16 }
  0x36   : > { %401 = vst.msk [vmem:[#allocation2 + $0x24] sm:$0xf] %vm391_vm1, %v364_v34  ;;  %v641_v0 = vsel %vm573_vm2, %v636_v52, %v640_v53  ;;  %v680_v2 = vrot.slane %v678_v55, 1  ;;  %v598_v3 = vshll.u32 %v4337_v57, 16  ;;  %v644_v27 = vor.u32 %v642_v17, %v640_v53  ;;  %v3954_v55 = vld [vmem:[#allocation2 + $0x10] sm:$0xff]  ;;  %v3955_v17 = vld [vmem:[#allocation2 + $0x18] sm:$0xff] }
  0x37   : > { %v3953_v43 = vld [vmem:[#allocation2 + $0x88] sm:$0xff]  ;;  %434 = vst.msk [vmem:[#allocation2 + $0x90] sm:$0xf] %vm391_vm1, %v428_v41  ;;  %3638 = vmatmul.msk.bf16.gmra.mxu2 %vm722_vm3, %v673_v35  ;;  %v602_v39 = vshrl.u32 %v4337_v57, 16 }
  0x38   : > { %v710_v51 = vshll.u32 %v3953_v43, 16  ;;  %v681_v7 = vsel %vm573_vm2, %v676_v1, %v680_v2  ;;  %v600_v9 = vrot.slane %v598_v3, 1  ;;  %v714_v22 = vshrl.u32 %v3953_v43, 16  ;;  %v4370_v43 = vld [vmem:[#allocation2 + $0xc] sm:$0xf] }
  0x39   : > { %v4348_v12 = vld [vmem:[#allocation2 + $0x48] sm:$0xff]  ;;  %v684_v37 = vor.u32 %v682_v30, %v680_v2  ;;  %v5187_v49 = vunpack.c.l.b16 %v4370_v43  ;;  %v2083_v2 = vsel %vm777_vm0, %v3788_v61, 0  ;;  %v3913_v3 = vld [vmem:[%s5183_s2 + $0x10] sm:$0x3]  ;;  %v1026_v30 = vrot.slane %v4250_v50, 1 }
  0x3a   : > { %v712_v59 = vrot.slane %v710_v51, 1  ;;  %v601_v16 = vsel %vm573_vm2, %v596_v8, %v600_v9  ;;  %v646_v18 = vshll.u32 %v4348_v12, 16  ;;  %v604_v46 = vor.u32 %v602_v39, %v600_v9  ;;  %v3807_v51 = vld [vmem:[%s5183_s2 + $0xc] sm:$0x3]  ;;  %2092 = vmatpush.bf16.msra.mxu1 %v2083_v2 }
  0x3b   : > { %3628 = vmatmul.msk.bf16.gmra.mxu0 %vm722_vm3, %v593_v45  ;;  %v4358_v19 = vld [vmem:[#allocation2 + $0x70] sm:$0xff]  ;;  %v650_v53 = vshrl.u32 %v4348_v12, 16  ;;  %v2444_v54 = vsel %vm777_vm0, %v3807_v51, 0 }
  0x3c   : > { %v713_v4 = vsel %vm573_vm2, %v708_v58, %v712_v59  ;;  %v648_v28 = vrot.slane %v646_v18, 1  ;;  %v686_v32 = vshll.u32 %v4358_v19, 16  ;;  %v716_v33 = vor.u32 %v714_v22, %v712_v59  ;;  %2453 = vmatpush.bf16.msra.mxu2 %v2444_v54  ;;  %v3894_v59 = vld [vmem:[%s5183_s2 + $0xe] sm:$0x3] }
  0x3d   : > { %v4339_v60 = vld [vmem:[#allocation2 + $0x20] sm:$0xff]  ;;  %v2813_v1 = vsel %vm777_vm0, %v3894_v59, 0  ;;  %v1631_v22 = vshrl.u32 %v3954_v55, 16 }
  0x3e   : > { %v477_v62 = vld [vmem:[#allocation2 + $0x90] sm:$0x1]  ;;  %v606_v5 = vshll.u32 %v4339_v60, 16  ;;  %v610_v15 = vshrl.u32 %v4339_v60, 16  ;;  %v649_v35 = vsel %vm573_vm2, %v644_v27, %v648_v28  ;;  %v688_v38 = vrot.slane %v686_v32, 1  ;;  %2822 = vmatpush.bf16.msra.mxu3 %v2813_v1 }
  0x3f   : > { %v553_v6 = vunpack.c.l.b16 %v477_v62  ;;  %v652_v62 = vor.u32 %v650_v53, %v648_v28  ;;  %v1389_v27 = vrot.slane %v3955_v17, 1 }
  0x40   : > { %v608_v13 = vrot.slane %v606_v5, 1  ;;  %v689_v45 = vsel %vm573_vm2, %v684_v37, %v688_v38 }
  0x41   : > { %v4351_v14 = vpack.c.b16 %v553_v6, %v553_v6  ;;  %v1387_v6 = vrot.slane %v3954_v55, 1 }
  0x42   : > { %v612_v21 = vor.u32 %v610_v15, %v608_v13  ;;  %v609_v52 = vsel %vm573_vm2, %v604_v46, %v608_v13  ;;  %v3992_v15 = vld [vmem:[#allocation2] sm:$0xf0] }
  0x43   : > { %3634 = vmatmul.msk.bf16.gmra.mxu1 %vm722_vm3, %v641_v0  ;;  %v718_v23 = vshll.u32 %v4351_v14, 16  ;;  %v690_v0 = vshrl.u32 %v4358_v19, 16 }
  0x44   : > { %v617_v25 = vsel %vm573_vm2, %v612_v21, %v4219_v29  ;;  %v1254_v29 = vld [vmem:[#allocation2 + $0x8] sm:$0xe] }
  0x45   : > { %3643 = vmatmul.msk.bf16.gmra.mxu3 %vm722_vm3, %v713_v4  ;;  %v720_v34 = vrot.slane %v718_v23, 1  ;;  %v1330_v47 = vunpack.c.l.b16 %v1254_v29  ;;  %v3049_v4 = vsel %vm777_vm0, %v3913_v3, 0  ;;  %v692_v8 = vor.u32 %v690_v0, %v688_v38 }
  0x46   : > { %3058 = vmatpush.bf16.msra.mxu0 %v3049_v4  ;;  %v1634_v23 = vshll.u32 %v3954_v55, 16  ;;  %v1640_v29 = vshrl.u32 %v3955_v17, 16  ;;  %v1030_v0 = vrot.slane %v4337_v57, 1 }
  0x47   : > { %3639 = vmatmul.msk.bf16.gmra.mxu2 %vm722_vm3, %v681_v7  ;;  %v721_v41 = vsel %vm573_vm2, %v716_v33, %v720_v34  ;;  %v1367_v58 = vpack.c.b16 %v5187_v49, %v1330_v47  ;;  %v657_v7 = vsel %vm573_vm2, %v652_v62, %v4238_v42  ;;  %v697_v13 = vsel %vm573_vm2, %v692_v8, %v4303_v26 }
  0x48   : > { %v1633_v33 = vrot.slane %v1631_v22, 1  ;;  %v1636_v34 = vrot.slane %v1634_v23, 2  ;;  %v1028_v47 = vrot.slane %v4284_v10, 1 }
  0x49   : > { %v1386_v5 = vrot.slane %v1367_v58, 1  ;;  %v1623_v21 = vshrl.u32 %v1367_v58, 16  ;;  %v1626_v42 = vshll.u32 %v1367_v58, 16  ;;  %v3957_v58 = vld [vmem:[#allocation2 + $0x28] sm:$0xff] }
  0x4a   : > { %v1637_v38 = vor.u32 %v1636_v34, %v1633_v33  ;;  %v1029_v53 = vsel %vm1024_vm4, %v1026_v30, %v1028_v47  ;;  %v1393_v62 = vrot.slane %v3957_v58, 1  ;;  %v1031_v3 = vsel %vm1024_vm4, %v1028_v47, %v1030_v0 }
  0x4b   : > { %3629 = vmatmul.msk.bf16.gmra.mxu0 %vm722_vm3, %v601_v16  ;;  %v1388_v9 = vsel %vm1024_vm4, %v1386_v5, %v1387_v6  ;;  %v3993_v16 = vld [vmem:[#allocation2] sm:$0xe]  ;;  %v1625_v32 = vrot.slane %v1623_v21, 1  ;;  %v1628_v26 = vrot.slane %v1626_v42, 2  ;;  %v1661_v8 = vshll.u32 %v3957_v58, 16 }
  0x4c   : > { %v3994_v18 = vor.u32 %v3993_v16, %v3992_v15  ;;  %v1032_v15 = vrot.slane %v4339_v60, 1  ;;  %v1034_v34 = vrot.slane %v4204_v20, 1 }
  0x4d   : > { %v1629_v37 = vor.u32 %v1628_v26, %v1625_v32  ;;  %v1663_v16 = vrot.slane %v1661_v8, 2  ;;  %v3961_v8 = vld [vmem:[#allocation2 + $0x48] sm:$0xff] }
  0x4e   : > { %v1025_v28 = vrot.slane %v3994_v18, 1  ;;  %v1033_v18 = vsel %vm1024_vm4, %v1030_v0, %v1032_v15 }
  0x4f   : > { %v1638_v39 = vsel %vm1621_vm5, %v1629_v37, %v1637_v38 }
  0x53   : > { %3635 = vmatmul.msk.bf16.gmra.mxu1 %vm722_vm3, %v649_v35  ;;  %v1390_v35 = vsel %vm1024_vm4, %v1387_v6, %v1389_v27  ;;  %v3958_v6 = vld [vmem:[#allocation2 + $0x30] sm:$0xff] }
  0x55   : > { %3644 = vmatmul.msk.bf16.gmra.mxu3 %vm722_vm3, %v721_v41  ;;  %v3956_v41 = vld [vmem:[#allocation2 + $0x20] sm:$0xff] }
  0x56   : > { %v1391_v46 = vrot.slane %v3956_v41, 1  ;;  %v1649_v59 = vshrl.u32 %v3956_v41, 16  ;;  %v1652_v61 = vshll.u32 %v3956_v41, 16 }
  0x57   : > { %3640 = vmatmul.msk.bf16.gmra.mxu2 %vm722_vm3, %v689_v45  ;;  %v1643_v45 = vshll.u32 %v3955_v17, 16 }
  0x58   : > { %v1651_v1 = vrot.slane %v1649_v59, 1  ;;  %v1654_v2 = vrot.slane %v1652_v61, 2 }
  0x59   : > { %v1645_v51 = vrot.slane %v1643_v45, 2 }
  0x5a   : > { %v1655_v4 = vor.u32 %v1654_v2, %v1651_v1 }
  0x5b   : > { %3630 = vmatmul.msk.bf16.gmra.mxu0 %vm722_vm3, %v609_v52  ;;  %v1392_v52 = vsel %vm1024_vm4, %v1389_v27, %v1391_v46 }
  0x63   : > { %3636 = vmatmul.msk.bf16.gmra.mxu1 %vm722_vm3, %v657_v7  ;;  %v1658_v7 = vshrl.u32 %v3957_v58, 16  ;;  %v1036_v58 = vrot.slane %v4211_v24, 1 }
  0x65   : > { %3751 = vmatmul.msk.bf16.vlgmr.msrb.gmra.mxu3 %vm722_vm3, %v1388_v9  ;;  %v1395_v9 = vrot.slane %v3958_v6, 1  ;;  %v1037_v2 = vsel %vm1024_vm4, %v1034_v34, %v1036_v58 }
  0x67   : > { %3641 = vmatmul.msk.bf16.gmra.mxu2 %vm722_vm3, %v697_v13  ;;  %v1396_v17 = vsel %vm1024_vm4, %v1393_v62, %v1395_v9 }
  0x6b   : > { %3631 = vmatmul.msk.bf16.gmra.mxu0 %vm722_vm3, %v617_v25  ;;  %v1027_v25 = vsel %vm1024_vm4, %v1025_v28, %v1026_v30  ;;  %v3959_v28 = vld [vmem:[#allocation2 + $0x38] sm:$0xff]  ;;  %v1667_v30 = vshrl.u32 %v3958_v6, 16 }
  0x6c   : > { %v1397_v32 = vrot.slane %v3959_v28, 1 }
  0x73   : > { %3645 = vmatmul.msk.bf16.vlgmr.msrb.gmra.mxu1 %vm722_vm3, %v4241_v44  ;;  %v1642_v44 = vrot.slane %v1640_v29, 1 }
  0x75   : > { %3752 = vmatmul.msk.bf16.gmra.mxu3 %vm722_vm3, %v1390_v35  ;;  %v1646_v54 = vor.u32 %v1645_v51, %v1642_v44  ;;  %v1669_v35 = vrot.slane %v1667_v30, 1  ;;  %v3960_v51 = vld [vmem:[#allocation2 + $0x40] sm:$0xff] }
  0x77   : > { %3664 = vmatmul.msk.bf16.vlgmr.msrb.gmra.mxu2 %vm722_vm3, %v1027_v25  ;;  %v1647_v55 = vsel %vm1621_vm5, %v1637_v38, %v1646_v54  ;;  %v1656_v5 = vsel %vm1621_vm5, %v1646_v54, %v1655_v4  ;;  %v1398_v38 = vsel %vm1024_vm4, %v1395_v9, %v1397_v32  ;;  %v1688_v9 = vshll.u32 %v3960_v51, 16 }
  0x7b   : > { %3770 = vmatmul.msk.bf16.vlgmr.msrb.gmra.mxu0 %vm722_vm3, %v1638_v39  ;;  %v1035_v39 = vsel %vm1024_vm4, %v1032_v15, %v1034_v34  ;;  %v1401_v15 = vrot.slane %v3961_v8, 1 }
  0x83   : > { %3646 = vmatmul.msk.bf16.gmra.mxu1 %vm722_vm3, %v4250_v50  ;;  %v1394_v50 = vsel %vm1024_vm4, %v1391_v46, %v1393_v62 }
  0x85   : > { %3753 = vmatmul.msk.bf16.gmra.mxu3 %vm722_vm3, %v1392_v52  ;;  %v1679_v52 = vshll.u32 %v3959_v28, 16 }
  0x87   : > { %3665 = vmatmul.msk.bf16.gmra.mxu2 %vm722_vm3, %v1029_v53  ;;  %v1399_v53 = vrot.slane %v3960_v51, 1  ;;  %v1681_v61 = vrot.slane %v1679_v52, 2 }
  0x89   : > { %v1400_v1 = vsel %vm1024_vm4, %v1397_v32, %v1399_v53  ;;  %v1402_v30 = vsel %vm1024_vm4, %v1399_v53, %v1401_v15  ;;  %v1040_v53 = vrot.slane %v4321_v40, 1 }
  0x8b   : > { %3771 = vmatmul.msk.bf16.gmra.mxu0 %vm722_vm3, %v1647_v55 }
  0x93   : > { %3647 = vmatmul.msk.bf16.gmra.mxu1 %vm722_vm3, %v4284_v10  ;;  %v1660_v10 = vrot.slane %v1658_v7, 1 }
  0x95   : > { %3754 = vmatmul.msk.bf16.gmra.mxu3 %vm722_vm3, %v1394_v50  ;;  %v1664_v21 = vor.u32 %v1663_v16, %v1660_v10 }
  0x97   : > { %3666 = vmatmul.msk.bf16.gmra.mxu2 %vm722_vm3, %v1031_v3  ;;  %v1665_v22 = vsel %vm1621_vm5, %v1655_v4, %v1664_v21 }
  0x9b   : > { %3772 = vmatmul.msk.bf16.gmra.mxu0 %vm722_vm3, %v1656_v5 }
  0xa0   : > { %v4434_v13 = vpop.f32.mrf.mxu1 }
  0xa3   : > { %3648 = vmatmul.msk.bf16.gmra.mxu1 %vm722_vm3, %v4337_v57  ;;  %v1670_v57 = vshll.u32 %v3958_v6, 16 }
  0xa5   : > { %3755 = vmatmul.msk.bf16.gmra.mxu3 %vm722_vm3, %v1396_v17  ;;  %v1672_v25 = vrot.slane %v1670_v57, 2  ;;  %v1038_v17 = vrot.slane %v4258_v56, 1 }
  0xa7   : > { %3667 = vmatmul.msk.bf16.gmra.mxu2 %vm722_vm3, %v1033_v18  ;;  %v1673_v41 = vor.u32 %v1672_v25, %v1669_v35  ;;  %v1039_v57 = vsel %vm1024_vm4, %v1036_v58, %v1038_v17 }
  0xa8   : > { %v4443_v42 = vpop.f32.mrf.mxu0  ;;  %v4446_v23 = vpop.f32.mrf.mxu1 }
  0xa9   : > { %v1674_v45 = vsel %vm1621_vm5, %v1664_v21, %v1673_v41  ;;  %v1690_v21 = vrot.slane %v1688_v9, 2 }
  0xaa   : > { %v4448_v27 = vpop.f32.mrf.mxu2 }
  0xab   : > { %3773 = vmatmul.msk.bf16.gmra.mxu0 %vm722_vm3, %v1665_v22 }
  0xb0   : > { %v4451_v26 = vpop.f32.mrf.mxu0  ;;  %v4453_v33 = vpop.f32.mrf.mxu1 }
  0xb2   : > { %v4456_v37 = vpop.f32.mrf.mxu2 }
  0xb3   : > { %3649 = vmatmul.msk.bf16.gmra.mxu1 %vm722_vm3, %v4339_v60  ;;  %v1676_v60 = vshrl.u32 %v3959_v28, 16 }
  0xb5   : > { %3756 = vmatmul.msk.bf16.gmra.mxu3 %vm722_vm3, %v1398_v38  ;;  %v1678_v59 = vrot.slane %v1676_v60, 1 }
  0xb7   : > { %3668 = vmatmul.msk.bf16.gmra.mxu2 %vm722_vm3, %v1035_v39  ;;  %v1682_v50 = vor.u32 %v1681_v61, %v1678_v59 }
  0xb8   : > { %v4464_v29 = vpop.f32.mrf.mxu0  ;;  %v4467_v46 = vpop.f32.mrf.mxu1 }
  0xb9   : > { %v4469_v47 = vpop.f32.mrf.mxu3  ;;  %v1683_v4 = vsel %vm1621_vm5, %v1673_v41, %v1682_v50  ;;  %v3962_v41 = vld [vmem:[#allocation2 + $0x50] sm:$0xff] }
  0xba   : > { %5188 = vst [vmem:[#allocation4_spill] sm:$0xff] %v4469_v47  ;;  %v4471_v44 = vpop.f32.mrf.mxu2 }
  0xbb   : > { %3774 = vmatmul.msk.bf16.gmra.mxu0 %vm722_vm3, %v1674_v45  ;;  %v1697_v45 = vshll.u32 %v3961_v8, 16 }
  0xbd   : > { %v1699_v59 = vrot.slane %v1697_v45, 2 }
  0xc0   : > { %v4474_v54 = vpop.f32.mrf.mxu0  ;;  %v4476_v55 = vpop.f32.mrf.mxu1 }
  0xc1   : > { %v4479_v62 = vpop.f32.mrf.mxu3 }
  0xc2   : > { %5189 = vst [vmem:[#allocation5_spill] sm:$0xff] %v4479_v62  ;;  %v4481_v0 = vpop.f32.mrf.mxu2  ;;  %v1044_v62 = vrot.slane %v4222_v31, 1 }
  0xc3   : > { %3650 = vmatmul.msk.bf16.gmra.mxu1 %vm722_vm3, %v4204_v20  ;;  %v1685_v20 = vshrl.u32 %v3960_v51, 16  ;;  %v1403_v51 = vrot.slane %v3962_v41, 1 }
  0xc5   : > { %3757 = vmatmul.msk.bf16.gmra.mxu3 %vm722_vm3, %v1400_v1  ;;  %v1687_v18 = vrot.slane %v1685_v20, 1 }
  0xc7   : > { %3669 = vmatmul.msk.bf16.gmra.mxu2 %vm722_vm3, %v1037_v2  ;;  %v1691_v32 = vor.u32 %v1690_v21, %v1687_v18  ;;  %v1404_v2 = vsel %vm1024_vm4, %v1401_v15, %v1403_v51  ;;  %v3963_v15 = vld [vmem:[#allocation2 + $0x58] sm:$0xff] }
  0xc8   : > { %v4489_v3 = vpop.f32.mrf.mxu0  ;;  %v4492_v5 = vpop.f32.mrf.mxu1 }
  0xc9   : > { %v4494_v6 = vpop.f32.mrf.mxu3  ;;  %v1692_v35 = vsel %vm1621_vm5, %v1682_v50, %v1691_v32  ;;  %v1041_v50 = vsel %vm1024_vm4, %v1038_v17, %v1040_v53  ;;  %v1405_v17 = vrot.slane %v3963_v15, 1 }
  0xca   : > { %5190 = vst [vmem:[#allocation6_spill] sm:$0xff] %v4494_v6  ;;  %v4496_v7 = vpop.f32.mrf.mxu2  ;;  %v1715_v6 = vshll.u32 %v3963_v15, 16 }
  0xcb   : > { %3775 = vmatmul.msk.bf16.gmra.mxu0 %vm722_vm3, %v1683_v4 }
  0xcc   : > { %v1717_v47 = vrot.slane %v1715_v6, 2 }
  0xd0   : > { %v4499_v10 = vpop.f32.mrf.mxu0  ;;  %v4501_v16 = vpop.f32.mrf.mxu1 }
  0xd1   : > { %v4504_v22 = vpop.f32.mrf.mxu3 }
  0xd2   : > { %5191 = vst [vmem:[#allocation7_spill] sm:$0xff] %v4504_v22  ;;  %v4506_v28 = vpop.f32.mrf.mxu2  ;;  %v3964_v22 = vld [vmem:[#allocation2 + $0x60] sm:$0xff] }
  0xd3   : > { %3651 = vmatmul.msk.bf16.gmra.mxu1 %vm722_vm3, %v4211_v24  ;;  %v1694_v24 = vshrl.u32 %v3961_v8, 16 }
  0xd5   : > { %3758 = vmatmul.msk.bf16.gmra.mxu3 %vm722_vm3, %v1402_v30  ;;  %v1696_v58 = vrot.slane %v1694_v24, 1  ;;  %v1706_v30 = vshll.u32 %v3962_v41, 16  ;;  %v1042_v24 = vrot.slane %v4348_v12, 1 }
  0xd7   : > { %3670 = vmatmul.msk.bf16.gmra.mxu2 %vm722_vm3, %v1039_v57  ;;  %v1700_v4 = vor.u32 %v1699_v59, %v1696_v58  ;;  %v1708_v58 = vrot.slane %v1706_v30, 2 }
  0xd8   : > { %v4514_v34 = vpop.f32.mrf.mxu0  ;;  %v4517_v25 = vpop.f32.mrf.mxu1 }
  0xd9   : > { %v4519_v38 = vpop.f32.mrf.mxu3  ;;  %v1701_v20 = vsel %vm1621_vm5, %v1691_v32, %v1700_v4 }
  0xda   : > { %5192 = vst [vmem:[#allocation8_spill] sm:$0xff] %v4519_v38  ;;  %v4521_v39 = vpop.f32.mrf.mxu2 }
  0xdb   : > { %3776 = vmatmul.msk.bf16.gmra.mxu0 %vm722_vm3, %v1692_v35 }
  0xe0   : > { %v4524_v60 = vpop.f32.mrf.mxu0  ;;  %v4526_v52 = vpop.f32.mrf.mxu1 }
  0xe1   : > { %v4529_v61 = vpop.f32.mrf.mxu3 }
  0xe2   : > { %5193 = vst [vmem:[#allocation9_spill] sm:$0xff] %v4529_v61  ;;  %v4531_v1 = vpop.f32.mrf.mxu2 }
  0xe3   : > { %3652 = vmatmul.msk.bf16.gmra.mxu1 %vm722_vm3, %v4258_v56  ;;  %v1703_v56 = vshrl.u32 %v3962_v41, 16 }
  0xe5   : > { %3759 = vmatmul.msk.bf16.gmra.mxu3 %vm722_vm3, %v1404_v2  ;;  %v1705_v45 = vrot.slane %v1703_v56, 1  ;;  %v1406_v2 = vsel %vm1024_vm4, %v1403_v51, %v1405_v17 }
  0xe7   : > { %3671 = vmatmul.msk.bf16.gmra.mxu2 %vm722_vm3, %v1041_v50  ;;  %v1043_v50 = vsel %vm1024_vm4, %v1040_v53, %v1042_v24 }
  0xe8   : > { %v4539_v8 = vpop.f32.mrf.mxu0  ;;  %v4542_v9 = vpop.f32.mrf.mxu1 }
  0xe9   : > { %v1489_v18 = vpop.f32.mrf.mxu3 }
  0xea   : > { %v4544_v21 = vpop.f32.mrf.mxu2 }
  0xeb   : > { %5194 = vst [vmem:[#allocation10_spill] sm:$0xff] %v4544_v21  ;;  %3777 = vmatmul.msk.bf16.gmra.mxu0 %vm722_vm3, %v1701_v20  ;;  %v1709_v20 = vor.u32 %v1708_v58, %v1705_v45  ;;  %v1407_v45 = vrot.slane %v3964_v22, 1 }
  0xed   : > { %v1710_v49 = vsel %vm1621_vm5, %v1700_v4, %v1709_v20  ;;  %v1408_v21 = vsel %vm1024_vm4, %v1405_v17, %v1407_v45 }
  0xf0   : > { %v4547_v57 = vpop.f32.mrf.mxu0  ;;  %v928_v35 = vpop.f32.mrf.mxu1 }
  0xf1   : > { %v1491_v59 = vpop.f32.mrf.mxu3  ;;  %v929_v30 = vadd.f32 %v928_v35, %v4443_v42 }
  0xf2   : > { %v4550_v32 = vpop.f32.mrf.mxu2 }
  0xf3   : > { %5195 = vst [vmem:[#allocation11_spill] sm:$0xff] %v4550_v32  ;;  %3653 = vmatmul.msk.bf16.gmra.mxu1 %vm722_vm3, %v4321_v40  ;;  %v1712_v40 = vshrl.u32 %v3963_v15, 16 }
  0xf5   : > { %3760 = vmatmul.msk.bf16.gmra.mxu3 %vm722_vm3, %v1406_v2  ;;  %v1714_v4 = vrot.slane %v1712_v40, 1 }
  0xf7   : > { %3672 = vmatmul.msk.bf16.gmra.mxu2 %vm722_vm3, %v1043_v50 }
  0xf8   : > { %v1858_v41 = vpop.f32.mrf.mxu0  ;;  %v930_v56 = vpop.f32.mrf.mxu1 }
  0xf9   : > { %v1494_v61 = vpop.f32.mrf.mxu3  ;;  %v931_v42 = vadd.f32 %v930_v56, %v4451_v26 }
  0xfa   : > { %v1128_v38 = vpop.f32.mrf.mxu2 }
  0xfb   : > { %3778 = vmatmul.msk.bf16.gmra.mxu0 %vm722_vm3, %v1710_v49  ;;  %v1218_v51 = vadd.f32 %v1128_v38, %v929_v30  ;;  %v1045_v38 = vsel %vm1024_vm4, %v1042_v24, %v1044_v62  ;;  %v1724_v24 = vshll.u32 %v3964_v22, 16 }
  0xfd   : > { %v1579_v53 = vadd.f32 %v1489_v18, %v1218_v51  ;;  %v1718_v18 = vor.u32 %v1717_v47, %v1714_v4  ;;  %v3965_v51 = vld [vmem:[#allocation2 + $0x68] sm:$0xff]  ;;  %v1721_v47 = vshrl.u32 %v3964_v22, 16  ;;  %v1046_v4 = vrot.slane %v4229_v36, 1 }
  0xff   : > { %v4561_v58 = vadd.f32 %v1858_v41, %v1579_v53  ;;  %v1719_v26 = vsel %vm1621_vm5, %v1709_v20, %v1718_v18  ;;  %v1723_v20 = vrot.slane %v1721_v47, 1  ;;  %v1047_v22 = vsel %vm1024_vm4, %v1044_v62, %v1046_v4  ;;  %v3966_v47 = vld [vmem:[#allocation2 + $0x70] sm:$0xff] }
 0x100   : > { %v1860_v2 = vpop.f32.mrf.mxu0  ;;  %v933_v50 = vpop.f32.mrf.mxu1  ;;  %v1730_v62 = vshrl.u32 %v3965_v51, 16 }
 0x101   : > { %v1496_v35 = vpop.f32.mrf.mxu3  ;;  %v934_v17 = vadd.f32 %v933_v50, %v4464_v29 }
 0x102   : > { %v1130_v32 = vpop.f32.mrf.mxu2 }
 0x103   : > { %v1219_v49 = vadd.f32 %v1130_v32, %v931_v42  ;;  %3654 = vmatmul.msk.bf16.gmra.mxu1 %vm722_vm3, %v4348_v12  ;;  %v1726_v42 = vrot.slane %v1724_v24, 2 }
 0x105   : > { %v1580_v15 = vadd.f32 %v1491_v59, %v1219_v49  ;;  %3761 = vmatmul.msk.bf16.gmra.mxu3 %vm722_vm3, %v1408_v21  ;;  %v1409_v21 = vrot.slane %v3965_v51, 1 }
 0x107   : > { %3673 = vmatmul.msk.bf16.gmra.mxu2 %vm722_vm3, %v1045_v38  ;;  %v4571_v41 = vadd.f32 %v1860_v2, %v1580_v15  ;;  %v1410_v38 = vsel %vm1024_vm4, %v1407_v45, %v1409_v21 }
 0x108   : > { %v1863_v6 = vpop.f32.mrf.mxu0  ;;  %v935_v56 = vpop.f32.mrf.mxu1 }
 0x109   : > { %v1499_v32 = vpop.f32.mrf.mxu3  ;;  %v936_v29 = vadd.f32 %v935_v56, %v4474_v54 }
 0x10a   : > { %v1133_v30 = vpop.f32.mrf.mxu2 }
 0x10b   : > { %3779 = vmatmul.msk.bf16.gmra.mxu0 %vm722_vm3, %v1719_v26  ;;  %v1220_v12 = vadd.f32 %v1133_v30, %v934_v17 }
 0x10d   : > { %v1581_v59 = vadd.f32 %v1494_v61, %v1220_v12  ;;  %v1727_v61 = vor.u32 %v1726_v42, %v1723_v20 }
 0x10f   : > { %v4576_v40 = vadd.f32 %v1863_v6, %v1581_v59  ;;  %v1728_v54 = vsel %vm1621_vm5, %v1718_v18, %v1727_v61  ;;  %v1411_v59 = vrot.slane %v3966_v47, 1  ;;  %v1732_v18 = vrot.slane %v1730_v62, 1 }
 0x110   : > { %v1865_v53 = vpop.f32.mrf.mxu0  ;;  %v938_v2 = vpop.f32.mrf.mxu1 }
 0x111   : > { %v1501_v50 = vpop.f32.mrf.mxu3  ;;  %v939_v45 = vadd.f32 %v938_v2, %v4489_v3 }
 0x112   : > { %v1135_v49 = vpop.f32.mrf.mxu2 }
 0x113   : > { %v1221_v15 = vadd.f32 %v1135_v49, %v936_v29  ;;  %3655 = vmatmul.msk.bf16.gmra.mxu1 %vm722_vm3, %v4222_v31  ;;  %v1048_v29 = vrot.slane %v4267_v63, 1 }
 0x115   : > { %v1582_v6 = vadd.f32 %v1496_v35, %v1221_v15  ;;  %3762 = vmatmul.msk.bf16.gmra.mxu3 %vm722_vm3, %v1410_v38  ;;  %v1733_v35 = vshll.u32 %v3965_v51, 16  ;;  %v1412_v15 = vsel %vm1024_vm4, %v1409_v21, %v1411_v59 }
 0x117   : > { %3674 = vmatmul.msk.bf16.gmra.mxu2 %vm722_vm3, %v1047_v22  ;;  %v4586_v26 = vadd.f32 %v1865_v53, %v1582_v6  ;;  %v1735_v49 = vrot.slane %v1733_v35, 2 }
 0x118   : > { %v1868_v17 = vpop.f32.mrf.mxu0  ;;  %v940_v56 = vpop.f32.mrf.mxu1 }
 0x119   : > { %v1504_v30 = vpop.f32.mrf.mxu3  ;;  %v941_v3 = vadd.f32 %v940_v56, %v4499_v10  ;;  %v1736_v51 = vor.u32 %v1735_v49, %v1732_v18  ;;  %v1050_v49 = vrot.slane %v4332_v48, 1 }
 0x11a   : > { %v1138_v12 = vpop.f32.mrf.mxu2 }
 0x11b   : > { %3780 = vmatmul.msk.bf16.gmra.mxu0 %vm722_vm3, %v1728_v54  ;;  %v1222_v31 = vadd.f32 %v1138_v12, %v939_v45  ;;  %v1737_v10 = vsel %vm1621_vm5, %v1727_v61, %v1736_v51 }
 0x11d   : > { %v1583_v24 = vadd.f32 %v1499_v32, %v1222_v31  ;;  %v1049_v32 = vsel %vm1024_vm4, %v1046_v4, %v1048_v29  ;;  %v3967_v31 = vld [vmem:[#allocation2 + $0x78] sm:$0xff]  ;;  %v1739_v4 = vshrl.u32 %v3966_v47, 16 }
 0x11e   : > { %v1413_v35 = vrot.slane %v3967_v31, 1 }
 0x11f   : > { %v4591_v20 = vadd.f32 %v1868_v17, %v1583_v24  ;;  %v1741_v61 = vrot.slane %v1739_v4, 1 }
 0x120   : > { %v1870_v53 = vpop.f32.mrf.mxu0  ;;  %v943_v42 = vpop.f32.mrf.mxu1 }
 0x121   : > { %v1506_v2 = vpop.f32.mrf.mxu3  ;;  %v944_v21 = vadd.f32 %v943_v42, %v4514_v34 }
 0x122   : > { %v1140_v38 = vpop.f32.mrf.mxu2 }
 0x123   : > { %v1223_v22 = vadd.f32 %v1140_v38, %v941_v3  ;;  %3656 = vmatmul.msk.bf16.gmra.mxu1 %vm722_vm3, %v4229_v36 }
 0x125   : > { %v1584_v6 = vadd.f32 %v1501_v50, %v1223_v22  ;;  %3763 = vmatmul.msk.bf16.gmra.mxu3 %vm722_vm3, %v1412_v15  ;;  %v1742_v50 = vshll.u32 %v3966_v47, 16  ;;  %v1414_v15 = vsel %vm1024_vm4, %v1411_v59, %v1413_v35 }
 0x127   : > { %3675 = vmatmul.msk.bf16.gmra.mxu2 %vm722_vm3, %v1049_v32  ;;  %v4601_v17 = vadd.f32 %v1870_v53, %v1584_v6  ;;  %v1744_v3 = vrot.slane %v1742_v50, 2 }
 0x128   : > { %v1873_v54 = vpop.f32.mrf.mxu0  ;;  %v945_v56 = vpop.f32.mrf.mxu1 }
 0x129   : > { %v1509_v45 = vpop.f32.mrf.mxu3  ;;  %v946_v34 = vadd.f32 %v945_v56, %v4524_v60  ;;  %v1745_v47 = vor.u32 %v1744_v3, %v1741_v61 }
 0x12a   : > { %v1143_v12 = vpop.f32.mrf.mxu2 }
 0x12b   : > { %3781 = vmatmul.msk.bf16.gmra.mxu0 %vm722_vm3, %v1737_v10  ;;  %v1224_v36 = vadd.f32 %v1143_v12, %v944_v21  ;;  %v1746_v60 = vsel %vm1621_vm5, %v1736_v51, %v1745_v47  ;;  %v3968_v12 = vld [vmem:[#allocation2 + $0x80] sm:$0xff]  ;;  %v1052_v51 = vrot.slane %v4358_v19, 1 }
 0x12c   : > { %v1415_v4 = vrot.slane %v3968_v12, 1 }
 0x12d   : > { %v1585_v62 = vadd.f32 %v1504_v30, %v1224_v36  ;;  %v1051_v30 = vsel %vm1024_vm4, %v1048_v29, %v1050_v49  ;;  %v1748_v29 = vshrl.u32 %v3967_v31, 16 }
 0x12f   : > { %v4606_v24 = vadd.f32 %v1873_v54, %v1585_v62  ;;  %v1750_v61 = vrot.slane %v1748_v29, 1 }
 0x130   : > { %v1875_v53 = vpop.f32.mrf.mxu0  ;;  %v948_v18 = vpop.f32.mrf.mxu1 }
 0x131   : > { %v1511_v42 = vpop.f32.mrf.mxu3  ;;  %v949_v59 = vadd.f32 %v948_v18, %v4539_v8 }
 0x132   : > { %v1145_v38 = vpop.f32.mrf.mxu2 }
 0x133   : > { %v1225_v22 = vadd.f32 %v1145_v38, %v946_v34  ;;  %3657 = vmatmul.msk.bf16.gmra.mxu1 %vm722_vm3, %v4267_v63  ;;  %v1416_v38 = vsel %vm1024_vm4, %v1413_v35, %v1415_v4 }
 0x135   : > { %v1586_v32 = vadd.f32 %v1506_v2, %v1225_v22  ;;  %3764 = vmatmul.msk.bf16.gmra.mxu3 %vm722_vm3, %v1414_v15  ;;  %v1751_v2 = vshll.u32 %v3967_v31, 16 }
 0x137   : > { %3676 = vmatmul.msk.bf16.gmra.mxu2 %vm722_vm3, %v1051_v30  ;;  %v4616_v6 = vadd.f32 %v1875_v53, %v1586_v32  ;;  %v1753_v3 = vrot.slane %v1751_v2, 2  ;;  %v429_v30 = vld [vmem:[%s4313_s14 + $0x4] sm:$0xf] }
 0x138   : > { %v1878_v54 = vpop.f32.mrf.mxu0  ;;  %v950_v10 = vpop.f32.mrf.mxu1  ;;  %435 = vst.msk [vmem:[#allocation2 + $0x94] sm:$0xf] %vm391_vm1, %v429_v30 }
 0x139   : > { %v1514_v56 = vpop.f32.mrf.mxu3  ;;  %v951_v8 = vadd.f32 %v950_v10, %v4547_v57  ;;  %v1754_v31 = vor.u32 %v1753_v3, %v1750_v61 }
 0x13a   : > { %v1148_v21 = vpop.f32.mrf.mxu2 }
 0x13b   : > { %3782 = vmatmul.msk.bf16.gmra.mxu0 %vm722_vm3, %v1746_v60  ;;  %v1226_v63 = vadd.f32 %v1148_v21, %v949_v59  ;;  %v1755_v35 = vsel %vm1621_vm5, %v1745_v47, %v1754_v31  ;;  %v1757_v59 = vshrl.u32 %v3968_v12, 16  ;;  %v1760_v21 = vshll.u32 %v3968_v12, 16 }
 0x13c   : > { %v1054_v47 = vrot.slane %v4286_v11, 1 }
 0x13d   : > { %v1587_v36 = vadd.f32 %v1509_v45, %v1226_v63  ;;  %v1053_v45 = vsel %vm1024_vm4, %v1050_v49, %v1052_v51  ;;  %v3969_v49 = vld [vmem:[#allocation2 + $0x88] sm:$0xff]  ;;  %v1759_v61 = vrot.slane %v1757_v59, 1  ;;  %v1762_v3 = vrot.slane %v1760_v21, 2 }
 0x13e   : > { %v1417_v29 = vrot.slane %v3969_v49, 1  ;;  %v1055_v12 = vsel %vm1024_vm4, %v1052_v51, %v1054_v47 }
 0x13f   : > { %v4621_v50 = vadd.f32 %v1878_v54, %v1587_v36 }
 0x140   : > { %v1880_v62 = vpop.f32.mrf.mxu0  ;;  %v953_v53 = vpop.f32.mrf.mxu1 }
 0x141   : > { %v1516_v18 = vpop.f32.mrf.mxu3  ;;  %v954_v60 = vadd.f32 %v953_v53, %v4434_v13 }
 0x142   : > { %v1150_v34 = vpop.f32.mrf.mxu2 }
 0x143   : > { %v1227_v15 = vadd.f32 %v1150_v34, %v951_v8  ;;  %3658 = vmatmul.msk.bf16.gmra.mxu1 %vm722_vm3, %v4332_v48  ;;  %v1418_v34 = vsel %vm1024_vm4, %v1415_v4, %v1417_v29 }
 0x145   : > { %v1588_v22 = vadd.f32 %v1511_v42, %v1227_v15  ;;  %3765 = vmatmul.msk.bf16.gmra.mxu3 %vm722_vm3, %v1416_v38  ;;  %v1763_v15 = vor.u32 %v1762_v3, %v1759_v61 }
 0x147   : > { %3677 = vmatmul.msk.bf16.gmra.mxu2 %vm722_vm3, %v1053_v45  ;;  %v4633_v57 = vadd.f32 %v1880_v62, %v1588_v22  ;;  %v1764_v4 = vsel %vm1621_vm5, %v1754_v31, %v1763_v15 }
 0x148   : > { %v1883_v32 = vpop.f32.mrf.mxu0  ;;  %v955_v54 = vpop.f32.mrf.mxu1 }
 0x149   : > { %v1519_v48 = vpop.f32.mrf.mxu3  ;;  %v956_v13 = vadd.f32 %v955_v54, %v4446_v23  ;;  %v1766_v54 = vshrl.u32 %v3969_v49, 16 }
 0x14a   : > { %v1153_v10 = vpop.f32.mrf.mxu2 }
 0x14b   : > { %3783 = vmatmul.msk.bf16.gmra.mxu0 %vm722_vm3, %v1755_v35  ;;  %v1228_v42 = vadd.f32 %v1153_v10, %v954_v60  ;;  %v3970_v35 = vld [vmem:[#allocation2 + $0x90] sm:$0xff]  ;;  %v1768_v31 = vrot.slane %v1766_v54, 1 }
 0x14c   : > { %v1419_v10 = vrot.slane %v3970_v35, 1  ;;  %v1775_v54 = vshrl.u32 %v3970_v35, 16 }
 0x14d   : > { %v1589_v63 = vadd.f32 %v1514_v56, %v1228_v42  ;;  %v430_v56 = vld [vmem:[%s4313_s14 + $0x8] sm:$0xf] }
 0x14e   : > { %436 = vst.msk [vmem:[#allocation2 + $0x98] sm:$0xf] %vm391_vm1, %v430_v56 }
 0x14f   : > { %v4638_v2 = vadd.f32 %v1883_v32, %v1589_v63  ;;  %v4064_v63 = vld [vmem:[#allocation2 + $0x80] sm:$0xff] }
 0x150   : > { %v1885_v36 = vpop.f32.mrf.mxu0  ;;  %v958_v62 = vpop.f32.mrf.mxu1 }
 0x151   : > { %v1521_v53 = vpop.f32.mrf.mxu3  ;;  %v959_v30 = vadd.f32 %v958_v62, %v4453_v33 }
 0x152   : > { %v1155_v8 = vpop.f32.mrf.mxu2 }
 0x153   : > { %v1229_v38 = vadd.f32 %v1155_v8, %v956_v13  ;;  %3659 = vmatmul.msk.bf16.gmra.mxu1 %vm722_vm3, %v4358_v19  ;;  %v1420_v13 = vsel %vm1024_vm4, %v1417_v29, %v1419_v10 }
 0x155   : > { %v1590_v45 = vadd.f32 %v1516_v18, %v1229_v38  ;;  %3766 = vmatmul.msk.bf16.gmra.mxu3 %vm722_vm3, %v1418_v34  ;;  %v1769_v18 = vshll.u32 %v3969_v49, 16  ;;  %v4065_v34 = vld [vmem:[#allocation2 + $0x78] sm:$0xff] }
 0x157   : > { %3678 = vmatmul.msk.bf16.gmra.mxu2 %vm722_vm3, %v1055_v12  ;;  %v4650_v11 = vadd.f32 %v1885_v36, %v1590_v45  ;;  %v1056_v36 = vrot.slane %v4064_v63, 1  ;;  %v1771_v61 = vrot.slane %v1769_v18, 2  ;;  %v1778_v18 = vshll.u32 %v3970_v35, 16 }
 0x158   : > { %v1888_v23 = vpop.f32.mrf.mxu0  ;;  %v960_v22 = vpop.f32.mrf.mxu1 }
 0x159   : > { %v1524_v19 = vpop.f32.mrf.mxu3  ;;  %v961_v33 = vadd.f32 %v960_v22, %v4467_v46  ;;  %v1057_v49 = vsel %vm1024_vm4, %v1054_v47, %v1056_v36  ;;  %v1772_v38 = vor.u32 %v1771_v61, %v1768_v31 }
 0x15a   : > { %v1158_v32 = vpop.f32.mrf.mxu2 }
 0x15b   : > { %3784 = vmatmul.msk.bf16.gmra.mxu0 %vm722_vm3, %v1764_v4  ;;  %v1230_v51 = vadd.f32 %v1158_v32, %v959_v30 }
 0x15d   : > { %v1591_v60 = vadd.f32 %v1519_v48, %v1230_v51  ;;  %v1290_v48 = vld [vmem:[#allocation2 + $0x98] sm:$0x1]  ;;  %v4668_v51 = vld [vmem:[#allocation2 + $0x14] sm:$0xf] }
 0x15e   : > { %v1366_v12 = vunpack.c.l.b16 %v1290_v48  ;;  %v2297_v61 = vunpack.c.l.b16 %v4668_v51 }
 0x15f   : > { %v4655_v42 = vadd.f32 %v1888_v23, %v1591_v60  ;;  %v1773_v23 = vsel %vm1621_vm5, %v1763_v15, %v1772_v38 }
 0x160   : > { %v1890_v59 = vpop.f32.mrf.mxu0  ;;  %v963_v21 = vpop.f32.mrf.mxu1  ;;  %v1385_v32 = vpack.c.b16 %v1366_v12, %v1366_v12 }
 0x161   : > { %v1526_v62 = vpop.f32.mrf.mxu3  ;;  %v964_v4 = vadd.f32 %v963_v21, %v4476_v55  ;;  %v4066_v21 = vld [vmem:[#allocation2 + $0x88] sm:$0xff] }
 0x162   : > { %v1160_v3 = vpop.f32.mrf.mxu2 }
 0x163   : > { %v1231_v8 = vadd.f32 %v1160_v3, %v961_v33  ;;  %3660 = vmatmul.msk.bf16.gmra.mxu1 %vm722_vm3, %v4065_v34  ;;  %v1058_v3 = vrot.slane %v4066_v21, 1 }
 0x165   : > { %v1592_v56 = vadd.f32 %v1521_v53, %v1231_v8  ;;  %3767 = vmatmul.msk.bf16.gmra.mxu3 %vm722_vm3, %v1420_v13  ;;  %v2220_v53 = vld [vmem:[#allocation2 + $0x10] sm:$0xc]  ;;  %v1777_v13 = vrot.slane %v1775_v54, 1  ;;  %v1780_v8 = vrot.slane %v1778_v18, 2 }
 0x166   : > { %v2296_v31 = vunpack.c.l.b16 %v2220_v53 }
 0x167   : > { %3679 = vmatmul.msk.bf16.gmra.mxu2 %vm722_vm3, %v1057_v49  ;;  %v4663_v45 = vadd.f32 %v1890_v59, %v1592_v56  ;;  %v1421_v59 = vrot.slane %v1385_v32, 1  ;;  %v1615_v49 = vld [vmem:[#allocation2 + $0x98] sm:$0x3] }
 0x168   : > { %v1893_v46 = vpop.f32.mrf.mxu0  ;;  %v965_v29 = vpop.f32.mrf.mxu1  ;;  %v4679_v12 = vpack.c.b16 %v2297_v61, %v2296_v31 }
 0x169   : > { %v1529_v22 = vpop.f32.mrf.mxu3  ;;  %v966_v34 = vadd.f32 %v965_v29, %v4492_v5  ;;  %v1422_v35 = vsel %vm1024_vm4, %v1419_v10, %v1421_v59 }
 0x16a   : > { %v1163_v30 = vpop.f32.mrf.mxu2  ;;  %v2589_v5 = vshrl.u32 %v4679_v12, 16  ;;  %v2592_v10 = vshll.u32 %v4679_v12, 16 }
 0x16b   : > { %3785 = vmatmul.msk.bf16.gmra.mxu0 %vm722_vm3, %v1773_v23  ;;  %v1232_v47 = vadd.f32 %v1163_v30, %v964_v4  ;;  %v1059_v23 = vsel %vm1024_vm4, %v1056_v36, %v1058_v3  ;;  %v1781_v4 = vor.u32 %v1780_v8, %v1777_v13  ;;  %v1619_v30 = vunpack.c.l.b16 %v1615_v49 }
 0x16c   : > { %v2591_v31 = vrot.slane %v2589_v5, 2  ;;  %v2594_v13 = vrot.slane %v2592_v10, 3 }
 0x16d   : > { %v1593_v60 = vadd.f32 %v1524_v19, %v1232_v47  ;;  %v4675_v19 = vld [vmem:[#allocation2 + $0x18] sm:$0xff]  ;;  %v1782_v36 = vsel %vm1621_vm5, %v1772_v38, %v1781_v4  ;;  %v4692_v18 = vpack.c.b16 %v1619_v30, %v1619_v30  ;;  %v1060_v30 = vrot.slane %v4351_v14, 1 }
 0x16e   : > { %v2597_v29 = vshrl.u32 %v4675_v19, 16  ;;  %v2600_v47 = vshll.u32 %v4675_v19, 16  ;;  %v2595_v38 = vor.u32 %v2594_v13, %v2591_v31 }
 0x16f   : > { %v4671_v15 = vadd.f32 %v1893_v46, %v1593_v60 }
 0x170   : > { %v1895_v33 = vpop.f32.mrf.mxu0  ;;  %v968_v55 = vpop.f32.mrf.mxu1  ;;  %v2599_v8 = vrot.slane %v2597_v29, 2 }
 0x171   : > { %v1531_v48 = vpop.f32.mrf.mxu3 }
 0x172   : > { %v1165_v56 = vpop.f32.mrf.mxu2 }
 0x173   : > { %v1233_v46 = vadd.f32 %v1165_v56, %v966_v34  ;;  %3661 = vmatmul.msk.bf16.gmra.mxu1 %vm722_vm3, %v4064_v63  ;;  %v2602_v34 = vrot.slane %v2600_v47, 3  ;;  %v1787_v56 = vshll.u32 %v4692_v18, 16  ;;  %v1984_v47 = vld [vmem:[#allocation2 + $0x8] sm:$0xc] }
 0x174   : > { %v1988_v13 = vunpack.c.l.b16 %v1984_v47 }
 0x175   : > { %v1594_v32 = vadd.f32 %v1526_v62, %v1233_v46  ;;  %3768 = vmatmul.msk.bf16.gmra.mxu3 %vm722_vm3, %v1422_v35  ;;  %v969_v62 = vadd.f32 %v968_v55, %v4501_v16  ;;  %v2603_v46 = vor.u32 %v2602_v34, %v2599_v8  ;;  %v1789_v5 = vrot.slane %v1787_v56, 2 }
 0x177   : > { %3680 = vmatmul.msk.bf16.gmra.mxu2 %vm722_vm3, %v1059_v23  ;;  %v4689_v53 = vadd.f32 %v1895_v33, %v1594_v32  ;;  %v1784_v33 = vshrl.u32 %v4692_v18, 16 }
 0x178   : > { %v1898_v63 = vpop.f32.mrf.mxu0  ;;  %v970_v54 = vpop.f32.mrf.mxu1 }
 0x179   : > { %v1534_v60 = vpop.f32.mrf.mxu3  ;;  %v1786_v32 = vrot.slane %v1784_v33, 1  ;;  %v971_v10 = vadd.f32 %v970_v54, %v4517_v25 }
 0x17a   : > { %v1168_v59 = vpop.f32.mrf.mxu2 }
 0x17b   : > { %3786 = vmatmul.msk.bf16.gmra.mxu0 %vm722_vm3, %v1782_v36  ;;  %v1234_v49 = vadd.f32 %v1168_v59, %v969_v62  ;;  %v2604_v62 = vsel %vm2587_vm6, %v2595_v38, %v2603_v46  ;;  %v4703_v59 = vld [vmem:[#allocation2 + $0x20] sm:$0xff]  ;;  %v1790_v31 = vor.u32 %v1789_v5, %v1786_v32 }
 0x17c   : > { %v2606_v14 = vshrl.u32 %v4703_v59, 16  ;;  %v2609_v25 = vshll.u32 %v4703_v59, 16 }
 0x17d   : > { %v1595_v35 = vadd.f32 %v1529_v22, %v1234_v49  ;;  %v1791_v49 = vsel %vm1621_vm5, %v1781_v4, %v1790_v31  ;;  %v2353_v31 = vrot.slane %v4675_v19, 2 }
 0x17e   : > { %v2611_v32 = vrot.slane %v2609_v25, 3 }
 0x17f   : > { %v4698_v23 = vadd.f32 %v1898_v63, %v1595_v35  ;;  %v1061_v63 = vsel %vm1024_vm4, %v1058_v3, %v1060_v30  ;;  %v2950_v35 = vld [vmem:[#allocation2 + $0x10] sm:$0x8]  ;;  %v2608_v30 = vrot.slane %v2606_v14, 2 }
 0x180   : > { %v1900_v16 = vpop.f32.mrf.mxu0  ;;  %v973_v55 = vpop.f32.mrf.mxu1 }
 0x181   : > { %v1536_v29 = vpop.f32.mrf.mxu3  ;;  %v974_v56 = vadd.f32 %v973_v55, %v4526_v52  ;;  %v2612_v4 = vor.u32 %v2611_v32, %v2608_v30  ;;  %v2352_v55 = vrot.slane %v4679_v12, 2  ;;  %v2958_v12 = vrot.slane %v4675_v19, 3 }
 0x182   : > { %v1170_v36 = vpop.f32.mrf.mxu2 }
 0x183   : > { %v1235_v22 = vadd.f32 %v1170_v36, %v971_v10  ;;  %3662 = vmatmul.msk.bf16.gmra.mxu1 %vm722_vm3, %v4066_v21  ;;  %v5196_v21 = vunpack.c.l.b16 %v4370_v43  ;;  %v2954_v36 = vunpack.c.l.b16 %v2950_v35 }
 0x185   : > { %v1596_v8 = vadd.f32 %v1531_v48, %v1235_v22  ;;  %3895 = vmatmul.msk.bf16.vlgmr.msra.gmra.mxu3 %vm722_vm3, %v2604_v62  ;;  %v1989_v3 = vpack.c.b16 %v5196_v21, %v1988_v13  ;;  %v2955_v13 = vpack.c.b16 %v2297_v61, %v2954_v36  ;;  %v2354_v21 = vsel %vm1990_vm7, %v2352_v55, %v2353_v31 }
 0x187   : > { %3681 = vmatmul.msk.bf16.gmra.mxu2 %vm722_vm3, %v1061_v63  ;;  %v4711_v54 = vadd.f32 %v1900_v16, %v1596_v8  ;;  %v1991_v10 = vrot.slane %v1989_v3, 2  ;;  %v4067_v16 = vld [vmem:[#allocation2 + $0x10] sm:$0xff]  ;;  %v2957_v3 = vrot.slane %v2955_v13, 3 }
 0x188   : > { %v1903_v34 = vpop.f32.mrf.mxu0  ;;  %v975_v33 = vpop.f32.mrf.mxu1  ;;  %v1992_v47 = vrot.slane %v4067_v16, 2 }
 0x189   : > { %v1539_v48 = vpop.f32.mrf.mxu3  ;;  %v976_v8 = vadd.f32 %v975_v33, %v4542_v9  ;;  %v2959_v33 = vsel %vm2956_vm8, %v2957_v3, %v2958_v12  ;;  %v2960_v3 = vrot.slane %v4703_v59, 3 }
 0x18a   : > { %v1173_v38 = vpop.f32.mrf.mxu2  ;;  %v1993_v52 = vsel %vm1990_vm7, %v1991_v10, %v1992_v47  ;;  %v4068_v10 = vld [vmem:[#allocation2 + $0x18] sm:$0xff] }
 0x18b   : > { %3787 = vmatmul.msk.bf16.gmra.mxu0 %vm722_vm3, %v1791_v49  ;;  %v1236_v5 = vadd.f32 %v1173_v38, %v974_v56  ;;  %v4727_v49 = vld [vmem:[#allocation2 + $0x28] sm:$0xff]  ;;  %v1994_v16 = vrot.slane %v4068_v10, 2 }
 0x18c   : > { %v2615_v9 = vshrl.u32 %v4727_v49, 16  ;;  %v2618_v51 = vshll.u32 %v4727_v49, 16 }
 0x18d   : > { %v1597_v62 = vadd.f32 %v1534_v60, %v1236_v5  ;;  %v2613_v60 = vsel %vm2587_vm6, %v2603_v46, %v2612_v4  ;;  %v1995_v13 = vsel %vm1990_vm7, %v1992_v47, %v1994_v16 }
 0x18e   : > { %v2620_v32 = vrot.slane %v2618_v51, 3  ;;  %v2961_v51 = vsel %vm2956_vm8, %v2958_v12, %v2960_v3 }
 0x18f   : > { %v4718_v22 = vadd.f32 %v1903_v34, %v1597_v62 }
 0x190   : > { %v1905_v43 = vpop.f32.mrf.mxu0  ;;  %v978_v63 = vpop.f32.mrf.mxu1 }
 0x191   : > { %v1541_v14 = vpop.f32.mrf.mxu3  ;;  %v979_v38 = vadd.f32 %v978_v63, %v4448_v27 }
 0x192   : > { %v1175_v25 = vpop.f32.mrf.mxu2 }
 0x193   : > { %v1237_v34 = vadd.f32 %v1175_v25, %v976_v8  ;;  %3789 = vmatmul.msk.bf16.vlgmr.msra.gmra.mxu1 %vm722_vm3, %v1993_v52  ;;  %v2355_v8 = vrot.slane %v4703_v59, 2 }
 0x195   : > { %v1598_v56 = vadd.f32 %v1536_v29, %v1237_v34  ;;  %3896 = vmatmul.msk.bf16.gmra.mxu3 %vm722_vm3, %v2613_v60  ;;  %v2617_v29 = vrot.slane %v2615_v9, 2  ;;  %v4747_v34 = vld [vmem:[#allocation2 + $0x30] sm:$0xff] }
 0x196   : > { %v2624_v47 = vshrl.u32 %v4747_v34, 16 }
 0x197   : > { %3876 = vmatmul.msk.bf16.vlgmr.msra.gmra.mxu2 %vm722_vm3, %v2354_v21  ;;  %v4736_v61 = vadd.f32 %v1905_v43, %v1598_v56  ;;  %v2621_v62 = vor.u32 %v2620_v32, %v2617_v29 }
 0x198   : > { %v1908_v46 = vpop.f32.mrf.mxu0  ;;  %v980_v35 = vpop.f32.mrf.mxu1  ;;  %v2626_v59 = vrot.slane %v2624_v47, 2 }
 0x199   : > { %v1544_v30 = vpop.f32.mrf.mxu3  ;;  %v981_v27 = vadd.f32 %v980_v35, %v4456_v37  ;;  %v2622_v60 = vsel %vm2587_vm6, %v2612_v4, %v2621_v62  ;;  %v2627_v37 = vshll.u32 %v4747_v34, 16 }
 0x19a   : > { %v1178_v19 = vpop.f32.mrf.mxu2 }
 0x19b   : > { %3914 = vmatmul.msk.bf16.vlgmr.msra.gmra.mxu0 %vm722_vm3, %v2959_v33  ;;  %v1238_v5 = vadd.f32 %v1178_v19, %v979_v38  ;;  %v4069_v19 = vld [vmem:[#allocation2 + $0x20] sm:$0xff] }
 0x19c   : > { %v1996_v29 = vrot.slane %v4069_v19, 2 }
 0x19d   : > { %v1599_v36 = vadd.f32 %v1539_v48, %v1238_v5  ;;  %v2356_v48 = vsel %vm1990_vm7, %v2353_v31, %v2355_v8 }
 0x19e   : > { %v1997_v12 = vsel %vm1990_vm7, %v1994_v16, %v1996_v29 }
 0x19f   : > { %v4741_v52 = vadd.f32 %v1908_v46, %v1599_v36 }
 0x1a0   : > { %v1910_v43 = vpop.f32.mrf.mxu0  ;;  %v983_v55 = vpop.f32.mrf.mxu1 }
 0x1a1   : > { %v1546_v63 = vpop.f32.mrf.mxu3  ;;  %v984_v33 = vadd.f32 %v983_v55, %v4471_v44 }
 0x1a2   : > { %v1180_v25 = vpop.f32.mrf.mxu2 }
 0x1a3   : > { %v1239_v21 = vadd.f32 %v1180_v25, %v981_v27  ;;  %3790 = vmatmul.msk.bf16.gmra.mxu1 %vm722_vm3, %v1995_v13  ;;  %v2357_v13 = vrot.slane %v4727_v49, 2 }
 0x1a5   : > { %v1600_v56 = vadd.f32 %v1541_v14, %v1239_v21  ;;  %3897 = vmatmul.msk.bf16.gmra.mxu3 %vm722_vm3, %v2622_v60  ;;  %v2629_v14 = vrot.slane %v2627_v37, 3  ;;  %v4767_v60 = vld [vmem:[#allocation2 + $0x38] sm:$0xff] }
 0x1a6   : > { %v2633_v16 = vshrl.u32 %v4767_v60, 16 }
 0x1a7   : > { %3877 = vmatmul.msk.bf16.gmra.mxu2 %vm722_vm3, %v2356_v48  ;;  %v4756_v9 = vadd.f32 %v1910_v43, %v1600_v56  ;;  %v2630_v5 = vor.u32 %v2629_v14, %v2626_v59  ;;  %v2962_v48 = vrot.slane %v4727_v49, 3 }
 0x1a8   : > { %v1913_v4 = vpop.f32.mrf.mxu0  ;;  %v985_v46 = vpop.f32.mrf.mxu1  ;;  %v2635_v49 = vrot.slane %v2633_v16, 2 }
 0x1a9   : > { %v1549_v31 = vpop.f32.mrf.mxu3  ;;  %v986_v44 = vadd.f32 %v985_v46, %v4481_v0  ;;  %v2631_v25 = vsel %vm2587_vm6, %v2621_v62, %v2630_v5  ;;  %v2636_v0 = vshll.u32 %v4767_v60, 16  ;;  %v2963_v37 = vsel %vm2956_vm8, %v2960_v3, %v2962_v48 }
 0x1aa   : > { %v1183_v35 = vpop.f32.mrf.mxu2 }
 0x1ab   : > { %3915 = vmatmul.msk.bf16.gmra.mxu0 %vm722_vm3, %v2961_v51  ;;  %v1240_v38 = vadd.f32 %v1183_v35, %v984_v33  ;;  %v4070_v35 = vld [vmem:[#allocation2 + $0x28] sm:$0xff] }
 0x1ac   : > { %v1998_v59 = vrot.slane %v4070_v35, 2 }
 0x1ad   : > { %v1601_v32 = vadd.f32 %v1544_v30, %v1240_v38  ;;  %v2358_v30 = vsel %vm1990_vm7, %v2355_v8, %v2357_v13 }
 0x1ae   : > { %v1999_v3 = vsel %vm1990_vm7, %v1996_v29, %v1998_v59 }
 0x1af   : > { %v4761_v10 = vadd.f32 %v1913_v4, %v1601_v32 }
 0x1b0   : > { %v1915_v36 = vpop.f32.mrf.mxu0  ;;  %v988_v43 = vpop.f32.mrf.mxu1 }
 0x1b1   : > { %v1551_v55 = vpop.f32.mrf.mxu3  ;;  %v989_v51 = vadd.f32 %v988_v43, %v4496_v7 }
 0x1b2   : > { %v1185_v27 = vpop.f32.mrf.mxu2 }
 0x1b3   : > { %v1241_v21 = vadd.f32 %v1185_v27, %v986_v44  ;;  %3791 = vmatmul.msk.bf16.gmra.mxu1 %vm722_vm3, %v1997_v12  ;;  %v2359_v12 = vrot.slane %v4747_v34, 2 }
 0x1b5   : > { %v1602_v56 = vadd.f32 %v1546_v63, %v1241_v21  ;;  %3898 = vmatmul.msk.bf16.gmra.mxu3 %vm722_vm3, %v2631_v25  ;;  %v2638_v63 = vrot.slane %v2636_v0, 3  ;;  %v4787_v25 = vld [vmem:[#allocation2 + $0x40] sm:$0xff] }
 0x1b6   : > { %v2642_v29 = vshrl.u32 %v4787_v25, 16 }
 0x1b7   : > { %3878 = vmatmul.msk.bf16.gmra.mxu2 %vm722_vm3, %v2358_v30  ;;  %v4776_v47 = vadd.f32 %v1915_v36, %v1602_v56  ;;  %v2639_v38 = vor.u32 %v2638_v63, %v2635_v49  ;;  %v2964_v30 = vrot.slane %v4747_v34, 3 }
 0x1b8   : > { %v1918_v62 = vpop.f32.mrf.mxu0  ;;  %v990_v4 = vpop.f32.mrf.mxu1  ;;  %v2644_v34 = vrot.slane %v2642_v29, 2 }
 0x1b9   : > { %v1554_v8 = vpop.f32.mrf.mxu3  ;;  %v991_v7 = vadd.f32 %v990_v4, %v4506_v28  ;;  %v2640_v27 = vsel %vm2587_vm6, %v2630_v5, %v2639_v38  ;;  %v2645_v28 = vshll.u32 %v4787_v25, 16  ;;  %v2965_v0 = vsel %vm2956_vm8, %v2962_v48, %v2964_v30 }
 0x1ba   : > { %v1188_v46 = vpop.f32.mrf.mxu2 }
 0x1bb   : > { %3916 = vmatmul.msk.bf16.gmra.mxu0 %vm722_vm3, %v2963_v37  ;;  %v1242_v33 = vadd.f32 %v1188_v46, %v989_v51  ;;  %v4071_v46 = vld [vmem:[#allocation2 + $0x30] sm:$0xff] }
 0x1bc   : > { %v2000_v49 = vrot.slane %v4071_v46, 2 }
 0x1bd   : > { %v1603_v14 = vadd.f32 %v1549_v31, %v1242_v33  ;;  %v2360_v31 = vsel %vm1990_vm7, %v2357_v13, %v2359_v12 }
 0x1be   : > { %v2001_v48 = vsel %vm1990_vm7, %v1998_v59, %v2000_v49 }
 0x1bf   : > { %v4781_v19 = vadd.f32 %v1918_v62, %v1603_v14 }
 0x1c0   : > { %v1920_v32 = vpop.f32.mrf.mxu0  ;;  %v993_v36 = vpop.f32.mrf.mxu1 }
 0x1c1   : > { %v1556_v43 = vpop.f32.mrf.mxu3  ;;  %v994_v37 = vadd.f32 %v993_v36, %v4521_v39 }
 0x1c2   : > { %v1190_v44 = vpop.f32.mrf.mxu2 }
 0x1c3   : > { %v1243_v21 = vadd.f32 %v1190_v44, %v991_v7  ;;  %3792 = vmatmul.msk.bf16.gmra.mxu1 %vm722_vm3, %v1999_v3  ;;  %v2361_v3 = vrot.slane %v4767_v60, 2 }
 0x1c5   : > { %v1604_v56 = vadd.f32 %v1551_v55, %v1243_v21  ;;  %3899 = vmatmul.msk.bf16.gmra.mxu3 %vm722_vm3, %v2640_v27  ;;  %v2647_v55 = vrot.slane %v2645_v28, 3  ;;  %v4807_v27 = vld [vmem:[#allocation2 + $0x48] sm:$0xff] }
 0x1c6   : > { %v2651_v59 = vshrl.u32 %v4807_v27, 16 }
 0x1c7   : > { %3879 = vmatmul.msk.bf16.gmra.mxu2 %vm722_vm3, %v2360_v31  ;;  %v4796_v16 = vadd.f32 %v1920_v32, %v1604_v56  ;;  %v2648_v33 = vor.u32 %v2647_v55, %v2644_v34  ;;  %v2966_v31 = vrot.slane %v4767_v60, 3  ;;  %v4072_v34 = vld [vmem:[#allocation2 + $0x38] sm:$0xff] }
 0x1c8   : > { %v1923_v5 = vpop.f32.mrf.mxu0  ;;  %v995_v62 = vpop.f32.mrf.mxu1  ;;  %v2653_v60 = vrot.slane %v2651_v59, 2  ;;  %v2002_v55 = vrot.slane %v4072_v34, 2  ;;  %v4073_v34 = vld [vmem:[#allocation2 + $0x40] sm:$0xff] }
 0x1c9   : > { %v1559_v13 = vpop.f32.mrf.mxu3  ;;  %v996_v39 = vadd.f32 %v995_v62, %v4531_v1  ;;  %v2649_v44 = vsel %vm2587_vm6, %v2639_v38, %v2648_v33  ;;  %v2654_v1 = vshll.u32 %v4807_v27, 16  ;;  %v2967_v28 = vsel %vm2956_vm8, %v2964_v30, %v2966_v31 }
 0x1ca   : > { %v1193_v4 = vpop.f32.mrf.mxu2  ;;  %v2003_v30 = vsel %vm1990_vm7, %v2000_v49, %v2002_v55 }
 0x1cb   : > { %3917 = vmatmul.msk.bf16.gmra.mxu0 %vm722_vm3, %v2965_v0  ;;  %v1244_v51 = vadd.f32 %v1193_v4, %v994_v37  ;;  %v5197_v0 = vld [vmem:[#allocation10_spill] sm:$0xff] }
 0x1cd   : > { %v1605_v63 = vadd.f32 %v1554_v8, %v1244_v51  ;;  %v2362_v8 = vsel %vm1990_vm7, %v2359_v12, %v2361_v3 }
 0x1cf   : > { %v4801_v35 = vadd.f32 %v1923_v5, %v1605_v63 }
 0x1d0   : > { %v1925_v14 = vpop.f32.mrf.mxu0  ;;  %v998_v32 = vpop.f32.mrf.mxu1 }
 0x1d1   : > { %v1561_v36 = vpop.f32.mrf.mxu3  ;;  %v999_v62 = vadd.f32 %v998_v32, %v5197_v0  ;;  %v5198_v32 = vld [vmem:[#allocation11_spill] sm:$0xff] }
 0x1d2   : > { %v1195_v7 = vpop.f32.mrf.mxu2 }
 0x1d3   : > { %v1245_v21 = vadd.f32 %v1195_v7, %v996_v39  ;;  %3793 = vmatmul.msk.bf16.gmra.mxu1 %vm722_vm3, %v2001_v48  ;;  %v2363_v39 = vrot.slane %v4787_v25, 2 }
 0x1d5   : > { %v1606_v56 = vadd.f32 %v1556_v43, %v1245_v21  ;;  %3900 = vmatmul.msk.bf16.gmra.mxu3 %vm722_vm3, %v2649_v44  ;;  %v2656_v43 = vrot.slane %v2654_v1, 3  ;;  %v2968_v1 = vrot.slane %v4787_v25, 3 }
 0x1d7   : > { %3880 = vmatmul.msk.bf16.gmra.mxu2 %vm722_vm3, %v2362_v8  ;;  %v4816_v29 = vadd.f32 %v1925_v14, %v1606_v56  ;;  %v2657_v46 = vor.u32 %v2656_v43, %v2653_v60  ;;  %v4827_v56 = vld [vmem:[#allocation2 + $0x50] sm:$0xff]  ;;  %v2969_v0 = vsel %vm2956_vm8, %v2966_v31, %v2968_v1 }
 0x1d8   : > { %v1928_v38 = vpop.f32.mrf.mxu0  ;;  %v1000_v5 = vpop.f32.mrf.mxu1  ;;  %v2660_v49 = vshrl.u32 %v4827_v56, 16 }
 0x1d9   : > { %v1564_v12 = vpop.f32.mrf.mxu3  ;;  %v1001_v7 = vadd.f32 %v1000_v5, %v5198_v32  ;;  %v2658_v8 = vsel %vm2587_vm6, %v2648_v33, %v2657_v46 }
 0x1da   : > { %v1198_v37 = vpop.f32.mrf.mxu2  ;;  %v2662_v25 = vrot.slane %v2660_v49, 2 }
 0x1db   : > { %3918 = vmatmul.msk.bf16.gmra.mxu0 %vm722_vm3, %v2967_v28  ;;  %v1246_v4 = vadd.f32 %v1198_v37, %v999_v62  ;;  %v2663_v28 = vshll.u32 %v4827_v56, 16  ;;  %v5199_v37 = vld [vmem:[#allocation4_spill] sm:$0xff] }
 0x1dd   : > { %v1607_v51 = vadd.f32 %v1559_v13, %v1246_v4  ;;  %v2364_v13 = vsel %vm1990_vm7, %v2361_v3, %v2363_v39 }
 0x1df   : > { %v4821_v63 = vadd.f32 %v1928_v38, %v1607_v51  ;;  %v2004_v51 = vrot.slane %v4073_v34, 2 }
 0x1e0   : > { %v1930_v14 = vpop.f32.mrf.mxu0  ;;  %v1003_v48 = vpop.f32.mrf.mxu1 }
 0x1e1   : > { %v1566_v44 = vpop.f32.mrf.mxu3  ;;  %v1004_v60 = vadd.f32 %v1003_v48, %v5199_v37  ;;  %v2005_v31 = vsel %vm1990_vm7, %v2002_v55, %v2004_v51  ;;  %v5200_v48 = vld [vmem:[#allocation5_spill] sm:$0xff] }
 0x1e2   : > { %v1200_v21 = vpop.f32.mrf.mxu2 }
 0x1e3   : > { %v1247_v59 = vadd.f32 %v1200_v21, %v1001_v7  ;;  %3794 = vmatmul.msk.bf16.gmra.mxu1 %vm722_vm3, %v2003_v30 }
 0x1e5   : > { %v1608_v38 = vadd.f32 %v1561_v36, %v1247_v59  ;;  %3901 = vmatmul.msk.bf16.gmra.mxu3 %vm722_vm3, %v2658_v8  ;;  %v2665_v36 = vrot.slane %v2663_v28, 3  ;;  %v2365_v8 = vrot.slane %v4807_v27, 2  ;;  %v4847_v28 = vld [vmem:[#allocation2 + $0x58] sm:$0xff] }
 0x1e6   : > { %v2669_v55 = vshrl.u32 %v4847_v28, 16 }
 0x1e7   : > { %3881 = vmatmul.msk.bf16.gmra.mxu2 %vm722_vm3, %v2364_v13  ;;  %v4836_v5 = vadd.f32 %v1930_v14, %v1608_v38  ;;  %v2666_v32 = vor.u32 %v2665_v36, %v2662_v25  ;;  %v5201_v36 = vld [vmem:[#allocation6_spill] sm:$0xff] }
 0x1e8   : > { %v1933_v33 = vpop.f32.mrf.mxu0  ;;  %v1005_v62 = vpop.f32.mrf.mxu1 }
 0x1e9   : > { %v1569_v3 = vpop.f32.mrf.mxu3  ;;  %v1006_v59 = vadd.f32 %v1005_v62, %v5200_v48  ;;  %v2667_v49 = vsel %vm2587_vm6, %v2657_v46, %v2666_v32  ;;  %v2672_v62 = vshll.u32 %v4847_v28, 16 }
 0x1ea   : > { %v1203_v43 = vpop.f32.mrf.mxu2 }
 0x1eb   : > { %3919 = vmatmul.msk.bf16.gmra.mxu0 %vm722_vm3, %v2969_v0  ;;  %v1248_v4 = vadd.f32 %v1203_v43, %v1004_v60 }
 0x1ed   : > { %v1609_v30 = vadd.f32 %v1564_v12, %v1248_v4  ;;  %v2366_v12 = vsel %vm1990_vm7, %v2363_v39, %v2365_v8 }
 0x1ef   : > { %v4841_v7 = vadd.f32 %v1933_v33, %v1609_v30  ;;  %v2970_v33 = vrot.slane %v4807_v27, 3  ;;  %v2671_v27 = vrot.slane %v2669_v55, 2 }
 0x1f0   : > { %v1935_v14 = vpop.f32.mrf.mxu0  ;;  %v1008_v21 = vpop.f32.mrf.mxu1 }
 0x1f1   : > { %v1571_v13 = vpop.f32.mrf.mxu3  ;;  %v2971_v43 = vsel %vm2956_vm8, %v2968_v1, %v2970_v33  ;;  %v1009_v4 = vadd.f32 %v1008_v21, %v5201_v36  ;;  %v5203_v21 = vld [vmem:[#allocation7_spill] sm:$0xff] }
 0x1f2   : > { %v1205_v38 = vpop.f32.mrf.mxu2 }
 0x1f3   : > { %v1249_v0 = vadd.f32 %v1205_v38, %v1006_v59  ;;  %3795 = vmatmul.msk.bf16.gmra.mxu1 %vm722_vm3, %v2005_v31  ;;  %v4074_v31 = vld [vmem:[#allocation2 + $0x48] sm:$0xff] }
 0x1f4   : > { %v2006_v48 = vrot.slane %v4074_v31, 2  ;;  %v5205_v31 = vld [vmem:[#allocation8_spill] sm:$0xff] }
 0x1f5   : > { %v1610_v37 = vadd.f32 %v1566_v44, %v1249_v0  ;;  %3902 = vmatmul.msk.bf16.gmra.mxu3 %vm722_vm3, %v2667_v49  ;;  %v2674_v44 = vrot.slane %v2672_v62, 3 }
 0x1f6   : > { %v2007_v1 = vsel %vm1990_vm7, %v2004_v51, %v2006_v48 }
 0x1f7   : > { %3882 = vmatmul.msk.bf16.gmra.mxu2 %vm722_vm3, %v2366_v12  ;;  %v4856_v60 = vadd.f32 %v1935_v14, %v1610_v37  ;;  %v2675_v38 = vor.u32 %v2674_v44, %v2671_v27  ;;  %v2367_v12 = vrot.slane %v4827_v56, 2 }
 0x1f8   : > { %v1938_v46 = vpop.f32.mrf.mxu0  ;;  %v1010_v25 = vpop.f32.mrf.mxu1 }
 0x1f9   : > { %v1574_v39 = vpop.f32.mrf.mxu3  ;;  %v1011_v37 = vadd.f32 %v1010_v25, %v5203_v21  ;;  %v2676_v62 = vsel %vm2587_vm6, %v2666_v32, %v2675_v38 }
 0x1fa   : > { %v1208_v34 = vpop.f32.mrf.mxu2 }
 0x1fb   : > { %3920 = vmatmul.msk.bf16.gmra.mxu0 %vm722_vm3, %v2971_v43  ;;  %v1250_v30 = vadd.f32 %v1208_v34, %v1009_v4  ;;  %v4867_v43 = vld [vmem:[#allocation2 + $0x60] sm:$0xff] }
 0x1fc   : > { %v2678_v51 = vshrl.u32 %v4867_v43, 16  ;;  %v2681_v25 = vshll.u32 %v4867_v43, 16 }
 0x1fd   : > { %v1611_v59 = vadd.f32 %v1569_v3, %v1250_v30  ;;  %v2368_v3 = vsel %vm1990_vm7, %v2365_v8, %v2367_v12 }
 0x1ff   : > { %v4861_v49 = vadd.f32 %v1938_v46, %v1611_v59  ;;  %v2972_v46 = vrot.slane %v4827_v56, 3  ;;  %v2680_v56 = vrot.slane %v2678_v51, 2 }
 0x200   : > { %v1940_v14 = vpop.f32.mrf.mxu0  ;;  %v1013_v0 = vpop.f32.mrf.mxu1 }
 0x201   : > { %5202 = vst [vmem:[#allocation10_spill] sm:$0xff] %v4861_v49  ;;  %v1576_v36 = vpop.f32.mrf.mxu3  ;;  %v2973_v44 = vsel %vm2956_vm8, %v2970_v33, %v2972_v46  ;;  %v1014_v59 = vadd.f32 %v1013_v0, %v5205_v31  ;;  %v5207_v0 = vld [vmem:[#allocation9_spill] sm:$0xff] }
 0x202   : > { %v1210_v55 = vpop.f32.mrf.mxu2 }
 0x203   : > { %v1251_v4 = vadd.f32 %v1210_v55, %v1011_v37  ;;  %3796 = vmatmul.msk.bf16.gmra.mxu1 %vm722_vm3, %v2007_v1  ;;  %v4075_v37 = vld [vmem:[#allocation2 + $0x50] sm:$0xff] }
 0x204   : > { %v2008_v55 = vrot.slane %v4075_v37, 2 }
 0x205   : > { %v1612_v34 = vadd.f32 %v1571_v13, %v1251_v4  ;;  %3903 = vmatmul.msk.bf16.gmra.mxu3 %vm722_vm3, %v2676_v62  ;;  %v2683_v13 = vrot.slane %v2681_v25, 3 }
 0x206   : > { %v2009_v33 = vsel %vm1990_vm7, %v2006_v48, %v2008_v55 }
 0x207   : > { %3883 = vmatmul.msk.bf16.gmra.mxu2 %vm722_vm3, %v2368_v3  ;;  %v4876_v27 = vadd.f32 %v1940_v14, %v1612_v34  ;;  %v2684_v4 = vor.u32 %v2683_v13, %v2680_v56 }
 0x208   : > { %v1943_v32 = vpop.f32.mrf.mxu0  ;;  %v1015_v30 = vpop.f32.mrf.mxu1 }
 0x209   : > { %5204 = vst [vmem:[#allocation11_spill] sm:$0xff] %v4876_v27  ;;  %v2824_v8 = vpop.f32.mrf.mxu3  ;;  %v2369_v27 = vrot.slane %v4847_v28, 2  ;;  %v1016_v31 = vadd.f32 %v1015_v30, %v5207_v0  ;;  %v2685_v25 = vsel %vm2587_vm6, %v2675_v38, %v2684_v4  ;;  %v4076_v0 = vld [vmem:[#allocation2 + $0x58] sm:$0xff] }
 0x20a   : > { %v1213_v1 = vpop.f32.mrf.mxu2 }
 0x20b   : > { %3921 = vmatmul.msk.bf16.gmra.mxu0 %vm722_vm3, %v2973_v44  ;;  %v1252_v21 = vadd.f32 %v1213_v1, %v1014_v59  ;;  %v4887_v44 = vld [vmem:[#allocation2 + $0x68] sm:$0xff] }
 0x20c   : > { %v2687_v48 = vshrl.u32 %v4887_v44, 16  ;;  %v2690_v30 = vshll.u32 %v4887_v44, 16 }
 0x20d   : > { %v1613_v62 = vadd.f32 %v1574_v39, %v1252_v21  ;;  %v2370_v39 = vsel %vm1990_vm7, %v2367_v12, %v2369_v27 }
 0x20f   : > { %v4881_v3 = vadd.f32 %v1943_v32, %v1613_v62  ;;  %v2974_v32 = vrot.slane %v4847_v28, 3  ;;  %v2689_v28 = vrot.slane %v2687_v48, 2 }
 0x210   : > { %v1945_v14 = vpop.f32.mrf.mxu0  ;;  %v2094_v34 = vpop.f32.mrf.mxu1 }
 0x211   : > { %5206 = vst [vmem:[#allocation4_spill] sm:$0xff] %v4881_v3  ;;  %v2826_v49 = vpop.f32.mrf.mxu3  ;;  %v2975_v13 = vsel %vm2956_vm8, %v2972_v46, %v2974_v32  ;;  %v2184_v37 = vadd.f32 %v2094_v34, %v4561_v58  ;;  %v4909_v58 = vld [vmem:[%s5185_s4] ss:$0 sm:$0xff] }
 0x212   : > { %v1215_v51 = vpop.f32.mrf.mxu2 }
 0x213   : > { %v1253_v59 = vadd.f32 %v1215_v51, %v1016_v31  ;;  %3797 = vmatmul.msk.bf16.gmra.mxu1 %vm722_vm3, %v2009_v33  ;;  %v2010_v31 = vrot.slane %v4076_v0, 2 }
 0x215   : > { %v1614_v1 = vadd.f32 %v1576_v36, %v1253_v59  ;;  %3904 = vmatmul.msk.bf16.gmra.mxu3 %vm722_vm3, %v2685_v25  ;;  %v2692_v36 = vrot.slane %v2690_v30, 3 }
 0x217   : > { %3884 = vmatmul.msk.bf16.gmra.mxu2 %vm722_vm3, %v2370_v39  ;;  %v4896_v56 = vadd.f32 %v1945_v14, %v1614_v1  ;;  %v4904_v14 = vld [vmem:[%s5184_s3] ss:$0 sm:$0xff]  ;;  %v2693_v25 = vor.u32 %v2692_v36, %v2689_v28  ;;  %v2011_v39 = vsel %vm1990_vm7, %v2008_v55, %v2010_v31  ;;  %v2371_v1 = vrot.slane %v4867_v43, 2 }
 0x218   : > { %v3060_v38 = vpop.f32.mrf.mxu0  ;;  %v2096_v21 = vpop.f32.mrf.mxu1  ;;  %v2976_v36 = vrot.slane %v4867_v43, 3 }
 0x219   : > { %5208 = vst [vmem:[#allocation5_spill] sm:$0xff] %v4896_v56  ;;  %v2829_v12 = vpop.f32.mrf.mxu3  ;;  %v2185_v48 = vadd.f32 %v2096_v21, %v4571_v41  ;;  %v2372_v55 = vsel %vm1990_vm7, %v2369_v27, %v2371_v1 }
 0x21a   : > { %v2455_v62 = vpop.f32.mrf.mxu2 }
 0x21b   : > { %3922 = vmatmul.msk.bf16.gmra.mxu0 %vm722_vm3, %v2975_v13  ;;  %v2545_v33 = vadd.f32 %v2455_v62, %v2184_v37  ;;  %v2694_v37 = vsel %vm2587_vm6, %v2684_v4, %v2693_v25 }
 0x21d   : > { %v2914_v51 = vadd.f32 %v2824_v8, %v2545_v33 }
 0x21f   : > { %v3150_v46 = vadd.f32 %v3060_v38, %v2914_v51  ;;  %v4916_v38 = vld [vmem:[#allocation2 + $0x70] sm:$0xff] }
 0x220   : > { %v3062_v34 = vpop.f32.mrf.mxu0  ;;  %v2099_v59 = vpop.f32.mrf.mxu1  ;;  %v2696_v41 = vshrl.u32 %v4916_v38, 16  ;;  %v2699_v4 = vshll.u32 %v4916_v38, 16 }
 0x221   : > { %v3190_v8 = vmul.f32 %v4904_v14, %v3150_v46  ;;  %v2831_v30 = vpop.f32.mrf.mxu3  ;;  %v2977_v46 = vsel %vm2956_vm8, %v2974_v32, %v2976_v36  ;;  %v2186_v43 = vadd.f32 %v2099_v59, %v4576_v40  ;;  %v2373_v59 = vrot.slane %v4887_v44, 2 }
 0x222   : > { %v2457_v13 = vpop.f32.mrf.mxu2 }
 0x223   : > { %v4919_v62 = vadd.f32 %v4909_v58, %v3190_v8  ;;  %v2546_v28 = vadd.f32 %v2457_v13, %v2185_v48  ;;  %3798 = vmatmul.msk.bf16.gmra.mxu1 %vm722_vm3, %v2011_v39  ;;  %v2701_v13 = vrot.slane %v2699_v4, 3 }
 0x225   : > { %v2915_v0 = vadd.f32 %v2826_v49, %v2546_v28  ;;  %3905 = vmatmul.msk.bf16.gmra.mxu3 %vm722_vm3, %v2694_v37  ;;  %v2698_v49 = vrot.slane %v2696_v41, 2  ;;  %v4077_v28 = vld [vmem:[#allocation2 + $0x60] sm:$0xff] }
 0x227   : > { %v3151_v21 = vadd.f32 %v3062_v34, %v2915_v0  ;;  %3885 = vmatmul.msk.bf16.gmra.mxu2 %vm722_vm3, %v2372_v55  ;;  %v2012_v55 = vrot.slane %v4077_v28, 2  ;;  %v2702_v33 = vor.u32 %v2701_v13, %v2698_v49 }
 0x228   : > { %v3065_v51 = vpop.f32.mrf.mxu0  ;;  %v2101_v39 = vpop.f32.mrf.mxu1 }
 0x229   : > { %v3191_v27 = vmul.f32 %v4904_v14, %v3151_v21  ;;  %v2834_v8 = vpop.f32.mrf.mxu3  ;;  %v2013_v40 = vsel %vm1990_vm7, %v2010_v31, %v2012_v55  ;;  %v2187_v4 = vadd.f32 %v2101_v39, %v4586_v26  ;;  %v2978_v31 = vrot.slane %v4887_v44, 3 }
 0x22a   : > { %v2460_v48 = vpop.f32.mrf.mxu2 }
 0x22b   : > { %v4933_v37 = vadd.f32 %v4909_v58, %v3191_v27  ;;  %3923 = vmatmul.msk.bf16.gmra.mxu0 %vm722_vm3, %v2977_v46  ;;  %v2547_v34 = vadd.f32 %v2460_v48, %v2186_v43  ;;  %v2703_v43 = vsel %vm2587_vm6, %v2693_v25, %v2702_v33  ;;  %v4942_v48 = vld [vmem:[#allocation2 + $0x78] sm:$0xff]  ;;  %v2979_v28 = vsel %vm2956_vm8, %v2976_v36, %v2978_v31 }
 0x22c   : > { %v2705_v26 = vshrl.u32 %v4942_v48, 16 }
 0x22d   : > { %v3267_v0 = vmax.f32 %v4933_v37, 0.0  ;;  %v2916_v32 = vadd.f32 %v2829_v12, %v2547_v34 }
 0x22f   : > { %v3152_v56 = vadd.f32 %v3065_v51, %v2916_v32  ;;  %v2374_v51 = vsel %vm1990_vm7, %v2371_v1, %v2373_v59 }
 0x230   : > { %v3067_v21 = vpop.f32.mrf.mxu0  ;;  %v2104_v3 = vpop.f32.mrf.mxu1 }
 0x231   : > { %v3192_v41 = vmul.f32 %v4904_v14, %v3152_v56  ;;  %v2836_v27 = vpop.f32.mrf.mxu3  ;;  %v2708_v56 = vshll.u32 %v4942_v48, 16  ;;  %v2188_v44 = vadd.f32 %v2104_v3, %v4591_v20  ;;  %v2375_v3 = vrot.slane %v4916_v38, 2 }
 0x232   : > { %v2462_v46 = vpop.f32.mrf.mxu2 }
 0x233   : > { %v3232_v12 = vadd.f32 %v4909_v58, %v3192_v41  ;;  %v2548_v49 = vadd.f32 %v2462_v46, %v2187_v4  ;;  %3799 = vmatmul.msk.bf16.gmra.mxu1 %vm722_vm3, %v2013_v40  ;;  %v2707_v41 = vrot.slane %v2705_v26, 2  ;;  %v2710_v4 = vrot.slane %v2708_v56, 3 }
 0x235   : > { %v3268_v13 = vmax.f32 %v3232_v12, 0.0  ;;  %v2917_v34 = vadd.f32 %v2831_v30, %v2548_v49  ;;  %3906 = vmatmul.msk.bf16.gmra.mxu3 %vm722_vm3, %v2703_v43 }
 0x237   : > { %3304 = vst [vmem:[#allocation3 + $0xe] sm:$0xfc] %v3268_v13  ;;  %v3153_v25 = vadd.f32 %v3067_v21, %v2917_v34  ;;  %3886 = vmatmul.msk.bf16.gmra.mxu2 %vm722_vm3, %v2374_v51  ;;  %v4078_v21 = vld [vmem:[#allocation2 + $0x68] sm:$0xff]  ;;  %v2711_v13 = vor.u32 %v2710_v4, %v2707_v41 }
 0x238   : > { %v3070_v39 = vpop.f32.mrf.mxu0  ;;  %v2106_v32 = vpop.f32.mrf.mxu1  ;;  %v2014_v12 = vrot.slane %v4078_v21, 2 }
 0x239   : > { %v3193_v1 = vmul.f32 %v4904_v14, %v3153_v25  ;;  %v2839_v40 = vpop.f32.mrf.mxu3  ;;  %v2189_v56 = vadd.f32 %v2106_v32, %v4601_v17 }
 0x23a   : > { %v2465_v30 = vpop.f32.mrf.mxu2  ;;  %v2015_v20 = vsel %vm1990_vm7, %v2012_v55, %v2014_v12  ;;  %v2980_v55 = vrot.slane %v4916_v38, 3 }
 0x23b   : > { %v3233_v46 = vadd.f32 %v4909_v58, %v3193_v1  ;;  %3924 = vmatmul.msk.bf16.gmra.mxu0 %vm722_vm3, %v2979_v28  ;;  %v2549_v43 = vadd.f32 %v2465_v30, %v2188_v44  ;;  %v2712_v44 = vsel %vm2587_vm6, %v2702_v33, %v2711_v13  ;;  %v4962_v30 = vld [vmem:[#allocation2 + $0x80] sm:$0xff] }
 0x23c   : > { %v2714_v17 = vshrl.u32 %v4962_v30, 16  ;;  %v2717_v32 = vshll.u32 %v4962_v30, 16  ;;  %v2981_v21 = vsel %vm2956_vm8, %v2978_v31, %v2980_v55 }
 0x23d   : > { %v3269_v49 = vmax.f32 %v3233_v46, 0.0  ;;  %v2918_v51 = vadd.f32 %v2834_v8, %v2549_v43 }
 0x23f   : > { %3305 = vst [vmem:[#allocation3 + $0x16] sm:$0xff] %v3269_v49  ;;  %v3154_v36 = vadd.f32 %v3070_v39, %v2918_v51  ;;  %v2376_v39 = vsel %vm1990_vm7, %v2373_v59, %v2375_v3 }
 0x240   : > { %v3072_v34 = vpop.f32.mrf.mxu0  ;;  %v2109_v25 = vpop.f32.mrf.mxu1 }
 0x241   : > { %v3194_v26 = vmul.f32 %v4904_v14, %v3154_v36  ;;  %v2841_v1 = vpop.f32.mrf.mxu3  ;;  %v2190_v38 = vadd.f32 %v2109_v25, %v4606_v24  ;;  %v2716_v36 = vrot.slane %v2714_v17, 2  ;;  %v2377_v25 = vrot.slane %v4942_v48, 2 }
 0x242   : > { %v2467_v28 = vpop.f32.mrf.mxu2 }
 0x243   : > { %v3234_v8 = vadd.f32 %v4909_v58, %v3194_v26  ;;  %v2550_v41 = vadd.f32 %v2467_v28, %v2189_v56  ;;  %3800 = vmatmul.msk.bf16.gmra.mxu1 %vm722_vm3, %v2015_v20  ;;  %v2719_v20 = vrot.slane %v2717_v32, 3  ;;  %v4079_v56 = vld [vmem:[#allocation2 + $0x70] sm:$0xff] }
 0x244   : > { %v2016_v28 = vrot.slane %v4079_v56, 2 }
 0x245   : > { %v3270_v4 = vmax.f32 %v3234_v8, 0.0  ;;  %v2919_v46 = vadd.f32 %v2836_v27, %v2550_v41  ;;  %3907 = vmatmul.msk.bf16.gmra.mxu3 %vm722_vm3, %v2712_v44  ;;  %v2720_v41 = vor.u32 %v2719_v20, %v2716_v36 }
 0x246   : > { %v2017_v24 = vsel %vm1990_vm7, %v2014_v12, %v2016_v28  ;;  %v2982_v12 = vrot.slane %v4942_v48, 3 }
 0x247   : > { %3306 = vst [vmem:[#allocation3 + $0x1e] sm:$0x3] %v3270_v4  ;;  %v3155_v33 = vadd.f32 %v3072_v34, %v2919_v46  ;;  %3887 = vmatmul.msk.bf16.gmra.mxu2 %vm722_vm3, %v2376_v39 }
 0x248   : > { %3307 = vst [vmem:[#allocation3 + $0x1c] sm:$0xf0] %v3270_v4  ;;  %v3075_v43 = vpop.f32.mrf.mxu0  ;;  %v2111_v49 = vpop.f32.mrf.mxu1 }
 0x249   : > { %v3195_v59 = vmul.f32 %v4904_v14, %v3155_v33  ;;  %v2844_v27 = vpop.f32.mrf.mxu3  ;;  %v2191_v17 = vadd.f32 %v2111_v49, %v4616_v6 }
 0x24a   : > { %v2470_v51 = vpop.f32.mrf.mxu2 }
 0x24b   : > { %v3235_v26 = vadd.f32 %v4909_v58, %v3195_v59  ;;  %3925 = vmatmul.msk.bf16.gmra.mxu0 %vm722_vm3, %v2981_v21  ;;  %v2551_v34 = vadd.f32 %v2470_v51, %v2190_v38  ;;  %v2721_v21 = vsel %vm2587_vm6, %v2711_v13, %v2720_v41  ;;  %v4982_v59 = vld [vmem:[#allocation2 + $0x88] sm:$0xff] }
 0x24c   : > { %v2723_v6 = vshrl.u32 %v4982_v59, 16  ;;  %v2726_v49 = vshll.u32 %v4982_v59, 16 }
 0x24d   : > { %v3271_v44 = vmax.f32 %v3235_v26, 0.0  ;;  %v2920_v8 = vadd.f32 %v2839_v40, %v2551_v34  ;;  %v2983_v26 = vsel %vm2956_vm8, %v2980_v55, %v2982_v12 }
 0x24f   : > { %3308 = vst [vmem:[#allocation3 + $0x24] sm:$0xff] %v3271_v44  ;;  %v3156_v31 = vadd.f32 %v3075_v43, %v2920_v8  ;;  %v2378_v43 = vsel %vm1990_vm7, %v2375_v3, %v2377_v25  ;;  %v2725_v44 = vrot.slane %v2723_v6, 2  ;;  %v2728_v8 = vrot.slane %v2726_v49, 3 }
 0x250   : > { %v3077_v39 = vpop.f32.mrf.mxu0  ;;  %v2114_v4 = vpop.f32.mrf.mxu1 }
 0x251   : > { %v3196_v46 = vmul.f32 %v4904_v14, %v3156_v31  ;;  %v2846_v32 = vpop.f32.mrf.mxu3  ;;  %v2192_v48 = vadd.f32 %v2114_v4, %v4621_v50  ;;  %v2729_v55 = vor.u32 %v2728_v8, %v2725_v44  ;;  %v2379_v4 = vrot.slane %v4962_v30, 2 }
 0x252   : > { %v2472_v33 = vpop.f32.mrf.mxu2 }
 0x253   : > { %v3236_v40 = vadd.f32 %v4909_v58, %v3196_v46  ;;  %v2552_v38 = vadd.f32 %v2472_v33, %v2191_v17  ;;  %3801 = vmatmul.msk.bf16.gmra.mxu1 %vm722_vm3, %v2017_v24  ;;  %v4080_v24 = vld [vmem:[#allocation2 + $0x78] sm:$0xff]  ;;  %v2730_v49 = vsel %vm2587_vm6, %v2720_v41, %v2729_v55 }
 0x254   : > { %v2018_v46 = vrot.slane %v4080_v24, 2 }
 0x255   : > { %v3272_v51 = vmax.f32 %v3236_v40, 0.0  ;;  %v2921_v36 = vadd.f32 %v2841_v1, %v2552_v38  ;;  %3908 = vmatmul.msk.bf16.gmra.mxu3 %vm722_vm3, %v2721_v21 }
 0x256   : > { %v2019_v50 = vsel %vm1990_vm7, %v2016_v28, %v2018_v46  ;;  %v2380_v28 = vsel %vm1990_vm7, %v2377_v25, %v2379_v4 }
 0x257   : > { %3309 = vst [vmem:[#allocation3 + $0x2c] sm:$0xf] %v3272_v51  ;;  %v3157_v13 = vadd.f32 %v3077_v39, %v2921_v36  ;;  %3888 = vmatmul.msk.bf16.gmra.mxu2 %vm722_vm3, %v2378_v43 }
 0x258   : > { %3310 = vst [vmem:[#allocation3 + $0x2a] sm:$0xc0] %v3272_v51  ;;  %v3080_v20 = vpop.f32.mrf.mxu0  ;;  %v2116_v34 = vpop.f32.mrf.mxu1 }
 0x259   : > { %v3197_v3 = vmul.f32 %v4904_v14, %v3157_v13  ;;  %v2849_v1 = vpop.f32.mrf.mxu3  ;;  %v2193_v51 = vadd.f32 %v2116_v34, %v4633_v57  ;;  %v5002_v13 = vld [vmem:[#allocation2 + $0x90] sm:$0xff] }
 0x25a   : > { %v2475_v56 = vpop.f32.mrf.mxu2  ;;  %v2732_v41 = vshrl.u32 %v5002_v13, 16  ;;  %v2735_v34 = vshll.u32 %v5002_v13, 16 }
 0x25b   : > { %v3237_v31 = vadd.f32 %v4909_v58, %v3197_v3  ;;  %3926 = vmatmul.msk.bf16.gmra.mxu0 %vm722_vm3, %v2983_v26  ;;  %v2553_v39 = vadd.f32 %v2475_v56, %v2192_v48  ;;  %v2984_v3 = vrot.slane %v4962_v30, 3 }
 0x25c   : > { %v2734_v24 = vrot.slane %v2732_v41, 2 }
 0x25d   : > { %v3273_v17 = vmax.f32 %v3237_v31, 0.0  ;;  %v2922_v33 = vadd.f32 %v2844_v27, %v2553_v39  ;;  %v431_v27 = vld [vmem:[%s4313_s14 + $0xc] sm:$0xf]  ;;  %v2985_v8 = vsel %vm2956_vm8, %v2982_v12, %v2984_v3 }
 0x25e   : > { %437 = vst.msk [vmem:[#allocation2 + $0x9c] sm:$0xf] %vm391_vm1, %v431_v27 }
 0x25f   : > { %3311 = vst [vmem:[#allocation3 + $0x32] sm:$0xff] %v3273_v17  ;;  %v3158_v21 = vadd.f32 %v3080_v20, %v2922_v33  ;;  %v2737_v17 = vrot.slane %v2735_v34, 3 }
 0x260   : > { %v3082_v40 = vpop.f32.mrf.mxu0  ;;  %v2119_v38 = vpop.f32.mrf.mxu1 }
 0x261   : > { %v3198_v43 = vmul.f32 %v4904_v14, %v3158_v21  ;;  %v2851_v36 = vpop.f32.mrf.mxu3  ;;  %v2194_v30 = vadd.f32 %v2119_v38, %v4638_v2 }
 0x262   : > { %v2477_v6 = vpop.f32.mrf.mxu2 }
 0x263   : > { %v3238_v26 = vadd.f32 %v4909_v58, %v3198_v43  ;;  %v2554_v20 = vadd.f32 %v2477_v6, %v2193_v51  ;;  %3802 = vmatmul.msk.bf16.gmra.mxu1 %vm722_vm3, %v2019_v50  ;;  %v2738_v51 = vor.u32 %v2737_v17, %v2734_v24 }
 0x265   : > { %v3274_v48 = vmax.f32 %v3238_v26, 0.0  ;;  %v2923_v57 = vadd.f32 %v2846_v32, %v2554_v20  ;;  %3909 = vmatmul.msk.bf16.gmra.mxu3 %vm722_vm3, %v2730_v49  ;;  %v432_v49 = vld [vmem:[%s4313_s14 + $0x10] sm:$0xf]  ;;  %v2381_v26 = vrot.slane %v4982_v59, 2  ;;  %v2739_v41 = vsel %vm2587_vm6, %v2729_v55, %v2738_v51 }
 0x266   : > { %438 = vst.msk [vmem:[#allocation2 + $0xa0] sm:$0xf] %vm391_vm1, %v432_v49 }
 0x267   : > { %3312 = vst [vmem:[#allocation3 + $0x3a] sm:$0x3f] %v3274_v48  ;;  %v3159_v56 = vadd.f32 %v3082_v40, %v2923_v57  ;;  %3889 = vmatmul.msk.bf16.gmra.mxu2 %vm722_vm3, %v2380_v28  ;;  %v4081_v40 = vld [vmem:[#allocation2 + $0x80] sm:$0xff] }
 0x268   : > { %v3085_v44 = vpop.f32.mrf.mxu0  ;;  %v2121_v31 = vpop.f32.mrf.mxu1  ;;  %v2020_v50 = vrot.slane %v4081_v40, 2 }
 0x269   : > { %v3199_v25 = vmul.f32 %v4904_v14, %v3159_v56  ;;  %v2854_v32 = vpop.f32.mrf.mxu3  ;;  %v2195_v28 = vadd.f32 %v2121_v31, %v4650_v11 }
 0x26a   : > { %v2480_v39 = vpop.f32.mrf.mxu2  ;;  %v2021_v38 = vsel %vm1990_vm7, %v2018_v46, %v2020_v50  ;;  %v2382_v46 = vsel %vm1990_vm7, %v2379_v4, %v2381_v26 }
 0x26b   : > { %v5018_v33 = vadd.f32 %v4909_v58, %v3199_v25  ;;  %3927 = vmatmul.msk.bf16.gmra.mxu0 %vm722_vm3, %v2985_v8  ;;  %v2555_v21 = vadd.f32 %v2480_v39, %v2194_v30 }
 0x26d   : > { %v3275_v12 = vmax.f32 %v5018_v33, 0.0  ;;  %v2924_v43 = vadd.f32 %v2849_v1, %v2555_v21  ;;  %v5029_v1 = vld [vmem:[#allocation2 + $0x98] sm:$0xff]  ;;  %v2581_v49 = vld [vmem:[#allocation2 + $0xa0] sm:$0x7] }
 0x26e   : > { %v2741_v11 = vshrl.u32 %v5029_v1, 16  ;;  %v2744_v55 = vshll.u32 %v5029_v1, 16 }
 0x26f   : > { %v3160_v6 = vadd.f32 %v3085_v44, %v2924_v43  ;;  %v2986_v44 = vrot.slane %v4982_v59, 3 }
 0x270   : > { %v3087_v27 = vpop.f32.mrf.mxu0  ;;  %v2124_v2 = vpop.f32.mrf.mxu1  ;;  %v2746_v40 = vrot.slane %v2744_v55, 3 }
 0x271   : > { %v3200_v20 = vmul.f32 %v4904_v14, %v3160_v6  ;;  %v2856_v48 = vpop.f32.mrf.mxu3  ;;  %v2987_v39 = vsel %vm2956_vm8, %v2984_v3, %v2986_v44  ;;  %v2196_v59 = vadd.f32 %v2124_v2, %v4655_v42 }
 0x272   : > { %v2482_v57 = vpop.f32.mrf.mxu2 }
 0x273   : > { %v5032_v34 = vadd.f32 %v4909_v58, %v3200_v20  ;;  %v2556_v56 = vadd.f32 %v2482_v57, %v2195_v28  ;;  %3803 = vmatmul.msk.bf16.gmra.mxu1 %vm722_vm3, %v2021_v38  ;;  %v2585_v57 = vunpack.c.l.b16 %v2581_v49 }
 0x275   : > { %v3276_v8 = vmax.f32 %v5032_v34, 0.0  ;;  %v2925_v25 = vadd.f32 %v2851_v36, %v2556_v56  ;;  %3910 = vmatmul.msk.bf16.gmra.mxu3 %vm722_vm3, %v2739_v41  ;;  %v2743_v36 = vrot.slane %v2741_v11, 2 }
 0x277   : > { %v3161_v31 = vadd.f32 %v3087_v27, %v2925_v25  ;;  %3890 = vmatmul.msk.bf16.gmra.mxu2 %vm722_vm3, %v2382_v46  ;;  %v4082_v27 = vld [vmem:[#allocation2 + $0x88] sm:$0xff]  ;;  %v2747_v3 = vor.u32 %v2746_v40, %v2743_v36  ;;  %v2383_v46 = vrot.slane %v5002_v13, 2 }
 0x278   : > { %v3090_v30 = vpop.f32.mrf.mxu0  ;;  %v2126_v24 = vpop.f32.mrf.mxu1  ;;  %v2022_v38 = vrot.slane %v4082_v27, 2 }
 0x279   : > { %v3201_v4 = vmul.f32 %v4904_v14, %v3161_v31  ;;  %v2859_v17 = vpop.f32.mrf.mxu3  ;;  %v2197_v11 = vadd.f32 %v2126_v24, %v4663_v45 }
 0x27a   : > { %v2485_v21 = vpop.f32.mrf.mxu2  ;;  %v2023_v2 = vsel %vm1990_vm7, %v2020_v50, %v2022_v38  ;;  %v2988_v50 = vrot.slane %v5002_v13, 3 }
 0x27b   : > { %v3241_v43 = vadd.f32 %v4909_v58, %v3201_v4  ;;  %3928 = vmatmul.msk.bf16.gmra.mxu0 %vm722_vm3, %v2987_v39  ;;  %v2557_v6 = vadd.f32 %v2485_v21, %v2196_v59  ;;  %v2748_v39 = vsel %vm2587_vm6, %v2738_v51, %v2747_v3  ;;  %v5052_v4 = vpack.c.b16 %v2585_v57, %v2585_v57 }
 0x27d   : > { %v3277_v20 = vmax.f32 %v3241_v43, 0.0  ;;  %v2926_v28 = vadd.f32 %v2854_v32, %v2557_v6  ;;  %v2750_v45 = vshrl.u32 %v5052_v4, 16  ;;  %v2753_v24 = vshll.u32 %v5052_v4, 16 }
 0x27e   : > { %v2989_v43 = vsel %vm2956_vm8, %v2986_v44, %v2988_v50 }
 0x27f   : > { %3315 = vst [vmem:[#allocation3 + $0x4e] sm:$0xfc] %v3277_v20  ;;  %v3162_v41 = vadd.f32 %v3090_v30, %v2926_v28  ;;  %v2384_v30 = vsel %vm1990_vm7, %v2381_v26, %v2383_v46  ;;  %v2752_v27 = vrot.slane %v2750_v45, 2  ;;  %v2755_v20 = vrot.slane %v2753_v24, 3 }
 0x280   : > { %v3092_v56 = vpop.f32.mrf.mxu0  ;;  %v2129_v42 = vpop.f32.mrf.mxu1 }
 0x281   : > { %v3202_v25 = vmul.f32 %v4904_v14, %v3162_v41  ;;  %v2861_v55 = vpop.f32.mrf.mxu3  ;;  %v2198_v13 = vadd.f32 %v2129_v42, %v4671_v15  ;;  %v4083_v41 = vld [vmem:[#allocation2 + $0x90] sm:$0xff]  ;;  %v2385_v42 = vrot.slane %v5029_v1, 2 }
 0x282   : > { %v2487_v31 = vpop.f32.mrf.mxu2 }
 0x283   : > { %v3242_v32 = vadd.f32 %v4909_v58, %v3202_v25  ;;  %v2558_v59 = vadd.f32 %v2487_v31, %v2197_v11  ;;  %3804 = vmatmul.msk.bf16.gmra.mxu1 %vm722_vm3, %v2023_v2  ;;  %v2756_v11 = vor.u32 %v2755_v20, %v2752_v27  ;;  %v2386_v24 = vsel %vm1990_vm7, %v2383_v46, %v2385_v42 }
 0x285   : > { %v3278_v21 = vmax.f32 %v3242_v32, 0.0  ;;  %v2927_v36 = vadd.f32 %v2856_v48, %v2558_v59  ;;  %3911 = vmatmul.msk.bf16.gmra.mxu3 %vm722_vm3, %v2748_v39 }
 0x287   : > { %3316 = vst [vmem:[#allocation3 + $0x56] sm:$0xff] %v3278_v21  ;;  %v3163_v51 = vadd.f32 %v3092_v56, %v2927_v36  ;;  %3891 = vmatmul.msk.bf16.gmra.mxu2 %vm722_vm3, %v2384_v30  ;;  %v2024_v56 = vrot.slane %v4083_v41, 2  ;;  %v2757_v36 = vsel %vm2587_vm6, %v2747_v3, %v2756_v11 }
 0x288   : > { %v3095_v40 = vpop.f32.mrf.mxu0  ;;  %v2131_v6 = vpop.f32.mrf.mxu1 }
 0x289   : > { %v3203_v26 = vmul.f32 %v4904_v14, %v3163_v51  ;;  %v2864_v49 = vpop.f32.mrf.mxu3  ;;  %v2025_v15 = vsel %vm1990_vm7, %v2022_v38, %v2024_v56  ;;  %v2199_v59 = vadd.f32 %v2131_v6, %v4689_v53  ;;  %v2990_v51 = vrot.slane %v5029_v1, 3 }
 0x28a   : > { %v2490_v48 = vpop.f32.mrf.mxu2 }
 0x28b   : > { %v3243_v28 = vadd.f32 %v4909_v58, %v3203_v26  ;;  %3929 = vmatmul.msk.bf16.gmra.mxu0 %vm722_vm3, %v2989_v43  ;;  %v2559_v57 = vadd.f32 %v2490_v48, %v2198_v13  ;;  %v2256_v43 = vld [vmem:[#allocation2 + $0xa0] sm:$0x3]  ;;  %v2991_v3 = vsel %vm2956_vm8, %v2988_v50, %v2990_v51 }
 0x28c   : > { %v2332_v13 = vunpack.c.l.b16 %v2256_v43 }
 0x28d   : > { %v3279_v2 = vmax.f32 %v3243_v28, 0.0  ;;  %v2928_v25 = vadd.f32 %v2859_v17, %v2559_v57  ;;  %v2026_v28 = vrot.slane %v4692_v18, 2 }
 0x28e   : > { %v2351_v57 = vpack.c.b16 %v2332_v13, %v2332_v13 }
 0x28f   : > { %3317 = vst [vmem:[#allocation3 + $0x5e] sm:$0x3] %v3279_v2  ;;  %v3164_v44 = vadd.f32 %v3095_v40, %v2928_v25 }
 0x290   : > { %3318 = vst [vmem:[#allocation3 + $0x5c] sm:$0xf0] %v3279_v2  ;;  %v3097_v31 = vpop.f32.mrf.mxu0  ;;  %v2134_v39 = vpop.f32.mrf.mxu1 }
 0x291   : > { %v3204_v32 = vmul.f32 %v4904_v14, %v3164_v44  ;;  %v2866_v30 = vpop.f32.mrf.mxu3  ;;  %v2200_v46 = vadd.f32 %v2134_v39, %v4698_v23  ;;  %v2027_v44 = vsel %vm1990_vm7, %v2024_v56, %v2026_v28  ;;  %v2387_v23 = vrot.slane %v2351_v57, 2 }
 0x292   : > { %v2492_v21 = vpop.f32.mrf.mxu2 }
 0x293   : > { %v3244_v17 = vadd.f32 %v4909_v58, %v3204_v32  ;;  %v2560_v45 = vadd.f32 %v2492_v21, %v2199_v59  ;;  %3805 = vmatmul.msk.bf16.gmra.mxu1 %vm722_vm3, %v2025_v15  ;;  %v2992_v21 = vrot.slane %v5052_v4, 3 }
 0x295   : > { %v3280_v38 = vmax.f32 %v3244_v17, 0.0  ;;  %v2929_v40 = vadd.f32 %v2861_v55, %v2560_v45  ;;  %3912 = vmatmul.msk.bf16.gmra.mxu3 %vm722_vm3, %v2757_v36 }
 0x297   : > { %3319 = vst [vmem:[#allocation3 + $0x64] sm:$0xff] %v3280_v38  ;;  %v3165_v53 = vadd.f32 %v3097_v31, %v2929_v40  ;;  %3892 = vmatmul.msk.bf16.gmra.mxu2 %vm722_vm3, %v2386_v24 }
 0x298   : > { %v3100_v6 = vpop.f32.mrf.mxu0  ;;  %v2136_v26 = vpop.f32.mrf.mxu1 }
 0x299   : > { %v3205_v48 = vmul.f32 %v4904_v14, %v3165_v53  ;;  %v2869_v27 = vpop.f32.mrf.mxu3  ;;  %v2201_v39 = vadd.f32 %v2136_v26, %v4711_v54  ;;  %v2993_v54 = vsel %vm2956_vm8, %v2990_v51, %v2992_v21 }
 0x29a   : > { %v2495_v1 = vpop.f32.mrf.mxu2 }
 0x29b   : > { %v3245_v55 = vadd.f32 %v4909_v58, %v3205_v48  ;;  %3930 = vmatmul.msk.bf16.gmra.mxu0 %vm722_vm3, %v2991_v3  ;;  %v2561_v20 = vadd.f32 %v2495_v1, %v2200_v46 }
 0x29d   : > { %v3281_v41 = vmax.f32 %v3245_v55, 0.0  ;;  %v2930_v2 = vadd.f32 %v2864_v49, %v2561_v20  ;;  %v2388_v49 = vsel %vm1990_vm7, %v2385_v42, %v2387_v23 }
 0x29f   : > { %3320 = vst [vmem:[#allocation3 + $0x6c] sm:$0xf] %v3281_v41  ;;  %v3166_v50 = vadd.f32 %v3100_v6, %v2930_v2 }
 0x2a0   : > { %3321 = vst [vmem:[#allocation3 + $0x6a] sm:$0xc0] %v3281_v41  ;;  %v3102_v25 = vpop.f32.mrf.mxu0  ;;  %v2139_v11 = vpop.f32.mrf.mxu1  ;;  %v5209_v41 = vmax.f32 %v4919_v62, 0.0 }
 0x2a1   : > { %v3206_v31 = vmul.f32 %v4904_v14, %v3166_v50  ;;  %v2871_v15 = vpop.f32.mrf.mxu3  ;;  %v2202_v40 = vadd.f32 %v2139_v11, %v4718_v22 }
 0x2a2   : > { %v2497_v32 = vpop.f32.mrf.mxu2 }
 0x2a3   : > { %v3246_v59 = vadd.f32 %v4909_v58, %v3206_v31  ;;  %v2562_v18 = vadd.f32 %v2497_v32, %v2201_v39  ;;  %3806 = vmatmul.msk.bf16.gmra.mxu1 %vm722_vm3, %v2027_v44 }
 0x2a5   : > { %v3282_v36 = vmax.f32 %v3246_v59, 0.0  ;;  %v2931_v17 = vadd.f32 %v2866_v30, %v2562_v18 }
 0x2a7   : > { %3322 = vst [vmem:[#allocation3 + $0x72] sm:$0xff] %v3282_v36  ;;  %v3167_v56 = vadd.f32 %v3102_v25, %v2931_v17  ;;  %3893 = vmatmul.msk.bf16.gmra.mxu2 %vm722_vm3, %v2388_v49 }
 0x2a8   : > { %v3105_v45 = vpop.f32.mrf.mxu0  ;;  %v2141_v24 = vpop.f32.mrf.mxu1 }
 0x2a9   : > { %v3207_v38 = vmul.f32 %v4904_v14, %v3167_v56  ;;  %v2874_v43 = vpop.f32.mrf.mxu3  ;;  %v2203_v48 = vadd.f32 %v2141_v24, %v4736_v61 }
 0x2aa   : > { %v2500_v53 = vpop.f32.mrf.mxu2 }
 0x2ab   : > { %v3247_v42 = vadd.f32 %v4909_v58, %v3207_v38  ;;  %3931 = vmatmul.msk.bf16.gmra.mxu0 %vm722_vm3, %v2993_v54  ;;  %v2563_v4 = vadd.f32 %v2500_v53, %v2202_v40 }
 0x2ad   : > { %v3283_v30 = vmax.f32 %v3247_v42, 0.0  ;;  %v2932_v6 = vadd.f32 %v2869_v27, %v2563_v4 }
 0x2af   : > { %3323 = vst [vmem:[#allocation3 + $0x7a] sm:$0x3f] %v3283_v30  ;;  %v3168_v3 = vadd.f32 %v3105_v45, %v2932_v6 }
 0x2b0   : > { %v3107_v26 = vpop.f32.mrf.mxu0  ;;  %v2144_v13 = vpop.f32.mrf.mxu1 }
 0x2b1   : > { %v3208_v51 = vmul.f32 %v4904_v14, %v3168_v3  ;;  %v2876_v46 = vpop.f32.mrf.mxu3  ;;  %v2204_v11 = vadd.f32 %v2144_v13, %v4741_v52 }
 0x2b2   : > { %v2502_v1 = vpop.f32.mrf.mxu2 }
 0x2b3   : > { %v3248_v22 = vadd.f32 %v4909_v58, %v3208_v51  ;;  %v2564_v55 = vadd.f32 %v2502_v1, %v2203_v48 }
 0x2b5   : > { %v3284_v20 = vmax.f32 %v3248_v22, 0.0  ;;  %v2933_v28 = vadd.f32 %v2871_v15, %v2564_v55 }
 0x2b7   : > { %v3169_v57 = vadd.f32 %v3107_v26, %v2933_v28  ;;  %v4025_v2 = vpack.i.bf16 %v3284_v20, %v5209_v41  ;;  %v3348_v20 = vld [vmem:[#allocation3 + $0x10] sm:$0xff] }
 0x2b8   : > { %v3110_v27 = vpop.f32.mrf.mxu0  ;;  %v2146_v50 = vpop.f32.mrf.mxu1 }
 0x2b9   : > { %v3209_v25 = vmul.f32 %v4904_v14, %v3169_v57  ;;  %4026 = vxpose.xlu0.b32.start [1/16] (narrow) %v4025_v2, 8  ;;  %v2879_v44 = vpop.f32.mrf.mxu3  ;;  %v2205_v21 = vadd.f32 %v2146_v50, %v4756_v9 }
 0x2ba   : > { %v2505_v61 = vpop.f32.mrf.mxu2 }
 0x2bb   : > { %v3249_v23 = vadd.f32 %v4909_v58, %v3209_v25  ;;  %v2565_v31 = vadd.f32 %v2505_v61, %v2204_v11 }
 0x2bd   : > { %v3285_v39 = vmax.f32 %v3249_v23, 0.0  ;;  %v2934_v32 = vadd.f32 %v2874_v43, %v2565_v31 }
 0x2bf   : > { %v3170_v59 = vadd.f32 %v3110_v27, %v2934_v32  ;;  %v4027_v15 = vpack.i.bf16 %v3285_v39, %v3267_v0  ;;  %v3349_v39 = vld [vmem:[#allocation3 + $0x18] sm:$0xff] }
 0x2c0   : > { %v3112_v62 = vpop.f32.mrf.mxu0  ;;  %v2149_v18 = vpop.f32.mrf.mxu1 }
 0x2c1   : > { %v3210_v49 = vmul.f32 %v4904_v14, %v3170_v59  ;;  %4028 = vxpose.xlu0.b32.cont [2/16] (narrow) %v4027_v15, 8  ;;  %v2881_v52 = vpop.f32.mrf.mxu3  ;;  %v2206_v0 = vadd.f32 %v2149_v18, %v4761_v10 }
 0x2c2   : > { %v2507_v36 = vpop.f32.mrf.mxu2 }
 0x2c3   : > { %v3250_v17 = vadd.f32 %v4909_v58, %v3210_v49  ;;  %v2566_v56 = vadd.f32 %v2507_v36, %v2205_v21 }
 0x2c5   : > { %v3286_v45 = vmax.f32 %v3250_v17, 0.0  ;;  %v2935_v54 = vadd.f32 %v2876_v46, %v2566_v56 }
 0x2c7   : > { %3326 = vst [vmem:[#allocation3 + $0x8e] sm:$0xfc] %v3286_v45  ;;  %v3171_v24 = vadd.f32 %v3112_v62, %v2935_v54  ;;  %v3350_v54 = vld [vmem:[#allocation3 + $0x20] sm:$0xff] }
 0x2c8   : > { %v3115_v38 = vpop.f32.mrf.mxu0  ;;  %v2151_v40 = vpop.f32.mrf.mxu1 }
 0x2c9   : > { %v3211_v37 = vmul.f32 %v4904_v14, %v3171_v24  ;;  %v2884_v43 = vpop.f32.mrf.mxu3  ;;  %v2207_v51 = vadd.f32 %v2151_v40, %v4776_v47 }
 0x2ca   : > { %v2510_v53 = vpop.f32.mrf.mxu2 }
 0x2cb   : > { %v3251_v9 = vadd.f32 %v4909_v58, %v3211_v37  ;;  %v2567_v42 = vadd.f32 %v2510_v53, %v2206_v0 }
 0x2cd   : > { %v3287_v4 = vmax.f32 %v3251_v9, 0.0  ;;  %v2936_v30 = vadd.f32 %v2879_v44, %v2567_v42 }
 0x2cf   : > { %3327 = vst [vmem:[#allocation3 + $0x96] sm:$0xff] %v3287_v4  ;;  %v3172_v6 = vadd.f32 %v3115_v38, %v2936_v30 }
 0x2d0   : > { %v3117_v3 = vpop.f32.mrf.mxu0  ;;  %v2154_v26 = vpop.f32.mrf.mxu1 }
 0x2d1   : > { %v3212_v13 = vmul.f32 %v4904_v14, %v3172_v6  ;;  %v2886_v48 = vpop.f32.mrf.mxu3  ;;  %v2208_v25 = vadd.f32 %v2154_v26, %v4781_v19 }
 0x2d2   : > { %v2512_v46 = vpop.f32.mrf.mxu2 }
 0x2d3   : > { %v3252_v1 = vadd.f32 %v4909_v58, %v3212_v13  ;;  %v2568_v10 = vadd.f32 %v2512_v46, %v2207_v51 }
 0x2d5   : > { %v3288_v22 = vmax.f32 %v3252_v1, 0.0  ;;  %v2937_v55 = vadd.f32 %v2881_v52, %v2568_v10 }
 0x2d6   : > { %v3364_v28 = vld [vmem:[#allocation3 + $0x90] sm:$0xff] }
 0x2d7   : > { %3328 = vst [vmem:[#allocation3 + $0x9e] sm:$0x3] %v3288_v22  ;;  %v3173_v57 = vadd.f32 %v3117_v3, %v2937_v55  ;;  %v4029_v41 = vpack.i.bf16 %v3364_v28, %v3348_v20  ;;  %v3351_v3 = vld [vmem:[#allocation3 + $0x28] sm:$0xff] }
 0x2d8   : > { %3329 = vst [vmem:[#allocation3 + $0x9c] sm:$0xf0] %v3288_v22  ;;  %v3120_v2 = vpop.f32.mrf.mxu0  ;;  %v2156_v27 = vpop.f32.mrf.mxu1 }
 0x2d9   : > { %v3213_v50 = vmul.f32 %v4904_v14, %v3173_v57  ;;  %4030 = vxpose.xlu0.b32.cont [3/16] (narrow) %v4029_v41, 8  ;;  %v2889_v47 = vpop.f32.mrf.mxu3  ;;  %v2209_v21 = vadd.f32 %v2156_v27, %v4796_v16  ;;  %v3352_v57 = vld [vmem:[#allocation3 + $0x30] sm:$0xff] }
 0x2da   : > { %v2515_v11 = vpop.f32.mrf.mxu2 }
 0x2db   : > { %v3253_v44 = vadd.f32 %v4909_v58, %v3213_v50  ;;  %v2569_v61 = vadd.f32 %v2515_v11, %v2208_v25 }
 0x2dd   : > { %v3289_v23 = vmax.f32 %v3253_v44, 0.0  ;;  %v2938_v31 = vadd.f32 %v2884_v43, %v2569_v61 }
 0x2de   : > { %v3365_v32 = vld [vmem:[#allocation3 + $0x98] sm:$0xff] }
 0x2df   : > { %3330 = vst [vmem:[#allocation3 + $0xa4] sm:$0xff] %v3289_v23  ;;  %v3174_v59 = vadd.f32 %v3120_v2, %v2938_v31  ;;  %v4031_v15 = vpack.i.bf16 %v3365_v32, %v3349_v39  ;;  %v3353_v32 = vld [vmem:[#allocation3 + $0x38] sm:$0xff] }
 0x2e0   : > { %v3122_v62 = vpop.f32.mrf.mxu0  ;;  %v2159_v18 = vpop.f32.mrf.mxu1 }
 0x2e1   : > { %v3214_v49 = vmul.f32 %v4904_v14, %v3174_v59  ;;  %4032 = vxpose.xlu0.b32.cont [4/16] (narrow) %v4031_v15, 8  ;;  %v2891_v17 = vpop.f32.mrf.mxu3  ;;  %v2210_v16 = vadd.f32 %v2159_v18, %v4801_v35 }
 0x2e2   : > { %v2517_v19 = vpop.f32.mrf.mxu2 }
 0x2e3   : > { %v3254_v52 = vadd.f32 %v4909_v58, %v3214_v49  ;;  %v2570_v36 = vadd.f32 %v2517_v19, %v2209_v21  ;;  %v5134_v21 = vld [vmem:[%s5184_s3] ss:$0 sm:$0xff] }
 0x2e5   : > { %v3290_v56 = vmax.f32 %v3254_v52, 0.0  ;;  %v2939_v45 = vadd.f32 %v2886_v48, %v2570_v36  ;;  %v5141_v52 = vld [vmem:[%s5185_s4] ss:$0 sm:$0xff] }
 0x2e6   : > { %v3366_v24 = vld [vmem:[#allocation3 + $0xa0] sm:$0xff] }
 0x2e7   : > { %3331 = vst [vmem:[#allocation3 + $0xac] sm:$0xf] %v3290_v56  ;;  %v3175_v38 = vadd.f32 %v3122_v62, %v2939_v45  ;;  %v4033_v40 = vpack.i.bf16 %v3366_v24, %v3350_v54 }
 0x2e8   : > { %3332 = vst [vmem:[#allocation3 + $0xaa] sm:$0xc0] %v3290_v56  ;;  %v3125_v37 = vpop.f32.mrf.mxu0  ;;  %v2161_v0 = vpop.f32.mrf.mxu1 }
 0x2e9   : > { %v3215_v43 = vmul.f32 %v4904_v14, %v3175_v38  ;;  %4034 = vxpose.xlu0.b32.cont [5/16] (narrow) %v4033_v40, 8  ;;  %v2894_v6 = vpop.f32.mrf.mxu3  ;;  %v2211_v10 = vadd.f32 %v2161_v0, %v4816_v29 }
 0x2ea   : > { %v2520_v53 = vpop.f32.mrf.mxu2 }
 0x2eb   : > { %v3255_v9 = vadd.f32 %v4909_v58, %v3215_v43  ;;  %v2571_v42 = vadd.f32 %v2520_v53, %v2210_v16 }
 0x2ed   : > { %v3291_v4 = vmax.f32 %v3255_v9, 0.0  ;;  %v2940_v30 = vadd.f32 %v2889_v47, %v2571_v42 }
 0x2ee   : > { %v3367_v26 = vld [vmem:[#allocation3 + $0xa8] sm:$0xff] }
 0x2ef   : > { %3333 = vst [vmem:[#allocation3 + $0xb2] sm:$0xff] %v3291_v4  ;;  %v3176_v13 = vadd.f32 %v3125_v37, %v2940_v30  ;;  %v4035_v51 = vpack.i.bf16 %v3367_v26, %v3351_v3 }
 0x2f0   : > { %v3127_v48 = vpop.f32.mrf.mxu0  ;;  %v2164_v46 = vpop.f32.mrf.mxu1 }
 0x2f1   : > { %v3216_v1 = vmul.f32 %v4904_v14, %v3176_v13  ;;  %4036 = vxpose.xlu0.b32.cont [6/16] (narrow) %v4035_v51, 8  ;;  %v2896_v50 = vpop.f32.mrf.mxu3  ;;  %v2212_v44 = vadd.f32 %v2164_v46, %v4821_v63 }
 0x2f2   : > { %v2522_v35 = vpop.f32.mrf.mxu2 }
 0x2f3   : > { %v3256_v22 = vadd.f32 %v4909_v58, %v3216_v1  ;;  %v2572_v55 = vadd.f32 %v2522_v35, %v2211_v10 }
 0x2f5   : > { %v3292_v20 = vmax.f32 %v3256_v22, 0.0  ;;  %v2941_v28 = vadd.f32 %v2891_v17, %v2572_v55 }
 0x2f6   : > { %v3368_v41 = vld [vmem:[#allocation3 + $0xb0] sm:$0xff] }
 0x2f7   : > { %3334 = vst [vmem:[#allocation3 + $0xba] sm:$0x3f] %v3292_v20  ;;  %v3177_v2 = vadd.f32 %v3127_v48, %v2941_v28  ;;  %v4037_v27 = vpack.i.bf16 %v3368_v41, %v3352_v57  ;;  %v3356_v41 = vld [vmem:[#allocation3 + $0x50] sm:$0xff] }
 0x2f8   : > { %v3130_v25 = vpop.f32.mrf.mxu0  ;;  %v2166_v47 = vpop.f32.mrf.mxu1 }
 0x2f9   : > { %v3217_v11 = vmul.f32 %v4904_v14, %v3177_v2  ;;  %4038 = vxpose.xlu0.b32.cont [7/16] (narrow) %v4037_v27, 8  ;;  %v2213_v14 = vadd.f32 %v2166_v47, %v4836_v5  ;;  %v2899_v19 = vpop.f32.mrf.mxu3 }
 0x2fa   : > { %v2525_v29 = vpop.f32.mrf.mxu2 }
 0x2fb   : > { %v3257_v61 = vadd.f32 %v4909_v58, %v3217_v11  ;;  %v2573_v23 = vadd.f32 %v2525_v29, %v2212_v44  ;;  %v5211_v11 = vld [vmem:[#allocation11_spill] sm:$0xff] }
 0x2fd   : > { %v3293_v31 = vmax.f32 %v3257_v61, 0.0  ;;  %v2942_v39 = vadd.f32 %v2894_v6, %v2573_v23 }
 0x2fe   : > { %v3369_v59 = vld [vmem:[#allocation3 + $0xb8] sm:$0xff] }
 0x2ff   : > { %v3178_v15 = vadd.f32 %v3130_v25, %v2942_v39  ;;  %v4039_v62 = vpack.i.bf16 %v3369_v59, %v3353_v32  ;;  %v4041_v24 = vpack.i.bf16 %v3293_v31, %v3275_v12 }
 0x300   : > { %v3132_v18 = vpop.f32.mrf.mxu0  ;;  %v2169_v49 = vpop.f32.mrf.mxu1 }
 0x301   : > { %v3218_v63 = vmul.f32 %v5134_v21, %v3178_v15  ;;  %4040 = vxpose.xlu0.b32.cont [8/16] (narrow) %v4039_v62, 8  ;;  %v2214_v37 = vadd.f32 %v2169_v49, %v4841_v7  ;;  %v2901_v53 = vpop.f32.mrf.mxu3  ;;  %v3357_v15 = vld [vmem:[#allocation3 + $0x58] sm:$0xff] }
 0x302   : > { %v2527_v58 = vpop.f32.mrf.mxu2 }
 0x303   : > { %v3258_v36 = vadd.f32 %v5141_v52, %v3218_v63  ;;  %v2574_v17 = vadd.f32 %v2527_v58, %v2213_v14  ;;  %v5212_v14 = vld [vmem:[#allocation4_spill] sm:$0xff] }
 0x305   : > { %v3294_v56 = vmax.f32 %v3258_v36, 0.0  ;;  %v2943_v45 = vadd.f32 %v2896_v50, %v2574_v17 }
 0x307   : > { %v3179_v54 = vadd.f32 %v3132_v18, %v2943_v45  ;;  %v4043_v33 = vpack.i.bf16 %v3294_v56, %v3276_v8  ;;  %v5210_v8 = vld [vmem:[#allocation10_spill] sm:$0xff] }
 0x308   : > { %v3135_v38 = vpop.f32.mrf.mxu0  ;;  %v2171_v40 = vpop.f32.mrf.mxu1 }
 0x309   : > { %v3219_v5 = vmul.f32 %v5134_v21, %v3179_v54  ;;  %4042 = vxpose.xlu0.b32.cont [9/16] (narrow) %v4041_v24, 8  ;;  %v2215_v3 = vadd.f32 %v2171_v40, %v4856_v60  ;;  %v2904_v46 = vpop.f32.mrf.mxu3  ;;  %v3358_v40 = vld [vmem:[#allocation3 + $0x60] sm:$0xff] }
 0x30a   : > { %v2530_v0 = vpop.f32.mrf.mxu2 }
 0x30b   : > { %v3259_v43 = vadd.f32 %v5141_v52, %v3219_v5  ;;  %v2575_v16 = vadd.f32 %v2530_v0, %v2214_v37 }
 0x30d   : > { %v3295_v9 = vmax.f32 %v3259_v43, 0.0  ;;  %v2944_v42 = vadd.f32 %v2899_v19, %v2575_v16  ;;  %v5213_v16 = vld [vmem:[#allocation5_spill] sm:$0xff] }
 0x30f   : > { %3337 = vst [vmem:[#allocation3 + $0xce] sm:$0xfc] %v3295_v9  ;;  %v3180_v4 = vadd.f32 %v3135_v38, %v2944_v42 }
 0x310   : > { %v3137_v12 = vpop.f32.mrf.mxu0  ;;  %v2174_v30 = vpop.f32.mrf.mxu1 }
 0x311   : > { %v3220_v6 = vmul.f32 %v5134_v21, %v3180_v4  ;;  %4044 = vxpose.xlu0.b32.cont [10/16] (narrow) %v4043_v33, 8  ;;  %v2216_v35 = vadd.f32 %v2174_v30, %v5210_v8  ;;  %v2906_v25 = vpop.f32.mrf.mxu3  ;;  %v3361_v8 = vld [vmem:[#allocation3 + $0x78] sm:$0xff] }
 0x312   : > { %v2532_v7 = vpop.f32.mrf.mxu2 }
 0x313   : > { %v3260_v26 = vadd.f32 %v5141_v52, %v3220_v6  ;;  %v2576_v13 = vadd.f32 %v2532_v7, %v2215_v3  ;;  %v3359_v3 = vld [vmem:[#allocation3 + $0x68] sm:$0xff] }
 0x315   : > { %v3296_v51 = vmax.f32 %v3260_v26, 0.0  ;;  %v2945_v48 = vadd.f32 %v2901_v53, %v2576_v13 }
 0x317   : > { %3338 = vst [vmem:[#allocation3 + $0xd6] sm:$0xff] %v3296_v51  ;;  %v3181_v1 = vadd.f32 %v3137_v12, %v2945_v48 }
 0x318   : > { %v3140_v10 = vpop.f32.mrf.mxu0  ;;  %v2176_v55 = vpop.f32.mrf.mxu1 }
 0x319   : > { %v3221_v34 = vmul.f32 %v5134_v21, %v3181_v1  ;;  %v2217_v44 = vadd.f32 %v2176_v55, %v5211_v11  ;;  %v2909_v19 = vpop.f32.mrf.mxu3  ;;  %v3360_v1 = vld [vmem:[#allocation3 + $0x70] sm:$0xff] }
 0x31a   : > { %v2535_v22 = vpop.f32.mrf.mxu2 }
 0x31b   : > { %v3261_v20 = vadd.f32 %v5141_v52, %v3221_v34  ;;  %v2577_v60 = vadd.f32 %v2535_v22, %v2216_v35 }
 0x31d   : > { %v3297_v28 = vmax.f32 %v3261_v20, 0.0  ;;  %v2946_v57 = vadd.f32 %v2904_v46, %v2577_v60 }
 0x31e   : > { %v3372_v2 = vld [vmem:[#allocation3 + $0xd0] sm:$0xff] }
 0x31f   : > { %3339 = vst [vmem:[#allocation3 + $0xde] sm:$0x3] %v3297_v28  ;;  %v3182_v27 = vadd.f32 %v3140_v10, %v2946_v57  ;;  %v4045_v50 = vpack.i.bf16 %v3372_v2, %v3356_v41 }
 0x320   : > { %3340 = vst [vmem:[#allocation3 + $0xdc] sm:$0xf0] %v3297_v28  ;;  %v3142_v29 = vpop.f32.mrf.mxu0  ;;  %v2179_v39 = vpop.f32.mrf.mxu1 }
 0x321   : > { %v3222_v47 = vmul.f32 %v5134_v21, %v3182_v27  ;;  %4046 = vxpose.xlu0.b32.cont [11/16] (narrow) %v4045_v50, 8  ;;  %v2218_v58 = vadd.f32 %v2179_v39, %v5212_v14  ;;  %v2911_v33 = vpop.f32.mrf.mxu3 }
 0x322   : > { %v2537_v61 = vpop.f32.mrf.mxu2 }
 0x323   : > { %v3262_v23 = vadd.f32 %v5141_v52, %v3222_v47  ;;  %v2578_v31 = vadd.f32 %v2537_v61, %v2217_v44 }
 0x325   : > { %v3298_v32 = vmax.f32 %v3262_v23, 0.0  ;;  %v2947_v59 = vadd.f32 %v2906_v25, %v2578_v31 }
 0x326   : > { %v3373_v62 = vld [vmem:[#allocation3 + $0xd8] sm:$0xff] }
 0x327   : > { %3341 = vst [vmem:[#allocation3 + $0xe4] sm:$0xff] %v3298_v32  ;;  %v3183_v18 = vadd.f32 %v3142_v29, %v2947_v59  ;;  %v4047_v49 = vpack.i.bf16 %v3373_v62, %v3357_v15 }
 0x328   : > { %v3145_v45 = vpop.f32.mrf.mxu0  ;;  %v2181_v38 = vpop.f32.mrf.mxu1 }
 0x329   : > { %v3223_v63 = vmul.f32 %v5134_v21, %v3183_v18  ;;  %4048 = vxpose.xlu0.b32.cont [12/16] (narrow) %v4047_v49, 8  ;;  %v2219_v53 = vadd.f32 %v2181_v38, %v5213_v16 }
 0x32a   : > { %v2540_v36 = vpop.f32.mrf.mxu2 }
 0x32b   : > { %v3263_v17 = vadd.f32 %v5141_v52, %v3223_v63  ;;  %v2579_v56 = vadd.f32 %v2540_v36, %v2218_v58 }
 0x32d   : > { %v3299_v54 = vmax.f32 %v3263_v17, 0.0  ;;  %v2948_v24 = vadd.f32 %v2909_v19, %v2579_v56 }
 0x32e   : > { %v3374_v5 = vld [vmem:[#allocation3 + $0xe0] sm:$0xff] }
 0x32f   : > { %3342 = vst [vmem:[#allocation3 + $0xec] sm:$0xf] %v3299_v54  ;;  %v3184_v37 = vadd.f32 %v3145_v45, %v2948_v24  ;;  %v4049_v0 = vpack.i.bf16 %v3374_v5, %v3358_v40 }
 0x330   : > { %3343 = vst [vmem:[#allocation3 + $0xea] sm:$0xc0] %v3299_v54  ;;  %v3147_v6 = vpop.f32.mrf.mxu0 }
 0x331   : > { %v3224_v43 = vmul.f32 %v5134_v21, %v3184_v37  ;;  %4050 = vxpose.xlu0.b32.cont [13/16] (narrow) %v4049_v0, 8 }
 0x332   : > { %v2542_v9 = vpop.f32.mrf.mxu2 }
 0x333   : > { %v3264_v42 = vadd.f32 %v5141_v52, %v3224_v43  ;;  %v2580_v4 = vadd.f32 %v2542_v9, %v2219_v53 }
 0x335   : > { %v3300_v12 = vmax.f32 %v3264_v42, 0.0  ;;  %v2949_v30 = vadd.f32 %v2911_v33, %v2580_v4 }
 0x336   : > { %v3375_v7 = vld [vmem:[#allocation3 + $0xe8] sm:$0xff] }
 0x337   : > { %3344 = vst [vmem:[#allocation3 + $0xf2] sm:$0xff] %v3300_v12  ;;  %v3185_v26 = vadd.f32 %v3147_v6, %v2949_v30  ;;  %v4051_v13 = vpack.i.bf16 %v3375_v7, %v3359_v3 }
 0x339   : > { %v3225_v51 = vmul.f32 %v5134_v21, %v3185_v26  ;;  %4052 = vxpose.xlu0.b32.cont [14/16] (narrow) %v4051_v13, 8 }
 0x33b   : > { %v3265_v48 = vadd.f32 %v5141_v52, %v3225_v51 }
 0x33d   : > { %v3301_v46 = vmax.f32 %v3265_v48, 0.0 }
 0x33e   : > { %v3376_v10 = vld [vmem:[#allocation3 + $0xf0] sm:$0xff] }
 0x33f   : > { %3345 = vst [vmem:[#allocation3 + $0xfa] sm:$0x3f] %v3301_v46  ;;  %v4053_v34 = vpack.i.bf16 %v3376_v10, %v3360_v1 }
 0x341   : > { %4054 = vxpose.xlu0.b32.cont [15/16] (narrow) %v4053_v34, 8 }
 0x346   : > { %v3377_v35 = vld [vmem:[#allocation3 + $0xf8] sm:$0xff] }
 0x347   : > { %v4055_v22 = vpack.i.bf16 %v3377_v35, %v3361_v8 }
 0x349   : > { %4056 = vxpose.xlu0.b32.end [16/16] (narrow) %v4055_v22, 8 }
 0x375   : > { %v4057_v55 = vpop.trf.xlu0 }
 0x376   : > { %v4061_v20 = vunpack.i.h.bf16 %v4057_v55  ;;  %v4058_v60 = vunpack.i.l.bf16 %v4057_v55 }
 0x378   : > { %v3442_v21 = vpack.c.bf16 %v4061_v20, %v4058_v60 }
 0x37a   : > { %3443 = vst [vmem:[%s352_s13] sm:$0xff] %v3442_v21 }
 0x37b PF: > { %s15_s20 = sadd.s32 1, %s4108_s20   ;;  %s5214_s18 = smov %s4104_s19 }
 0x37c   : > { %p12_p5 = scmp.ge.s32.totalorder %s15_s20, 4   ;;  %s5215_s19 = smov %s5217_s21 }
 0x37e   :  { %14 = sbr.rel (!%p12_p5) target bundleno = 2 (0x2), region = 81 }

</bundles_post_ra>
